<compile_context>
chip_gen: v5e
topology: v5e:2x2
jax: 0.10.0
libtpu: 0.0.40
codegen_flags: <defaults>
</compile_context>

<pallas_src>
import functools

import jax
import jax.numpy as jnp
from jax.experimental import pallas as pl
from jax.experimental.pallas import tpu as pltpu


def _round_up(x, m):
    return (x + m - 1) // m * m


def _largest_divisor(n, cap):
    """Largest divisor of n that is <= cap (n >= 1, cap >= 1)."""
    best = 1
    for d in range(1, min(n, cap) + 1):
        if n % d == 0:
            best = d
    return best


def _tiles(M, Kp, Np):
    """Pick (tm, tk, tn, Mp) for an (M, Kp) x (Kp, Np) matmul.

    Activation-heavy layers (large M, small K/N) get big M tiles; weight-heavy
    layers (small M, large K/N) get big K/N tiles.  Kp/Np are already multiples
    of 128, and tk/tn always divide them exactly.
    """
    Mp0 = _round_up(M, 8)
    if Mp0 <= 1024:
        tm = Mp0
        kcap, ncap = 2048, 512
    else:
        tm = 4096 if Mp0 >= 32768 else 2048
        kcap, ncap = 640, 128
    Mp = _round_up(Mp0, tm)
    tk = 128 * _largest_divisor(Kp // 128, kcap // 128)
    tn = 128 * _largest_divisor(Np // 128, ncap // 128)
    return tm, tk, tn, Mp


# ----------------------------------------------------------------------------
# Fused matmul kernel:  y = act((x @ w) * scale + bias [+ residual])
# ----------------------------------------------------------------------------
def _mm_kernel(*refs, activation, has_res):
    if has_res:
        x_ref, w_ref, s_ref, b_ref, r_ref, o_ref, acc_ref = refs
    else:
        x_ref, w_ref, s_ref, b_ref, o_ref, acc_ref = refs
        r_ref = None
    k = pl.program_id(2)

    @pl.when(k == 0)
    def _():
        acc_ref[...] = jnp.zeros_like(acc_ref)

    acc_ref[...] += jnp.dot(x_ref[...], w_ref[...],
                            preferred_element_type=jnp.float32)

    @pl.when(k == pl.num_programs(2) - 1)
    def _():
        y = acc_ref[...] * s_ref[...] + b_ref[...]
        if has_res:
            y = y + r_ref[...].astype(jnp.float32)
        if activation == "relu":
            y = jnp.maximum(y, 0.0)
        elif activation == "sigmoid":
            y = jax.nn.sigmoid(y)
        o_ref[...] = y.astype(o_ref.dtype)


def fused_matmul(x, wp, sp, bp, *, activation="none", residual=None,
                 out_dtype=jnp.bfloat16):
    """x: (M, Kp) bf16, wp: (Kp, Np) bf16, sp/bp: (1, Np) f32.

    Returns the padded (Mp, Np) result (caller slices logical rows/cols).
    """
    M, K = x.shape
    Kp, Np = wp.shape
    assert K == Kp, (K, Kp)
    tm, tk, tn, Mp = _tiles(M, Kp, Np)

    if x.dtype != jnp.bfloat16:
        x = x.astype(jnp.bfloat16)
    if Mp != M:
        x = jnp.pad(x, ((0, Mp - M), (0, 0)))

    args = [x, wp, sp, bp]
    in_specs = [
        pl.BlockSpec((tm, tk), lambda i, j, k: (i, k)),
        pl.BlockSpec((tk, tn), lambda i, j, k: (k, j)),
        pl.BlockSpec((1, tn), lambda i, j, k: (0, j)),
        pl.BlockSpec((1, tn), lambda i, j, k: (0, j)),
    ]
    if residual is not None:
        assert residual.shape == (Mp, Np), (residual.shape, (Mp, Np))
        args.append(residual.astype(jnp.bfloat16))
        in_specs.append(pl.BlockSpec((tm, tn), lambda i, j, k: (i, j)))

    grid = (Mp // tm, Np // tn, Kp // tk)
    out = pl.pallas_call(
        functools.partial(_mm_kernel, activation=activation,
                          has_res=residual is not None),
        out_shape=jax.ShapeDtypeStruct((Mp, Np), out_dtype),
        grid_spec=pltpu.PrefetchScalarGridSpec(
            num_scalar_prefetch=0,
            grid=grid,
            in_specs=in_specs,
            out_specs=pl.BlockSpec((tm, tn), lambda i, j, k: (i, j)),
            scratch_shapes=[pltpu.VMEM((tm, tn), jnp.float32)],
        ),
        compiler_params=pltpu.CompilerParams(
            dimension_semantics=("parallel", "parallel", "arbitrary"),
            vmem_limit_bytes=32 * 1024 * 1024,
        ),
    )(*args)
    return out


# ----------------------------------------------------------------------------
# Conv glue (patch extraction in plain JAX, matmul + epilogue in Pallas)
# ----------------------------------------------------------------------------
def _im2col3x3(x, Kp):
    """x: (B, H, W, C) -> (B*H*W, Kp) bf16 patch matrix, columns (kh, kw, cin)."""
    B, H, W, C = x.shape
    xp = jnp.pad(x, ((0, 0), (1, 1), (1, 1), (0, 0)))
    cols = [xp[:, kh:kh + H, kw:kw + W, :] for kh in range(3) for kw in range(3)]
    patches = jnp.concatenate(cols, axis=-1).reshape(B * H * W, 9 * C)
    if Kp > 9 * C:
        patches = jnp.pad(patches, ((0, 0), (0, Kp - 9 * C)))
    return patches


def _flat_channels(x, Kp):
    B, H, W, C = x.shape
    f = x.reshape(B * H * W, C)
    if Kp > C:
        f = jnp.pad(f, ((0, 0), (0, Kp - C)))
    return f


def conv3x3_bn(x, layer, activation, residual=None, keep_padded=False):
    """3x3 conv (stride 1, pad 1, no bias) + folded BN + activation [+ residual]."""
    B, H, W, _ = x.shape
    M = B * H * W
    y = fused_matmul(_im2col3x3(x, layer["w"].shape[0]), layer["w"],
                     layer["s"], layer["b"], activation=activation,
                     residual=residual)
    if keep_padded:
        return y
    return y[:M, :layer["cout"]].reshape(B, H, W, layer["cout"])


def conv1x1_bn(x, layer, activation="none", keep_padded=False):
    B, H, W, _ = x.shape
    M = B * H * W
    y = fused_matmul(_flat_channels(x, layer["w"].shape[0]), layer["w"],
                     layer["s"], layer["b"], activation=activation)
    if keep_padded:
        return y
    return y[:M, :layer["cout"]].reshape(B, H, W, layer["cout"])


def maxpool2x2(x):  # NHWC, kernel=2, stride=2 (matches nn.MaxPool2d(2))
    B, H, W, C = x.shape
    return x.reshape(B, H // 2, 2, W // 2, 2, C).max(axis=(2, 4))


# ----------------------------------------------------------------------------
# Parameter initialization (deterministic, synthetic; preprocessing hoisted)
# ----------------------------------------------------------------------------
def init_params(key):
    keys = iter(jax.random.split(key, 128))

    def conv_w(cout, cin, ksz):
        fan_in = cin * ksz * ksz
        return jax.random.normal(next(keys), (cout, cin, ksz, ksz),
                                 jnp.float32) * (2.0 / fan_in) ** 0.5

    def bn_fold(c):
        # eval-mode BN with PyTorch default running stats (mean=0, var=1), folded.
        gamma = 1.0 + 0.1 * jax.random.normal(next(keys), (c,), jnp.float32)
        beta = 0.1 * jax.random.normal(next(keys), (c,), jnp.float32)
        eps = 1e-5
        return gamma / jnp.sqrt(1.0 + eps), beta

    def prep(wm, scale, bias):
        K, N = wm.shape
        Kp, Np = _round_up(K, 128), _round_up(N, 128)
        wp = jnp.zeros((Kp, Np), jnp.bfloat16).at[:K, :N].set(
            wm.astype(jnp.bfloat16))
        sp = jnp.zeros((1, Np), jnp.float32).at[0, :N].set(scale)
        bp = jnp.zeros((1, Np), jnp.float32).at[0, :N].set(bias)
        return {"w": wp, "s": sp, "b": bp, "cout": N}

    def conv3x3_layer(cin, cout):
        w = conv_w(cout, cin, 3)
        wm = jnp.transpose(w, (2, 3, 1, 0)).reshape(9 * cin, cout)  # (kh,kw,cin)xcout
        s, b = bn_fold(cout)
        return prep(wm, s, b)

    def conv1x1_layer(cin, cout):
        w = conv_w(cout, cin, 1)
        wm = jnp.transpose(w.reshape(cout, cin), (1, 0))
        s, b = bn_fold(cout)
        return prep(wm, s, b)

    def linear_layer(fin, fout, bias=True):
        w = jax.random.normal(next(keys), (fin, fout), jnp.float32) / jnp.sqrt(fin)
        b = (0.01 * jax.random.normal(next(keys), (fout,), jnp.float32)
             if bias else jnp.zeros((fout,), jnp.float32))
        return prep(w, jnp.ones((fout,), jnp.float32), b)

    params = {}

    mask_chans = [1, 4, 8, 16, 32, 1]
    params["mask"] = [conv3x3_layer(mask_chans[i], mask_chans[i + 1])
                      for i in range(5)]

    feat_chans = [1, 32, 64, 128, 256, 512, 1024, 2048]
    feat = []
    for i in range(7):
        cin, cout = feat_chans[i], feat_chans[i + 1]
        feat.append({
            "c1": conv3x3_layer(cin, cout),
            "c2": conv3x3_layer(cout, cout),
            "short": conv1x1_layer(cin, cout),
        })
    params["feature"] = feat

    params["fc"] = [linear_layer(2048 * 2, 2000),
                    linear_layer(2000, 2000),
                    linear_layer(2000, 1, bias=False)]
    return params


# ----------------------------------------------------------------------------
# Forward pass (mirrors Net.forward)
# ----------------------------------------------------------------------------
def mask_branch(params, x):  # x: (B2, H, W, 1) bf16
    acts = ["relu", "relu", "relu", "relu", "sigmoid"]
    h = x
    for layer, act in zip(params["mask"], acts):
        h = conv3x3_bn(h, layer, activation=act)
    return h


def residual_block(p, x):
    short = conv1x1_bn(x, p["short"], activation="none", keep_padded=True)
    left = conv3x3_bn(x, p["c1"], activation="relu")
    # second conv: BN + shortcut add + ReLU fused into the matmul epilogue
    return conv3x3_bn(left, p["c2"], activation="relu", residual=short)


def net_forward(params, x):
    """x: (batch, 2, H, W) float32 (NCHW image pairs, like the PyTorch module)."""
    batch, two, H, W = x.shape
    assert two == 2
    # Stack the two image streams along batch so every weight is read once.
    xs = jnp.transpose(x.reshape(batch * 2, 1, H, W),
                       (0, 2, 3, 1)).astype(jnp.bfloat16)      # (B2, H, W, 1)
    m = mask_branch(params, xs)
    h = xs * m                                                 # mask multiply
    for p in params["feature"]:
        h = residual_block(p, h)
        h = maxpool2x2(h)
    # PyTorch flattens NCHW; spatial is 1x1 after 7 pools so this matches exactly.
    f = jnp.transpose(h, (0, 3, 1, 2)).reshape(batch * 2, -1)  # (B2, 2048)
    r = f.reshape(batch, -1).astype(jnp.bfloat16)              # (batch, 4096) == cat
    n_fc = len(params["fc"])
    for i, lp in enumerate(params["fc"]):
        r = fused_matmul(r, lp["w"], lp["s"], lp["b"], activation="none",
                         out_dtype=jnp.float32 if i == n_fc - 1 else jnp.bfloat16)
    return r[:batch, :1]


if __name__ == "__main__":
    key = jax.random.PRNGKey(0)
    pkey, xkey = jax.random.split(key)
    params = init_params(pkey)
    # batch=2 pairs of 128x128 images: 128 is the smallest spatial size consistent
    # with the module (7 max-pools reach 1x1 so the flatten matches Linear(4096,.)).
    x = jax.random.normal(xkey, (2, 2, 128, 128), jnp.float32)
    out = net_forward(params, x)
    out = jax.block_until_ready(out)
    assert out.shape == (2, 1), out.shape
    print("KERNEL_OK")
</pallas_src>

<mosaic_0001>
module attributes {stable_mosaic.version = 11 : i64} {
  func.func @_mm_kernel(%arg0: i32, %arg1: i32, %arg2: i32, %arg3: memref<4096x128xbf16, #tpu.memory_space<vmem>>, %arg4: memref<128x128xbf16, #tpu.memory_space<vmem>>, %arg5: memref<1x128xf32, #tpu.memory_space<vmem>>, %arg6: memref<1x128xf32, #tpu.memory_space<vmem>>, %arg7: memref<4096x128xbf16, #tpu.memory_space<vmem>>, %arg8: memref<4096x128xf32, #tpu.memory_space<vmem>>) attributes {dimension_semantics = [#tpu.dimension_semantics<parallel>, #tpu.dimension_semantics<parallel>, #tpu.dimension_semantics<arbitrary>], iteration_bounds = array<i64: 16, 1, 1>, scalar_prefetch = 0 : i64, scratch_operands = 1 : i64, tpu.core_type = #tpu.core_type<tc>, window_params = [{transform_indices = @transform_0, window_bounds = array<i64: 4096, 128>}, {transform_indices = @transform_1, window_bounds = array<i64: 128, 128>}, {transform_indices = @transform_2, window_bounds = array<i64: 1, 128>}, {transform_indices = @transform_3, window_bounds = array<i64: 1, 128>}, {transform_indices = @transform_4, window_bounds = array<i64: 4096, 128>}]} {
    %c0_i32 = arith.constant 0 : i32
    %0 = arith.cmpi eq, %arg2, %c0_i32 : i32
    %1 = arith.extui %0 : i1 to i32
    %c0_i32_0 = arith.constant 0 : i32
    %2 = arith.cmpi ne, %1, %c0_i32_0 : i32
    scf.if %2 {
      %cst_10 = arith.constant 0.000000e+00 : f32
      %12 = vector.broadcast %cst_10 : f32 to vector<4096x128xf32>
      %c0_11 = arith.constant 0 : index
      %c0_12 = arith.constant 0 : index
      %13 = vector.load %arg8[%c0_11, %c0_12] : memref<4096x128xf32, #tpu.memory_space<vmem>>, vector<4096x128xf32>
      tpu.vector_store %arg8[%c0_11, %c0_12], %12 {strides = array<i32>} : memref<4096x128xf32, #tpu.memory_space<vmem>>, vector<4096x128xf32>,
    } else {
    }
    %c0 = arith.constant 0 : index
    %c0_1 = arith.constant 0 : index
    %3 = vector.load %arg8[%c0, %c0_1] : memref<4096x128xf32, #tpu.memory_space<vmem>>, vector<4096x128xf32>
    %c0_2 = arith.constant 0 : index
    %c0_3 = arith.constant 0 : index
    %4 = vector.load %arg3[%c0_2, %c0_3] : memref<4096x128xbf16, #tpu.memory_space<vmem>>, vector<4096x128xbf16>
    %c0_4 = arith.constant 0 : index
    %c0_5 = arith.constant 0 : index
    %5 = vector.load %arg4[%c0_4, %c0_5] : memref<128x128xbf16, #tpu.memory_space<vmem>>, vector<128x128xbf16>
    %cst = arith.constant dense<0.000000e+00> : vector<4096x128xf32>
    %6 = tpu.matmul %4, %5, %cst {dimension_numbers = #tpu.dot_dimension_numbers<[1], [0], [0], [1], [0, 0, 1, 1], [], []>} : vector<4096x128xbf16>, vector<128x128xbf16>, vector<4096x128xf32> -> vector<4096x128xf32>
    %7 = arith.addf %3, %6 : vector<4096x128xf32>
    %c0_6 = arith.constant 0 : index
    %c0_7 = arith.constant 0 : index
    %8 = vector.load %arg8[%c0_6, %c0_7] : memref<4096x128xf32, #tpu.memory_space<vmem>>, vector<4096x128xf32>
    tpu.vector_store %arg8[%c0_6, %c0_7], %7 {strides = array<i32>} : memref<4096x128xf32, #tpu.memory_space<vmem>>, vector<4096x128xf32>,
    %c0_i32_8 = arith.constant 0 : i32
    %9 = arith.cmpi eq, %arg2, %c0_i32_8 : i32
    %10 = arith.extui %9 : i1 to i32
    %c0_i32_9 = arith.constant 0 : i32
    %11 = arith.cmpi ne, %10, %c0_i32_9 : i32
    scf.if %11 {
      %c0_10 = arith.constant 0 : index
      %c0_11 = arith.constant 0 : index
      %12 = vector.load %arg8[%c0_10, %c0_11] : memref<4096x128xf32, #tpu.memory_space<vmem>>, vector<4096x128xf32>
      %c0_12 = arith.constant 0 : index
      %c0_13 = arith.constant 0 : index
      %13 = vector.load %arg5[%c0_12, %c0_13] : memref<1x128xf32, #tpu.memory_space<vmem>>, vector<1x128xf32>
      %14 = vector.broadcast %13 : vector<1x128xf32> to vector<4096x128xf32>
      %15 = arith.mulf %12, %14 : vector<4096x128xf32>
      %c0_14 = arith.constant 0 : index
      %c0_15 = arith.constant 0 : index
      %16 = vector.load %arg6[%c0_14, %c0_15] : memref<1x128xf32, #tpu.memory_space<vmem>>, vector<1x128xf32>
      %17 = vector.broadcast %16 : vector<1x128xf32> to vector<4096x128xf32>
      %18 = arith.addf %15, %17 : vector<4096x128xf32>
      %cst_16 = arith.constant 0.000000e+00 : f32
      %19 = vector.broadcast %cst_16 : f32 to vector<4096x128xf32>
      %20 = arith.maximumf %18, %19 : vector<4096x128xf32>
      %21 = arith.truncf %20 : vector<4096x128xf32> to vector<4096x128xbf16>
      %c0_17 = arith.constant 0 : index
      %c0_18 = arith.constant 0 : index
      %22 = vector.load %arg7[%c0_17, %c0_18] : memref<4096x128xbf16, #tpu.memory_space<vmem>>, vector<4096x128xbf16>
      tpu.vector_store %arg7[%c0_17, %c0_18], %21 {strides = array<i32>} : memref<4096x128xbf16, #tpu.memory_space<vmem>>, vector<4096x128xbf16>,
    } else {
    }
    return
  }
  func.func @transform_0(%arg0: i32, %arg1: i32, %arg2: i32) -> (i32, i32) {
    %c0_i32 = arith.constant 0 : i32
    return %arg0, %arg2 : i32, i32
  }
  func.func @transform_1(%arg0: i32, %arg1: i32, %arg2: i32) -> (i32, i32) {
    %c0_i32 = arith.constant 0 : i32
    return %arg2, %arg1 : i32, i32
  }
  func.func @transform_2(%arg0: i32, %arg1: i32, %arg2: i32) -> (i32, i32) {
    %c0_i32 = arith.constant 0 : i32
    %c0_i32_0 = arith.constant 0 : i32
    return %c0_i32, %arg1 : i32, i32
  }
  func.func @transform_3(%arg0: i32, %arg1: i32, %arg2: i32) -> (i32, i32) {
    %c0_i32 = arith.constant 0 : i32
    %c0_i32_0 = arith.constant 0 : i32
    return %c0_i32, %arg1 : i32, i32
  }
  func.func @transform_4(%arg0: i32, %arg1: i32, %arg2: i32) -> (i32, i32) {
    %c0_i32 = arith.constant 0 : i32
    return %arg0, %arg1 : i32, i32
  }
}

</mosaic_0001>

<bundles_post_ra>
// kernel: tpu_custom_call.1
= control target key start
LH: loop header
LB: loop body
LE: loop exit
PB: predicated region body
PF: predicated region fallthrough
CT: control target
= control target key end

     0   :  { %s13987_s0 = inlined_call_operand.hbm [shape: bf16[65536,128], index: 0, kind: input, shape index: {}]   ;;  %s13988_s1 = inlined_call_operand.hbm [shape: bf16[128,128], index: 1, kind: input, shape index: {}]   ;;  %s13989_s2 = inlined_call_operand.hbm [shape: f32[1,128], index: 2, kind: input, shape index: {}]   ;;  %s13990_s3 = inlined_call_operand.hbm [shape: f32[1,128], index: 3, kind: input, shape index: {}]   ;;  %s13991_s4 = inlined_call_operand.hbm [shape: bf16[65536,128], index: 4, kind: output, shape index: {}]  }
   0x1   :  { %13994 = sst [smem:[#allocation16_spill]] %s13988_s1 }
   0x2   :  { %13995 = sst [smem:[#allocation17_spill]] %s13989_s2 }
   0x3   :  { %9 = vsyncpa [#allocation4], 0 }
   0x4   :  { %11 = vsyncpa [#allocation4 + $0x1], 0 }
   0x5   :  { %12 = vsyncpa [#allocation7], 0 }
   0x6   :  { %13 = vsyncpa [#allocation10], 0 }
   0x7   :  { %14 = vsyncpa [#allocation5], 0 }
   0x8   :  { %16 = vsyncpa [#allocation5 + $0x1], 0  ;;  %s12245_s15 = smov 0   ;;  %s12247_s16 = smov 0  }
   0x9   :  { %s12249_s17 = smov 0   ;;  %s12251_s18 = smov 0  }
   0xa   :  { %s12253_s19 = smov 0   ;;  %s12255_s20 = smov 0  }
   0xb LB: > { %s8990_s21 = sadd.s32 4294967295, %s12211_s20   ;;  %s8991_s22 = sadd.s32 4294967294, %s12211_s20   ;;  %s12211_s20 = sphi %s12255_s20, %s22_s20   ;;  %s12207_s19 = sphi %s12253_s19, %s14012_s19   ;;  %s12203_s18 = sphi %s12251_s18, %s14011_s18   ;;  %s12199_s17 = sphi %s12249_s17, %s14010_s17   ;;  %s12195_s16 = sphi %s12247_s16, %s14009_s16   ;;  %s12191_s15 = sphi %s12245_s15, %s14008_s15  }
   0xc   : > { %p63_p0 = scmp.ne.s32.totalorder %s12195_s16, %s12191_s15  ;;  %p12279_p1 = scmp.eq.s32.totalorder %s8990_s21, 0 }
   0xd   : > { %p12283_p2 = scmp.eq.s32.totalorder %s8990_s21, 15  ;;  %p175_p3 = scmp.eq.s32.totalorder %s8991_s22, 15 }
   0xe   : > { %p12289_p4 = por %p12279_p1, %p63_p0  ;;  %p8992_p5 = scmp.ge.s32.totalorder %s12211_s20, 1 }
   0xf   : > { %p12294_p6 = por %p175_p3, %p63_p0  ;;  %p182_p7 = scmp.lt.s32.totalorder %s12211_s20, 17 }
  0x10   : > { %s14000_s1 = sld [smem:[#allocation16_spill]]  ;;  %s12213_s5 = smov [#allocation6]  }
  0x11   : > { %p12302_p8 = pnand %p8992_p5, %p182_p7  ;;  %s199_s6 = sshll.u32 %s12213_s5, 4  ;;  %s200_s6 = int_to_ptr.vmem [resolvable:$true] %s199_s6 }
  0x12   : > { %s14003_s2 = sld [smem:[#allocation17_spill]]  ;;  %s13992_s11 = smov 64  }
  0x13   : > { %p11908_p9 = pneg %p12302_p8  ;;  %s13993_s12 = smov 4  }
  0x14   : > { %s12216_s13 = smov [#allocation8]   ;;  %s226_s27 = sshll.u32 %s13990_s3, 4  ;;  %s227_s27 = int_to_ptr.hbm [resolvable:$true] %s226_s27 }
  0x15   : > { %p12310_p10 = pnand %p11908_p9, %p12279_p1  ;;  %s215_s14 = sshll.u32 %s12216_s13, 4  ;;  %s216_s14 = int_to_ptr.vmem [resolvable:$true] %s215_s14 }
  0x16   : > { %s197_s29 = sshll.u32 %s14000_s1, 4  ;;  %s12217_s28 = smov [#allocation9]   ;;  %s198_s29 = int_to_ptr.hbm [resolvable:$true] %s197_s29 }
  0x17   : > { %11911 = dma.hbm_to_vmem [thread:$0]  (!%p12310_p10), %s198_s29, 1024, %s200_s6, [#allocation7], %s13992_s11, %s13992_s11, %s13993_s12  }
  0x18   : > { %s213_s10 = sshll.u32 %s14003_s2, 4  ;;  %s228_s5 = sshll.u32 %s12217_s28, 4  ;;  %s214_s10 = int_to_ptr.hbm [resolvable:$true] %s213_s10  ;;  %s229_s5 = int_to_ptr.vmem [resolvable:$true] %s228_s5 }
  0x19   : > { %11914 = dma.hbm_to_vmem [thread:$0]  (!%p12310_p10), %s214_s10, 16, %s216_s14, [#allocation7]  }
  0x1a   : > { %11917 = dma.hbm_to_vmem [thread:$0]  (!%p12310_p10), %s227_s27, 16, %s229_s5, [#allocation10]  }
  0x1b   : > { %s41_s29 = sadd.s32 1, %s12207_s19  ;;  %s50_s6 = sadd.s32 1, %s12199_s17 }
  0x1c   : > { %p43_p11 = scmp.ge.s32.totalorder %s41_s29, 16  ;;  %p57_p12 = scmp.ne.s32.totalorder %s12199_s17, %s12195_s16 }
  0x1d   : > { %p58_p13 = scmp.eq.s32.totalorder %s12211_s20, 0  ;;  %p11929_p5 = scmp.lt.s32.totalorder %s12211_s20, 16 }
  0x1e   : > { %s14014_s29 = smov (%p43_p11, %s41_s29), 0  ;;  %p12342_p3 = por %p12283_p2, %p57_p12 }
  0x1f   : > { %p12336_p0 = por %p58_p13, %p57_p12  ;;  %s45_s7 = ssub.s32 %s12207_s19, %s14014_s29 }
  0x20   : > { %p48_p7 = scmp.eq.s32.totalorder %s45_s7, 0  ;;  %s239_s10 = sand.u32 1, %s12199_s17  }
  0x21   : > { %s8997_s13 = sshll.u32 %s239_s10, 11  ;;  %s10067_s21 = sshll.u32 %s12207_s19, 11 }
  0x22   : > { %s12351_s14 = scalar_select %p48_p7, %s12199_s17, %s50_s6  }
  0x23   : > { %s249_s28 = scalar_lea.hbm %s13987_s0, %s10067_s21  ;;  %s243_s5 = scalar_lea.vmem [#allocation3], %s8997_s13 }
  0x24   : > { %s252_s11 = sshll.u32 %s243_s5, 4  ;;  %s250_s24 = sshll.u32 %s249_s28, 4  ;;  %s253_s11 = int_to_ptr.vmem [resolvable:$true] %s252_s11  ;;  %s251_s24 = int_to_ptr.hbm [resolvable:$true] %s250_s24 }
  0x25   : > { %p11919_p2 = pnand %p11929_p5, %p12336_p0  ;;  %s240_s12 = scalar_lea.sflag [#allocation4], %s239_s10 }
  0x26   : > { %s14006_s1 = smov 4   ;;  %s14007_s2 = smov 64  }
  0x27   : > { %11921 = dma.hbm_to_vmem [thread:$0]  (!%p11919_p2), %s251_s24, 32768, %s253_s11, %s240_s12, %s14007_s2, %s14007_s2, %s14006_s1  }
  0x28   : > { %264 = sbr.rel (%p12302_p8) target bundleno = 1244 (0x4dc), region = 36  ;;  %s12365_s6 = sand.u32 (!%p12302_p8), 1, %s12195_s16  }
  0x29   : > { %s9001_s7 = sshll.u32 (!%p12302_p8), %s12365_s6, 11  ;;  %s267_s13 = scalar_lea.sflag (!%p12302_p8), [#allocation4], %s12365_s6 }
  0x2a   : > { %s12371_s8 = scalar_lea.vmem (!%p12302_p8), [#allocation3], %s9001_s7 }
  0x2d   : > { %12174 = dma.done.wait (%p12289_p4), %s267_s13, 32768  }
  0x2e   : > { %12176 = vsyncadd (%p12289_p4), %s267_s13, 4294934528 }
  0x2f   : > { %12178 = dma.done.wait (%p12279_p1), [#allocation7], 1040  }
  0x30   : > { %12180 = vsyncadd (%p12279_p1), [#allocation7], 4294966256 }
  0x31   : > { %12182 = dma.done.wait (%p12279_p1), [#allocation10], 16  }
  0x32   : > { %12184 = vsyncadd (%p12279_p1), [#allocation10], 4294967280  ;;  %v10331_v0 = vld [vmem:[#allocation6 + $0x38] sm:$0xff]  ;;  %v10330_v1 = vld [vmem:[#allocation6 + $0x30] sm:$0xff]  ;;  %s12445_s1 = scalar_lea.vmem [#allocation11], %s9001_s7  ;;  %s10332_s2 = sshll.u32 %s12203_s18, 11 }
  0x33   : > { %3454 = vmatpush.bf16.msra.mxu0 %v10331_v0  ;;  %11868 = vmatpush.bf16.msra.mxu1 %v10331_v0  ;;  %v10329_v2 = vld [vmem:[#allocation6 + $0x28] sm:$0xff]  ;;  %v10328_v3 = vld [vmem:[#allocation6 + $0x20] sm:$0xff]  ;;  %v10327_v4 = vld [vmem:[#allocation6 + $0x18] sm:$0xff]  ;;  %s8863_s30 = scalar_lea.hbm %s13991_s4, %s10332_s2  ;;  %s8864_s18 = sshll.u32 %s12445_s1, 4  ;;  %s8865_s18 = int_to_ptr.vmem [resolvable:$true] %s8864_s18 }
  0x34   : > { %11869 = vmatpush.bf16.msra.mxu2 %v10331_v0  ;;  %11870 = vmatpush.bf16.msra.mxu3 %v10331_v0  ;;  %v10326_v5 = vld [vmem:[#allocation6 + $0x10] sm:$0xff]  ;;  %v10325_v6 = vld [vmem:[#allocation6 + $0x8] sm:$0xff]  ;;  %v10324_v7 = vld [vmem:[#allocation6] sm:$0xff]  ;;  %s8866_s11 = sshll.u32 %s8863_s30, 4  ;;  %s8851_s12 = scalar_lea.sflag [#allocation5], %s12365_s6  ;;  %s8867_s11 = int_to_ptr.hbm [resolvable:$true] %s8866_s11 }
  0x35   : > { %v10068_v8 = vld [vmem:[%s12371_s8] sm:$0xff]  ;;  %v10069_v12 = vld [vmem:[%s12371_s8 + $0x8] sm:$0xff]  ;;  %v10070_v16 = vld [vmem:[%s12371_s8 + $0x10] sm:$0xff]  ;;  %s12135_s10 = sshra.s32 %s8867_s11, 4  ;;  %s12141_s28 = scalar_lea.hbm %s13991_s4, 32768  ;;  %s12136_s10 = int_to_ptr.hbm [resolvable:$true] %s12135_s10 }
  0x36   : > { %v10132_v9 = vld [vmem:[%s12371_s8 + $0x200] sm:$0xff]  ;;  %v10133_v13 = vld [vmem:[%s12371_s8 + $0x208] sm:$0xff]  ;;  %v10134_v17 = vld [vmem:[%s12371_s8 + $0x210] sm:$0xff]  ;;  %s12137_s21 = scalar_lea.hbm %s12136_s10, 2048  ;;  %p12142_p9 = scmp.lt.s32.totalorder %s12136_s10, %s13991_s4 }
  0x37   : > { %3455 = vmatpush.bf16.msra.mxu0 %v10330_v1  ;;  %11871 = vmatpush.bf16.msra.mxu1 %v10330_v1  ;;  %v10196_v10 = vld [vmem:[%s12371_s8 + $0x400] sm:$0xff]  ;;  %v10197_v14 = vld [vmem:[%s12371_s8 + $0x408] sm:$0xff]  ;;  %v10198_v18 = vld [vmem:[%s12371_s8 + $0x410] sm:$0xff]  ;;  %p12138_p1 = scmp.ne.s32.totalorder %s12136_s10, %s12137_s21  ;;  %p12143_p10 = scmp.lt.s32.totalorder %s12141_s28, %s12137_s21 }
  0x38   : > { %11872 = vmatpush.bf16.msra.mxu2 %v10330_v1  ;;  %11873 = vmatpush.bf16.msra.mxu3 %v10330_v1  ;;  %v10260_v11 = vld [vmem:[%s12371_s8 + $0x600] sm:$0xff]  ;;  %v10261_v15 = vld [vmem:[%s12371_s8 + $0x608] sm:$0xff]  ;;  %v10262_v19 = vld [vmem:[%s12371_s8 + $0x610] sm:$0xff] }
  0x39   : > { %v10071_v20 = vld [vmem:[%s12371_s8 + $0x18] sm:$0xff]  ;;  %v10072_v24 = vld [vmem:[%s12371_s8 + $0x20] sm:$0xff]  ;;  %v10073_v28 = vld [vmem:[%s12371_s8 + $0x28] sm:$0xff]  ;;  %p12139_p4 = pnand %p12138_p1, %p12342_p3  ;;  %p12144_p11 = por %p12143_p10, %p12142_p9 }
  0x3a   : > { %v10135_v21 = vld [vmem:[%s12371_s8 + $0x218] sm:$0xff]  ;;  %v10136_v25 = vld [vmem:[%s12371_s8 + $0x220] sm:$0xff]  ;;  %v10137_v29 = vld [vmem:[%s12371_s8 + $0x228] sm:$0xff] }
  0x3b   : > { %3456 = vmatpush.bf16.msra.mxu0 %v10329_v2  ;;  %11874 = vmatpush.bf16.msra.mxu1 %v10329_v2  ;;  %v10199_v22 = vld [vmem:[%s12371_s8 + $0x418] sm:$0xff]  ;;  %v10200_v26 = vld [vmem:[%s12371_s8 + $0x420] sm:$0xff]  ;;  %v10201_v30 = vld [vmem:[%s12371_s8 + $0x428] sm:$0xff]  ;;  %p12140_p8 = pneg %p12139_p4 }
  0x3c   : > { %11875 = vmatpush.bf16.msra.mxu2 %v10329_v2  ;;  %11876 = vmatpush.bf16.msra.mxu3 %v10329_v2  ;;  %v10263_v23 = vld [vmem:[%s12371_s8 + $0x618] sm:$0xff]  ;;  %v10264_v27 = vld [vmem:[%s12371_s8 + $0x620] sm:$0xff]  ;;  %v10265_v31 = vld [vmem:[%s12371_s8 + $0x628] sm:$0xff] }
  0x3d   : > { %v10074_v32 = vld [vmem:[%s12371_s8 + $0x30] sm:$0xff]  ;;  %v10075_v36 = vld [vmem:[%s12371_s8 + $0x38] sm:$0xff]  ;;  %v10076_v40 = vld [vmem:[%s12371_s8 + $0x40] sm:$0xff]  ;;  %p12145_p12 = pnand %p12144_p11, %p12140_p8 }
  0x3e   : > { %v10138_v33 = vld [vmem:[%s12371_s8 + $0x230] sm:$0xff]  ;;  %v10139_v37 = vld [vmem:[%s12371_s8 + $0x238] sm:$0xff]  ;;  %v10140_v41 = vld [vmem:[%s12371_s8 + $0x240] sm:$0xff] }
  0x3f   : > { %3457 = vmatpush.bf16.msra.mxu0 %v10328_v3  ;;  %11877 = vmatpush.bf16.msra.mxu1 %v10328_v3  ;;  %v10202_v34 = vld [vmem:[%s12371_s8 + $0x430] sm:$0xff]  ;;  %v10203_v38 = vld [vmem:[%s12371_s8 + $0x438] sm:$0xff]  ;;  %v10204_v44 = vld [vmem:[%s12371_s8 + $0x440] sm:$0xff] }
  0x40   : > { %11878 = vmatpush.bf16.msra.mxu2 %v10328_v3  ;;  %11879 = vmatpush.bf16.msra.mxu3 %v10328_v3  ;;  %v10266_v35 = vld [vmem:[%s12371_s8 + $0x630] sm:$0xff]  ;;  %v10267_v39 = vld [vmem:[%s12371_s8 + $0x638] sm:$0xff]  ;;  %v10268_v45 = vld [vmem:[%s12371_s8 + $0x640] sm:$0xff] }
  0x41   : > { %v12421_v46 = vld [vmem:[#allocation8] ss:$0 sm:$0xff]  ;;  %v12424_v48 = vld [vmem:[#allocation9] ss:$0 sm:$0xff] }
  0x43   : > { %3458 = vmatpush.bf16.msra.mxu0 %v10327_v4  ;;  %11880 = vmatpush.bf16.msra.mxu1 %v10327_v4 }
  0x44   : > { %11881 = vmatpush.bf16.msra.mxu2 %v10327_v4  ;;  %11882 = vmatpush.bf16.msra.mxu3 %v10327_v4 }
  0x47   : > { %3459 = vmatpush.bf16.msra.mxu0 %v10326_v5  ;;  %11883 = vmatpush.bf16.msra.mxu1 %v10326_v5 }
  0x48   : > { %11884 = vmatpush.bf16.msra.mxu2 %v10326_v5  ;;  %11885 = vmatpush.bf16.msra.mxu3 %v10326_v5 }
  0x4b   : > { %3460 = vmatpush.bf16.msra.mxu0 %v10325_v6  ;;  %11886 = vmatpush.bf16.msra.mxu1 %v10325_v6 }
  0x4c   : > { %11887 = vmatpush.bf16.msra.mxu2 %v10325_v6  ;;  %11888 = vmatpush.bf16.msra.mxu3 %v10325_v6  ;;  %v10077_v6 = vld [vmem:[%s12371_s8 + $0x48] sm:$0xff] }
  0x4f   : > { %3461 = vmatpush.bf16.msra.mxu0 %v10324_v7  ;;  %11889 = vmatpush.bf16.msra.mxu1 %v10324_v7 }
  0x50   : > { %11890 = vmatpush.bf16.msra.mxu2 %v10324_v7  ;;  %11891 = vmatpush.bf16.msra.mxu3 %v10324_v7  ;;  %v10141_v7 = vld [vmem:[%s12371_s8 + $0x248] sm:$0xff] }
  0x52   : > { %3462 = vmatmul.bf16.vlgmr.msra.gmra.mxu0 %v10068_v8  ;;  %3782 = vmatmul.bf16.vlgmr.msra.gmra.mxu1 %v10132_v9 }
  0x53   : > { %4102 = vmatmul.bf16.vlgmr.msra.gmra.mxu2 %v10196_v10  ;;  %4422 = vmatmul.bf16.vlgmr.msra.gmra.mxu3 %v10260_v11 }
  0x62   : > { %3467 = vmatmul.bf16.gmra.mxu0 %v10069_v12  ;;  %3787 = vmatmul.bf16.gmra.mxu1 %v10133_v13 }
  0x63   : > { %4107 = vmatmul.bf16.gmra.mxu2 %v10197_v14  ;;  %4427 = vmatmul.bf16.gmra.mxu3 %v10261_v15  ;;  %v10205_v14 = vld [vmem:[%s12371_s8 + $0x448] sm:$0xff] }
  0x64   : > { %v10269_v15 = vld [vmem:[%s12371_s8 + $0x648] sm:$0xff] }
  0x72   : > { %3472 = vmatmul.bf16.gmra.mxu0 %v10070_v16  ;;  %3792 = vmatmul.bf16.gmra.mxu1 %v10134_v17 }
  0x73   : > { %4112 = vmatmul.bf16.gmra.mxu2 %v10198_v18  ;;  %4432 = vmatmul.bf16.gmra.mxu3 %v10262_v19 }
  0x82   : > { %3477 = vmatmul.bf16.gmra.mxu0 %v10071_v20  ;;  %3797 = vmatmul.bf16.gmra.mxu1 %v10135_v21 }
  0x83   : > { %4117 = vmatmul.bf16.gmra.mxu2 %v10199_v22  ;;  %4437 = vmatmul.bf16.gmra.mxu3 %v10263_v23 }
  0x92   : > { %3482 = vmatmul.bf16.gmra.mxu0 %v10072_v24  ;;  %3802 = vmatmul.bf16.gmra.mxu1 %v10136_v25 }
  0x93   : > { %4122 = vmatmul.bf16.gmra.mxu2 %v10200_v26  ;;  %4442 = vmatmul.bf16.gmra.mxu3 %v10264_v27 }
  0xa2   : > { %3487 = vmatmul.bf16.gmra.mxu0 %v10073_v28  ;;  %3807 = vmatmul.bf16.gmra.mxu1 %v10137_v29 }
  0xa3   : > { %4127 = vmatmul.bf16.gmra.mxu2 %v10201_v30  ;;  %4447 = vmatmul.bf16.gmra.mxu3 %v10265_v31 }
  0xb2   : > { %3492 = vmatmul.bf16.gmra.mxu0 %v10074_v32  ;;  %3812 = vmatmul.bf16.gmra.mxu1 %v10138_v33 }
  0xb3   : > { %4132 = vmatmul.bf16.gmra.mxu2 %v10202_v34  ;;  %4452 = vmatmul.bf16.gmra.mxu3 %v10266_v35 }
  0xc2   : > { %3497 = vmatmul.bf16.gmra.mxu0 %v10075_v36  ;;  %3817 = vmatmul.bf16.gmra.mxu1 %v10139_v37 }
  0xc3   : > { %4137 = vmatmul.bf16.gmra.mxu2 %v10203_v38  ;;  %4457 = vmatmul.bf16.gmra.mxu3 %v10267_v39 }
  0xcf   : > { %v3463_v42 = vpop.f32.mrf.mxu0  ;;  %v3783_v43 = vpop.f32.mrf.mxu1 }
  0xd0   : > { %v6286_v47 = vmul.f32 %v12421_v46, %v3463_v42  ;;  %v6414_v49 = vmul.f32 %v12421_v46, %v3783_v43 }
  0xd2   : > { %3502 = vmatmul.bf16.gmra.mxu0 %v10076_v40  ;;  %3822 = vmatmul.bf16.gmra.mxu1 %v10140_v41  ;;  %v6802_v54 = vadd.f32 %v12424_v48, %v6286_v47  ;;  %v6930_v55 = vadd.f32 %v12424_v48, %v6414_v49  ;;  %v10078_v47 = vld [vmem:[%s12371_s8 + $0x50] sm:$0xff] }
  0xd3   : > { %4142 = vmatmul.bf16.gmra.mxu2 %v10204_v44  ;;  %4462 = vmatmul.bf16.gmra.mxu3 %v10268_v45  ;;  %v10142_v49 = vld [vmem:[%s12371_s8 + $0x250] sm:$0xff] }
  0xd4   : > { %v7314_v62 = vmax.f32 %v6802_v54, 0.0  ;;  %v7442_v63 = vmax.f32 %v6930_v55, 0.0 }
  0xd6   : > { %v4103_v50 = vpop.f32.mrf.mxu2  ;;  %v4423_v51 = vpop.f32.mrf.mxu3 }
  0xd7   : > { %v3465_v52 = vpop.f32.mrf.mxu0  ;;  %v3785_v53 = vpop.f32.mrf.mxu1  ;;  %v6542_v60 = vmul.f32 %v12421_v46, %v4103_v50  ;;  %v6670_v61 = vmul.f32 %v12421_v46, %v4423_v51 }
  0xd8   : > { %v6287_v56 = vmul.f32 %v12421_v46, %v3465_v52  ;;  %v6415_v57 = vmul.f32 %v12421_v46, %v3785_v53 }
  0xd9   : > { %v7058_v8 = vadd.f32 %v12424_v48, %v6542_v60  ;;  %v7186_v9 = vadd.f32 %v12424_v48, %v6670_v61 }
  0xda   : > { %v6803_v58 = vadd.f32 %v12424_v48, %v6287_v56  ;;  %v6931_v59 = vadd.f32 %v12424_v48, %v6415_v57  ;;  %v10206_v56 = vld [vmem:[%s12371_s8 + $0x450] sm:$0xff] }
  0xdb   : > { %v7570_v18 = vmax.f32 %v7058_v8, 0.0  ;;  %v7698_v19 = vmax.f32 %v7186_v9, 0.0  ;;  %v10270_v57 = vld [vmem:[%s12371_s8 + $0x650] sm:$0xff] }
  0xdc   : > { %v7315_v0 = vmax.f32 %v6803_v58, 0.0  ;;  %v7443_v1 = vmax.f32 %v6931_v59, 0.0 }
  0xde   : > { %v10336_v2 = vpack.c.bf16 %v7315_v0, %v7314_v62  ;;  %v10656_v3 = vpack.c.bf16 %v7443_v1, %v7442_v63  ;;  %v4105_v4 = vpop.f32.mrf.mxu2  ;;  %v4425_v5 = vpop.f32.mrf.mxu3 }
  0xdf   : > { %v6543_v10 = vmul.f32 %v12421_v46, %v4105_v4  ;;  %v6671_v11 = vmul.f32 %v12421_v46, %v4425_v5  ;;  %v3468_v12 = vpop.f32.mrf.mxu0  ;;  %v3788_v13 = vpop.f32.mrf.mxu1 }
  0xe0   : > { %10337 = vst [vmem:[%s12445_s1] sm:$0xff] %v10336_v2   ;;  %v6288_v22 = vmul.f32 %v12421_v46, %v3468_v12  ;;  %v6416_v23 = vmul.f32 %v12421_v46, %v3788_v13 }
  0xe1   : > { %11676 = vst [vmem:[%s12445_s1 + $0x200] sm:$0xff] %v10656_v3   ;;  %v7059_v16 = vadd.f32 %v12424_v48, %v6543_v10  ;;  %v7187_v17 = vadd.f32 %v12424_v48, %v6671_v11 }
  0xe2   : > { %3507 = vmatmul.bf16.gmra.mxu0 %v10077_v6  ;;  %3827 = vmatmul.bf16.gmra.mxu1 %v10141_v7  ;;  %v6804_v30 = vadd.f32 %v12424_v48, %v6288_v22  ;;  %v6932_v31 = vadd.f32 %v12424_v48, %v6416_v23 }
  0xe3   : > { %v7571_v20 = vmax.f32 %v7059_v16, 0.0  ;;  %v7699_v21 = vmax.f32 %v7187_v17, 0.0  ;;  %4147 = vmatmul.bf16.gmra.mxu2 %v10205_v14  ;;  %4467 = vmatmul.bf16.gmra.mxu3 %v10269_v15 }
  0xe4   : > { %v7316_v38 = vmax.f32 %v6804_v30, 0.0  ;;  %v7444_v39 = vmax.f32 %v6932_v31, 0.0 }
  0xe5   : > { %v10976_v24 = vpack.c.bf16 %v7571_v20, %v7570_v18  ;;  %v11296_v25 = vpack.c.bf16 %v7699_v21, %v7698_v19 }
  0xe6   : > { %v4108_v26 = vpop.f32.mrf.mxu2  ;;  %v4428_v27 = vpop.f32.mrf.mxu3 }
  0xe7   : > { %11740 = vst [vmem:[%s12445_s1 + $0x400] sm:$0xff] %v10976_v24   ;;  %v3470_v28 = vpop.f32.mrf.mxu0  ;;  %v3790_v29 = vpop.f32.mrf.mxu1  ;;  %v6544_v36 = vmul.f32 %v12421_v46, %v4108_v26  ;;  %v6672_v37 = vmul.f32 %v12421_v46, %v4428_v27  ;;  %v10079_v24 = vld [vmem:[%s12371_s8 + $0x58] sm:$0xff] }
  0xe8   : > { %11804 = vst [vmem:[%s12445_s1 + $0x600] sm:$0xff] %v11296_v25   ;;  %v6289_v32 = vmul.f32 %v12421_v46, %v3470_v28  ;;  %v6417_v33 = vmul.f32 %v12421_v46, %v3790_v29  ;;  %v10143_v25 = vld [vmem:[%s12371_s8 + $0x258] sm:$0xff] }
  0xe9   : > { %v7060_v50 = vadd.f32 %v12424_v48, %v6544_v36  ;;  %v7188_v51 = vadd.f32 %v12424_v48, %v6672_v37 }
  0xea   : > { %v6805_v34 = vadd.f32 %v12424_v48, %v6289_v32  ;;  %v6933_v35 = vadd.f32 %v12424_v48, %v6417_v33  ;;  %v10207_v32 = vld [vmem:[%s12371_s8 + $0x458] sm:$0xff] }
  0xeb   : > { %v7572_v60 = vmax.f32 %v7060_v50, 0.0  ;;  %v7700_v61 = vmax.f32 %v7188_v51, 0.0  ;;  %v10271_v33 = vld [vmem:[%s12371_s8 + $0x658] sm:$0xff] }
  0xec   : > { %v7317_v40 = vmax.f32 %v6805_v34, 0.0  ;;  %v7445_v41 = vmax.f32 %v6933_v35, 0.0 }
  0xee   : > { %v10341_v42 = vpack.c.bf16 %v7317_v40, %v7316_v38  ;;  %v10661_v43 = vpack.c.bf16 %v7445_v41, %v7444_v39  ;;  %v4110_v44 = vpop.f32.mrf.mxu2  ;;  %v4430_v45 = vpop.f32.mrf.mxu3 }
  0xef   : > { %v6545_v52 = vmul.f32 %v12421_v46, %v4110_v44  ;;  %v6673_v53 = vmul.f32 %v12421_v46, %v4430_v45  ;;  %v3473_v54 = vpop.f32.mrf.mxu0  ;;  %v3793_v55 = vpop.f32.mrf.mxu1 }
  0xf0   : > { %11613 = vst [vmem:[%s12445_s1 + $0x8] sm:$0xff] %v10341_v42   ;;  %v6290_v0 = vmul.f32 %v12421_v46, %v3473_v54  ;;  %v6418_v1 = vmul.f32 %v12421_v46, %v3793_v55 }
  0xf1   : > { %11677 = vst [vmem:[%s12445_s1 + $0x208] sm:$0xff] %v10661_v43   ;;  %v7061_v58 = vadd.f32 %v12424_v48, %v6545_v52  ;;  %v7189_v59 = vadd.f32 %v12424_v48, %v6673_v53 }
  0xf2   : > { %3512 = vmatmul.bf16.gmra.mxu0 %v10078_v47  ;;  %3832 = vmatmul.bf16.gmra.mxu1 %v10142_v49  ;;  %v6806_v8 = vadd.f32 %v12424_v48, %v6290_v0  ;;  %v6934_v9 = vadd.f32 %v12424_v48, %v6418_v1 }
  0xf3   : > { %v7573_v62 = vmax.f32 %v7061_v58, 0.0  ;;  %v7701_v63 = vmax.f32 %v7189_v59, 0.0  ;;  %4152 = vmatmul.bf16.gmra.mxu2 %v10206_v56  ;;  %4472 = vmatmul.bf16.gmra.mxu3 %v10270_v57 }
  0xf4   : > { %v7318_v16 = vmax.f32 %v6806_v8, 0.0  ;;  %v7446_v17 = vmax.f32 %v6934_v9, 0.0 }
  0xf5   : > { %v10981_v2 = vpack.c.bf16 %v7573_v62, %v7572_v60  ;;  %v11301_v3 = vpack.c.bf16 %v7701_v63, %v7700_v61 }
  0xf6   : > { %v4113_v4 = vpop.f32.mrf.mxu2  ;;  %v4433_v5 = vpop.f32.mrf.mxu3 }
  0xf7   : > { %11741 = vst [vmem:[%s12445_s1 + $0x408] sm:$0xff] %v10981_v2   ;;  %v3475_v6 = vpop.f32.mrf.mxu0  ;;  %v3795_v7 = vpop.f32.mrf.mxu1  ;;  %v6546_v14 = vmul.f32 %v12421_v46, %v4113_v4  ;;  %v6674_v15 = vmul.f32 %v12421_v46, %v4433_v5  ;;  %v10080_v2 = vld [vmem:[%s12371_s8 + $0x60] sm:$0xff] }
  0xf8   : > { %11805 = vst [vmem:[%s12445_s1 + $0x608] sm:$0xff] %v11301_v3   ;;  %v6291_v10 = vmul.f32 %v12421_v46, %v3475_v6  ;;  %v6419_v11 = vmul.f32 %v12421_v46, %v3795_v7  ;;  %v10144_v3 = vld [vmem:[%s12371_s8 + $0x260] sm:$0xff] }
  0xf9   : > { %v7062_v26 = vadd.f32 %v12424_v48, %v6546_v14  ;;  %v7190_v27 = vadd.f32 %v12424_v48, %v6674_v15 }
  0xfa   : > { %v6807_v12 = vadd.f32 %v12424_v48, %v6291_v10  ;;  %v6935_v13 = vadd.f32 %v12424_v48, %v6419_v11  ;;  %v10208_v10 = vld [vmem:[%s12371_s8 + $0x460] sm:$0xff] }
  0xfb   : > { %v7574_v36 = vmax.f32 %v7062_v26, 0.0  ;;  %v7702_v37 = vmax.f32 %v7190_v27, 0.0  ;;  %v10272_v11 = vld [vmem:[%s12371_s8 + $0x660] sm:$0xff] }
  0xfc   : > { %v7319_v18 = vmax.f32 %v6807_v12, 0.0  ;;  %v7447_v19 = vmax.f32 %v6935_v13, 0.0 }
  0xfe   : > { %v10346_v20 = vpack.c.bf16 %v7319_v18, %v7318_v16  ;;  %v10666_v21 = vpack.c.bf16 %v7447_v19, %v7446_v17  ;;  %v4115_v22 = vpop.f32.mrf.mxu2  ;;  %v4435_v23 = vpop.f32.mrf.mxu3 }
  0xff   : > { %v6547_v28 = vmul.f32 %v12421_v46, %v4115_v22  ;;  %v6675_v29 = vmul.f32 %v12421_v46, %v4435_v23  ;;  %v3478_v30 = vpop.f32.mrf.mxu0  ;;  %v3798_v31 = vpop.f32.mrf.mxu1 }
 0x100   : > { %11614 = vst [vmem:[%s12445_s1 + $0x10] sm:$0xff] %v10346_v20   ;;  %v6292_v40 = vmul.f32 %v12421_v46, %v3478_v30  ;;  %v6420_v41 = vmul.f32 %v12421_v46, %v3798_v31 }
 0x101   : > { %11678 = vst [vmem:[%s12445_s1 + $0x210] sm:$0xff] %v10666_v21   ;;  %v7063_v34 = vadd.f32 %v12424_v48, %v6547_v28  ;;  %v7191_v35 = vadd.f32 %v12424_v48, %v6675_v29 }
 0x102   : > { %3517 = vmatmul.bf16.gmra.mxu0 %v10079_v24  ;;  %3837 = vmatmul.bf16.gmra.mxu1 %v10143_v25  ;;  %v6808_v50 = vadd.f32 %v12424_v48, %v6292_v40  ;;  %v6936_v51 = vadd.f32 %v12424_v48, %v6420_v41 }
 0x103   : > { %v7575_v38 = vmax.f32 %v7063_v34, 0.0  ;;  %v7703_v39 = vmax.f32 %v7191_v35, 0.0  ;;  %4157 = vmatmul.bf16.gmra.mxu2 %v10207_v32  ;;  %4477 = vmatmul.bf16.gmra.mxu3 %v10271_v33 }
 0x104   : > { %v7320_v58 = vmax.f32 %v6808_v50, 0.0  ;;  %v7448_v59 = vmax.f32 %v6936_v51, 0.0 }
 0x105   : > { %v10986_v42 = vpack.c.bf16 %v7575_v38, %v7574_v36  ;;  %v11306_v43 = vpack.c.bf16 %v7703_v39, %v7702_v37 }
 0x106   : > { %v4118_v44 = vpop.f32.mrf.mxu2  ;;  %v4438_v45 = vpop.f32.mrf.mxu3 }
 0x107   : > { %11742 = vst [vmem:[%s12445_s1 + $0x410] sm:$0xff] %v10986_v42   ;;  %v3480_v47 = vpop.f32.mrf.mxu0  ;;  %v3800_v49 = vpop.f32.mrf.mxu1  ;;  %v6548_v56 = vmul.f32 %v12421_v46, %v4118_v44  ;;  %v6676_v57 = vmul.f32 %v12421_v46, %v4438_v45  ;;  %v10081_v42 = vld [vmem:[%s12371_s8 + $0x68] sm:$0xff] }
 0x108   : > { %11806 = vst [vmem:[%s12445_s1 + $0x610] sm:$0xff] %v11306_v43   ;;  %v6293_v52 = vmul.f32 %v12421_v46, %v3480_v47  ;;  %v6421_v53 = vmul.f32 %v12421_v46, %v3800_v49  ;;  %v10145_v43 = vld [vmem:[%s12371_s8 + $0x268] sm:$0xff] }
 0x109   : > { %v7064_v4 = vadd.f32 %v12424_v48, %v6548_v56  ;;  %v7192_v5 = vadd.f32 %v12424_v48, %v6676_v57 }
 0x10a   : > { %v6809_v54 = vadd.f32 %v12424_v48, %v6293_v52  ;;  %v6937_v55 = vadd.f32 %v12424_v48, %v6421_v53  ;;  %v10209_v52 = vld [vmem:[%s12371_s8 + $0x468] sm:$0xff] }
 0x10b   : > { %v7576_v14 = vmax.f32 %v7064_v4, 0.0  ;;  %v7704_v15 = vmax.f32 %v7192_v5, 0.0  ;;  %v10273_v53 = vld [vmem:[%s12371_s8 + $0x668] sm:$0xff] }
 0x10c   : > { %v7321_v60 = vmax.f32 %v6809_v54, 0.0  ;;  %v7449_v61 = vmax.f32 %v6937_v55, 0.0 }
 0x10e   : > { %v10351_v62 = vpack.c.bf16 %v7321_v60, %v7320_v58  ;;  %v10671_v63 = vpack.c.bf16 %v7449_v61, %v7448_v59  ;;  %v4120_v0 = vpop.f32.mrf.mxu2  ;;  %v4440_v1 = vpop.f32.mrf.mxu3 }
 0x10f   : > { %v6549_v6 = vmul.f32 %v12421_v46, %v4120_v0  ;;  %v6677_v7 = vmul.f32 %v12421_v46, %v4440_v1  ;;  %v3483_v8 = vpop.f32.mrf.mxu0  ;;  %v3803_v9 = vpop.f32.mrf.mxu1 }
 0x110   : > { %11615 = vst [vmem:[%s12445_s1 + $0x18] sm:$0xff] %v10351_v62   ;;  %v6294_v18 = vmul.f32 %v12421_v46, %v3483_v8  ;;  %v6422_v19 = vmul.f32 %v12421_v46, %v3803_v9 }
 0x111   : > { %11679 = vst [vmem:[%s12445_s1 + $0x218] sm:$0xff] %v10671_v63   ;;  %v7065_v12 = vadd.f32 %v12424_v48, %v6549_v6  ;;  %v7193_v13 = vadd.f32 %v12424_v48, %v6677_v7 }
 0x112   : > { %3522 = vmatmul.bf16.gmra.mxu0 %v10080_v2  ;;  %3842 = vmatmul.bf16.gmra.mxu1 %v10144_v3  ;;  %v6810_v26 = vadd.f32 %v12424_v48, %v6294_v18  ;;  %v6938_v27 = vadd.f32 %v12424_v48, %v6422_v19 }
 0x113   : > { %v7577_v16 = vmax.f32 %v7065_v12, 0.0  ;;  %v7705_v17 = vmax.f32 %v7193_v13, 0.0  ;;  %4162 = vmatmul.bf16.gmra.mxu2 %v10208_v10  ;;  %4482 = vmatmul.bf16.gmra.mxu3 %v10272_v11 }
 0x114   : > { %v7322_v34 = vmax.f32 %v6810_v26, 0.0  ;;  %v7450_v35 = vmax.f32 %v6938_v27, 0.0 }
 0x115   : > { %v10991_v20 = vpack.c.bf16 %v7577_v16, %v7576_v14  ;;  %v11311_v21 = vpack.c.bf16 %v7705_v17, %v7704_v15 }
 0x116   : > { %v4123_v22 = vpop.f32.mrf.mxu2  ;;  %v4443_v23 = vpop.f32.mrf.mxu3 }
 0x117   : > { %11743 = vst [vmem:[%s12445_s1 + $0x418] sm:$0xff] %v10991_v20   ;;  %v3485_v24 = vpop.f32.mrf.mxu0  ;;  %v3805_v25 = vpop.f32.mrf.mxu1  ;;  %v6550_v32 = vmul.f32 %v12421_v46, %v4123_v22  ;;  %v6678_v33 = vmul.f32 %v12421_v46, %v4443_v23  ;;  %v10082_v20 = vld [vmem:[%s12371_s8 + $0x70] sm:$0xff] }
 0x118   : > { %11807 = vst [vmem:[%s12445_s1 + $0x618] sm:$0xff] %v11311_v21   ;;  %v6295_v28 = vmul.f32 %v12421_v46, %v3485_v24  ;;  %v6423_v29 = vmul.f32 %v12421_v46, %v3805_v25  ;;  %v10146_v21 = vld [vmem:[%s12371_s8 + $0x270] sm:$0xff] }
 0x119   : > { %v7066_v44 = vadd.f32 %v12424_v48, %v6550_v32  ;;  %v7194_v45 = vadd.f32 %v12424_v48, %v6678_v33 }
 0x11a   : > { %v6811_v30 = vadd.f32 %v12424_v48, %v6295_v28  ;;  %v6939_v31 = vadd.f32 %v12424_v48, %v6423_v29  ;;  %v10210_v28 = vld [vmem:[%s12371_s8 + $0x470] sm:$0xff] }
 0x11b   : > { %v7578_v56 = vmax.f32 %v7066_v44, 0.0  ;;  %v7706_v57 = vmax.f32 %v7194_v45, 0.0  ;;  %v10274_v29 = vld [vmem:[%s12371_s8 + $0x670] sm:$0xff] }
 0x11c   : > { %v7323_v36 = vmax.f32 %v6811_v30, 0.0  ;;  %v7451_v37 = vmax.f32 %v6939_v31, 0.0 }
 0x11e   : > { %v10356_v38 = vpack.c.bf16 %v7323_v36, %v7322_v34  ;;  %v10676_v39 = vpack.c.bf16 %v7451_v37, %v7450_v35  ;;  %v4125_v40 = vpop.f32.mrf.mxu2  ;;  %v4445_v41 = vpop.f32.mrf.mxu3 }
 0x11f   : > { %v6551_v47 = vmul.f32 %v12421_v46, %v4125_v40  ;;  %v6679_v49 = vmul.f32 %v12421_v46, %v4445_v41  ;;  %v3488_v50 = vpop.f32.mrf.mxu0  ;;  %v3808_v51 = vpop.f32.mrf.mxu1 }
 0x120   : > { %11616 = vst [vmem:[%s12445_s1 + $0x20] sm:$0xff] %v10356_v38   ;;  %v6296_v60 = vmul.f32 %v12421_v46, %v3488_v50  ;;  %v6424_v61 = vmul.f32 %v12421_v46, %v3808_v51 }
 0x121   : > { %11680 = vst [vmem:[%s12445_s1 + $0x220] sm:$0xff] %v10676_v39   ;;  %v7067_v54 = vadd.f32 %v12424_v48, %v6551_v47  ;;  %v7195_v55 = vadd.f32 %v12424_v48, %v6679_v49 }
 0x122   : > { %3527 = vmatmul.bf16.gmra.mxu0 %v10081_v42  ;;  %3847 = vmatmul.bf16.gmra.mxu1 %v10145_v43  ;;  %v6812_v4 = vadd.f32 %v12424_v48, %v6296_v60  ;;  %v6940_v5 = vadd.f32 %v12424_v48, %v6424_v61 }
 0x123   : > { %v7579_v58 = vmax.f32 %v7067_v54, 0.0  ;;  %v7707_v59 = vmax.f32 %v7195_v55, 0.0  ;;  %4167 = vmatmul.bf16.gmra.mxu2 %v10209_v52  ;;  %4487 = vmatmul.bf16.gmra.mxu3 %v10273_v53 }
 0x124   : > { %v7324_v12 = vmax.f32 %v6812_v4, 0.0  ;;  %v7452_v13 = vmax.f32 %v6940_v5, 0.0 }
 0x125   : > { %v10996_v62 = vpack.c.bf16 %v7579_v58, %v7578_v56  ;;  %v11316_v63 = vpack.c.bf16 %v7707_v59, %v7706_v57 }
 0x126   : > { %v4128_v0 = vpop.f32.mrf.mxu2  ;;  %v4448_v1 = vpop.f32.mrf.mxu3 }
 0x127   : > { %11744 = vst [vmem:[%s12445_s1 + $0x420] sm:$0xff] %v10996_v62   ;;  %v3490_v2 = vpop.f32.mrf.mxu0  ;;  %v3810_v3 = vpop.f32.mrf.mxu1  ;;  %v6552_v10 = vmul.f32 %v12421_v46, %v4128_v0  ;;  %v6680_v11 = vmul.f32 %v12421_v46, %v4448_v1  ;;  %v10083_v62 = vld [vmem:[%s12371_s8 + $0x78] sm:$0xff] }
 0x128   : > { %11808 = vst [vmem:[%s12445_s1 + $0x620] sm:$0xff] %v11316_v63   ;;  %v6297_v6 = vmul.f32 %v12421_v46, %v3490_v2  ;;  %v6425_v7 = vmul.f32 %v12421_v46, %v3810_v3  ;;  %v10147_v63 = vld [vmem:[%s12371_s8 + $0x278] sm:$0xff] }
 0x129   : > { %v7068_v22 = vadd.f32 %v12424_v48, %v6552_v10  ;;  %v7196_v23 = vadd.f32 %v12424_v48, %v6680_v11 }
 0x12a   : > { %v6813_v8 = vadd.f32 %v12424_v48, %v6297_v6  ;;  %v6941_v9 = vadd.f32 %v12424_v48, %v6425_v7  ;;  %v10211_v6 = vld [vmem:[%s12371_s8 + $0x478] sm:$0xff] }
 0x12b   : > { %v7580_v32 = vmax.f32 %v7068_v22, 0.0  ;;  %v7708_v33 = vmax.f32 %v7196_v23, 0.0  ;;  %v10275_v7 = vld [vmem:[%s12371_s8 + $0x678] sm:$0xff] }
 0x12c   : > { %v7325_v14 = vmax.f32 %v6813_v8, 0.0  ;;  %v7453_v15 = vmax.f32 %v6941_v9, 0.0 }
 0x12e   : > { %v10361_v16 = vpack.c.bf16 %v7325_v14, %v7324_v12  ;;  %v10681_v17 = vpack.c.bf16 %v7453_v15, %v7452_v13  ;;  %v4130_v18 = vpop.f32.mrf.mxu2  ;;  %v4450_v19 = vpop.f32.mrf.mxu3 }
 0x12f   : > { %v6553_v24 = vmul.f32 %v12421_v46, %v4130_v18  ;;  %v6681_v25 = vmul.f32 %v12421_v46, %v4450_v19  ;;  %v3493_v26 = vpop.f32.mrf.mxu0  ;;  %v3813_v27 = vpop.f32.mrf.mxu1 }
 0x130   : > { %11617 = vst [vmem:[%s12445_s1 + $0x28] sm:$0xff] %v10361_v16   ;;  %v6298_v36 = vmul.f32 %v12421_v46, %v3493_v26  ;;  %v6426_v37 = vmul.f32 %v12421_v46, %v3813_v27 }
 0x131   : > { %11681 = vst [vmem:[%s12445_s1 + $0x228] sm:$0xff] %v10681_v17   ;;  %v7069_v30 = vadd.f32 %v12424_v48, %v6553_v24  ;;  %v7197_v31 = vadd.f32 %v12424_v48, %v6681_v25 }
 0x132   : > { %3532 = vmatmul.bf16.gmra.mxu0 %v10082_v20  ;;  %3852 = vmatmul.bf16.gmra.mxu1 %v10146_v21  ;;  %v6814_v44 = vadd.f32 %v12424_v48, %v6298_v36  ;;  %v6942_v45 = vadd.f32 %v12424_v48, %v6426_v37 }
 0x133   : > { %v7581_v34 = vmax.f32 %v7069_v30, 0.0  ;;  %v7709_v35 = vmax.f32 %v7197_v31, 0.0  ;;  %4172 = vmatmul.bf16.gmra.mxu2 %v10210_v28  ;;  %4492 = vmatmul.bf16.gmra.mxu3 %v10274_v29 }
 0x134   : > { %v7326_v54 = vmax.f32 %v6814_v44, 0.0  ;;  %v7454_v55 = vmax.f32 %v6942_v45, 0.0 }
 0x135   : > { %v11001_v38 = vpack.c.bf16 %v7581_v34, %v7580_v32  ;;  %v11321_v39 = vpack.c.bf16 %v7709_v35, %v7708_v33 }
 0x136   : > { %v4133_v40 = vpop.f32.mrf.mxu2  ;;  %v4453_v41 = vpop.f32.mrf.mxu3 }
 0x137   : > { %11745 = vst [vmem:[%s12445_s1 + $0x428] sm:$0xff] %v11001_v38   ;;  %v3495_v42 = vpop.f32.mrf.mxu0  ;;  %v3815_v43 = vpop.f32.mrf.mxu1  ;;  %v6554_v52 = vmul.f32 %v12421_v46, %v4133_v40  ;;  %v6682_v53 = vmul.f32 %v12421_v46, %v4453_v41  ;;  %v10084_v38 = vld [vmem:[%s12371_s8 + $0x80] sm:$0xff] }
 0x138   : > { %11809 = vst [vmem:[%s12445_s1 + $0x628] sm:$0xff] %v11321_v39   ;;  %v6299_v47 = vmul.f32 %v12421_v46, %v3495_v42  ;;  %v6427_v49 = vmul.f32 %v12421_v46, %v3815_v43  ;;  %v10148_v39 = vld [vmem:[%s12371_s8 + $0x280] sm:$0xff] }
 0x139   : > { %v7070_v0 = vadd.f32 %v12424_v48, %v6554_v52  ;;  %v7198_v1 = vadd.f32 %v12424_v48, %v6682_v53 }
 0x13a   : > { %v6815_v50 = vadd.f32 %v12424_v48, %v6299_v47  ;;  %v6943_v51 = vadd.f32 %v12424_v48, %v6427_v49  ;;  %v10212_v47 = vld [vmem:[%s12371_s8 + $0x480] sm:$0xff] }
 0x13b   : > { %v7582_v10 = vmax.f32 %v7070_v0, 0.0  ;;  %v7710_v11 = vmax.f32 %v7198_v1, 0.0  ;;  %v10276_v49 = vld [vmem:[%s12371_s8 + $0x680] sm:$0xff] }
 0x13c   : > { %v7327_v56 = vmax.f32 %v6815_v50, 0.0  ;;  %v7455_v57 = vmax.f32 %v6943_v51, 0.0 }
 0x13e   : > { %v10366_v58 = vpack.c.bf16 %v7327_v56, %v7326_v54  ;;  %v10686_v59 = vpack.c.bf16 %v7455_v57, %v7454_v55  ;;  %v4135_v60 = vpop.f32.mrf.mxu2  ;;  %v4455_v61 = vpop.f32.mrf.mxu3 }
 0x13f   : > { %v6555_v2 = vmul.f32 %v12421_v46, %v4135_v60  ;;  %v6683_v3 = vmul.f32 %v12421_v46, %v4455_v61  ;;  %v3498_v4 = vpop.f32.mrf.mxu0  ;;  %v3818_v5 = vpop.f32.mrf.mxu1 }
 0x140   : > { %11618 = vst [vmem:[%s12445_s1 + $0x30] sm:$0xff] %v10366_v58   ;;  %v6300_v14 = vmul.f32 %v12421_v46, %v3498_v4  ;;  %v6428_v15 = vmul.f32 %v12421_v46, %v3818_v5 }
 0x141   : > { %11682 = vst [vmem:[%s12445_s1 + $0x230] sm:$0xff] %v10686_v59   ;;  %v7071_v8 = vadd.f32 %v12424_v48, %v6555_v2  ;;  %v7199_v9 = vadd.f32 %v12424_v48, %v6683_v3 }
 0x142   : > { %3537 = vmatmul.bf16.gmra.mxu0 %v10083_v62  ;;  %3857 = vmatmul.bf16.gmra.mxu1 %v10147_v63  ;;  %v6816_v22 = vadd.f32 %v12424_v48, %v6300_v14  ;;  %v6944_v23 = vadd.f32 %v12424_v48, %v6428_v15 }
 0x143   : > { %v7583_v12 = vmax.f32 %v7071_v8, 0.0  ;;  %v7711_v13 = vmax.f32 %v7199_v9, 0.0  ;;  %4177 = vmatmul.bf16.gmra.mxu2 %v10211_v6  ;;  %4497 = vmatmul.bf16.gmra.mxu3 %v10275_v7 }
 0x144   : > { %v7328_v30 = vmax.f32 %v6816_v22, 0.0  ;;  %v7456_v31 = vmax.f32 %v6944_v23, 0.0 }
 0x145   : > { %v11006_v16 = vpack.c.bf16 %v7583_v12, %v7582_v10  ;;  %v11326_v17 = vpack.c.bf16 %v7711_v13, %v7710_v11 }
 0x146   : > { %v4138_v18 = vpop.f32.mrf.mxu2  ;;  %v4458_v19 = vpop.f32.mrf.mxu3 }
 0x147   : > { %11746 = vst [vmem:[%s12445_s1 + $0x430] sm:$0xff] %v11006_v16   ;;  %v3500_v20 = vpop.f32.mrf.mxu0  ;;  %v3820_v21 = vpop.f32.mrf.mxu1  ;;  %v6556_v28 = vmul.f32 %v12421_v46, %v4138_v18  ;;  %v6684_v29 = vmul.f32 %v12421_v46, %v4458_v19  ;;  %v10085_v16 = vld [vmem:[%s12371_s8 + $0x88] sm:$0xff] }
 0x148   : > { %11810 = vst [vmem:[%s12445_s1 + $0x630] sm:$0xff] %v11326_v17   ;;  %v6301_v24 = vmul.f32 %v12421_v46, %v3500_v20  ;;  %v6429_v25 = vmul.f32 %v12421_v46, %v3820_v21  ;;  %v10149_v17 = vld [vmem:[%s12371_s8 + $0x288] sm:$0xff] }
 0x149   : > { %v7072_v40 = vadd.f32 %v12424_v48, %v6556_v28  ;;  %v7200_v41 = vadd.f32 %v12424_v48, %v6684_v29 }
 0x14a   : > { %v6817_v26 = vadd.f32 %v12424_v48, %v6301_v24  ;;  %v6945_v27 = vadd.f32 %v12424_v48, %v6429_v25  ;;  %v10213_v24 = vld [vmem:[%s12371_s8 + $0x488] sm:$0xff] }
 0x14b   : > { %v7584_v52 = vmax.f32 %v7072_v40, 0.0  ;;  %v7712_v53 = vmax.f32 %v7200_v41, 0.0  ;;  %v10277_v25 = vld [vmem:[%s12371_s8 + $0x688] sm:$0xff] }
 0x14c   : > { %v7329_v32 = vmax.f32 %v6817_v26, 0.0  ;;  %v7457_v33 = vmax.f32 %v6945_v27, 0.0 }
 0x14e   : > { %v10371_v34 = vpack.c.bf16 %v7329_v32, %v7328_v30  ;;  %v10691_v35 = vpack.c.bf16 %v7457_v33, %v7456_v31  ;;  %v4140_v36 = vpop.f32.mrf.mxu2  ;;  %v4460_v37 = vpop.f32.mrf.mxu3 }
 0x14f   : > { %v6557_v42 = vmul.f32 %v12421_v46, %v4140_v36  ;;  %v6685_v43 = vmul.f32 %v12421_v46, %v4460_v37  ;;  %v3503_v44 = vpop.f32.mrf.mxu0  ;;  %v3823_v45 = vpop.f32.mrf.mxu1 }
 0x150   : > { %11619 = vst [vmem:[%s12445_s1 + $0x38] sm:$0xff] %v10371_v34   ;;  %v6302_v56 = vmul.f32 %v12421_v46, %v3503_v44  ;;  %v6430_v57 = vmul.f32 %v12421_v46, %v3823_v45 }
 0x151   : > { %11683 = vst [vmem:[%s12445_s1 + $0x238] sm:$0xff] %v10691_v35   ;;  %v7073_v50 = vadd.f32 %v12424_v48, %v6557_v42  ;;  %v7201_v51 = vadd.f32 %v12424_v48, %v6685_v43 }
 0x152   : > { %3542 = vmatmul.bf16.gmra.mxu0 %v10084_v38  ;;  %3862 = vmatmul.bf16.gmra.mxu1 %v10148_v39  ;;  %v6818_v0 = vadd.f32 %v12424_v48, %v6302_v56  ;;  %v6946_v1 = vadd.f32 %v12424_v48, %v6430_v57 }
 0x153   : > { %v7585_v54 = vmax.f32 %v7073_v50, 0.0  ;;  %v7713_v55 = vmax.f32 %v7201_v51, 0.0  ;;  %4182 = vmatmul.bf16.gmra.mxu2 %v10212_v47  ;;  %4502 = vmatmul.bf16.gmra.mxu3 %v10276_v49 }
 0x154   : > { %v7330_v8 = vmax.f32 %v6818_v0, 0.0  ;;  %v7458_v9 = vmax.f32 %v6946_v1, 0.0 }
 0x155   : > { %v11011_v58 = vpack.c.bf16 %v7585_v54, %v7584_v52  ;;  %v11331_v59 = vpack.c.bf16 %v7713_v55, %v7712_v53 }
 0x156   : > { %v4143_v60 = vpop.f32.mrf.mxu2  ;;  %v4463_v61 = vpop.f32.mrf.mxu3 }
 0x157   : > { %11747 = vst [vmem:[%s12445_s1 + $0x438] sm:$0xff] %v11011_v58   ;;  %v3505_v62 = vpop.f32.mrf.mxu0  ;;  %v3825_v63 = vpop.f32.mrf.mxu1  ;;  %v6558_v6 = vmul.f32 %v12421_v46, %v4143_v60  ;;  %v6686_v7 = vmul.f32 %v12421_v46, %v4463_v61  ;;  %v10086_v58 = vld [vmem:[%s12371_s8 + $0x90] sm:$0xff] }
 0x158   : > { %11811 = vst [vmem:[%s12445_s1 + $0x638] sm:$0xff] %v11331_v59   ;;  %v6303_v2 = vmul.f32 %v12421_v46, %v3505_v62  ;;  %v6431_v3 = vmul.f32 %v12421_v46, %v3825_v63  ;;  %v10150_v59 = vld [vmem:[%s12371_s8 + $0x290] sm:$0xff] }
 0x159   : > { %v7074_v18 = vadd.f32 %v12424_v48, %v6558_v6  ;;  %v7202_v19 = vadd.f32 %v12424_v48, %v6686_v7 }
 0x15a   : > { %v6819_v4 = vadd.f32 %v12424_v48, %v6303_v2  ;;  %v6947_v5 = vadd.f32 %v12424_v48, %v6431_v3  ;;  %v10214_v2 = vld [vmem:[%s12371_s8 + $0x490] sm:$0xff] }
 0x15b   : > { %v7586_v28 = vmax.f32 %v7074_v18, 0.0  ;;  %v7714_v29 = vmax.f32 %v7202_v19, 0.0  ;;  %v10278_v3 = vld [vmem:[%s12371_s8 + $0x690] sm:$0xff] }
 0x15c   : > { %v7331_v10 = vmax.f32 %v6819_v4, 0.0  ;;  %v7459_v11 = vmax.f32 %v6947_v5, 0.0 }
 0x15e   : > { %v10376_v12 = vpack.c.bf16 %v7331_v10, %v7330_v8  ;;  %v10696_v13 = vpack.c.bf16 %v7459_v11, %v7458_v9  ;;  %v4145_v14 = vpop.f32.mrf.mxu2  ;;  %v4465_v15 = vpop.f32.mrf.mxu3 }
 0x15f   : > { %v6559_v20 = vmul.f32 %v12421_v46, %v4145_v14  ;;  %v6687_v21 = vmul.f32 %v12421_v46, %v4465_v15  ;;  %v3508_v22 = vpop.f32.mrf.mxu0  ;;  %v3828_v23 = vpop.f32.mrf.mxu1 }
 0x160   : > { %11620 = vst [vmem:[%s12445_s1 + $0x40] sm:$0xff] %v10376_v12   ;;  %v6304_v32 = vmul.f32 %v12421_v46, %v3508_v22  ;;  %v6432_v33 = vmul.f32 %v12421_v46, %v3828_v23 }
 0x161   : > { %11684 = vst [vmem:[%s12445_s1 + $0x240] sm:$0xff] %v10696_v13   ;;  %v7075_v26 = vadd.f32 %v12424_v48, %v6559_v20  ;;  %v7203_v27 = vadd.f32 %v12424_v48, %v6687_v21 }
 0x162   : > { %3547 = vmatmul.bf16.gmra.mxu0 %v10085_v16  ;;  %3867 = vmatmul.bf16.gmra.mxu1 %v10149_v17  ;;  %v6820_v40 = vadd.f32 %v12424_v48, %v6304_v32  ;;  %v6948_v41 = vadd.f32 %v12424_v48, %v6432_v33 }
 0x163   : > { %v7587_v30 = vmax.f32 %v7075_v26, 0.0  ;;  %v7715_v31 = vmax.f32 %v7203_v27, 0.0  ;;  %4187 = vmatmul.bf16.gmra.mxu2 %v10213_v24  ;;  %4507 = vmatmul.bf16.gmra.mxu3 %v10277_v25 }
 0x164   : > { %v7332_v50 = vmax.f32 %v6820_v40, 0.0  ;;  %v7460_v51 = vmax.f32 %v6948_v41, 0.0 }
 0x165   : > { %v11016_v34 = vpack.c.bf16 %v7587_v30, %v7586_v28  ;;  %v11336_v35 = vpack.c.bf16 %v7715_v31, %v7714_v29 }
 0x166   : > { %v4148_v36 = vpop.f32.mrf.mxu2  ;;  %v4468_v37 = vpop.f32.mrf.mxu3 }
 0x167   : > { %11748 = vst [vmem:[%s12445_s1 + $0x440] sm:$0xff] %v11016_v34   ;;  %v3510_v38 = vpop.f32.mrf.mxu0  ;;  %v3830_v39 = vpop.f32.mrf.mxu1  ;;  %v6560_v47 = vmul.f32 %v12421_v46, %v4148_v36  ;;  %v6688_v49 = vmul.f32 %v12421_v46, %v4468_v37  ;;  %v10087_v34 = vld [vmem:[%s12371_s8 + $0x98] sm:$0xff] }
 0x168   : > { %11812 = vst [vmem:[%s12445_s1 + $0x640] sm:$0xff] %v11336_v35   ;;  %v6305_v42 = vmul.f32 %v12421_v46, %v3510_v38  ;;  %v6433_v43 = vmul.f32 %v12421_v46, %v3830_v39  ;;  %v10151_v35 = vld [vmem:[%s12371_s8 + $0x298] sm:$0xff]  ;;  %v12683_v38 = vld [vmem:[#allocation8] ss:$0 sm:$0xff] }
 0x169   : > { %v7076_v60 = vadd.f32 %v12424_v48, %v6560_v47  ;;  %v7204_v61 = vadd.f32 %v12424_v48, %v6688_v49 }
 0x16a   : > { %v6821_v44 = vadd.f32 %v12424_v48, %v6305_v42  ;;  %v6949_v45 = vadd.f32 %v12424_v48, %v6433_v43  ;;  %v10215_v42 = vld [vmem:[%s12371_s8 + $0x498] sm:$0xff] }
 0x16b   : > { %v7588_v6 = vmax.f32 %v7076_v60, 0.0  ;;  %v7716_v7 = vmax.f32 %v7204_v61, 0.0  ;;  %v10279_v43 = vld [vmem:[%s12371_s8 + $0x698] sm:$0xff] }
 0x16c   : > { %v7333_v52 = vmax.f32 %v6821_v44, 0.0  ;;  %v7461_v53 = vmax.f32 %v6949_v45, 0.0  ;;  %v12691_v44 = vld [vmem:[#allocation9] ss:$0 sm:$0xff] }
 0x16e   : > { %v10381_v54 = vpack.c.bf16 %v7333_v52, %v7332_v50  ;;  %v10701_v55 = vpack.c.bf16 %v7461_v53, %v7460_v51  ;;  %v4150_v56 = vpop.f32.mrf.mxu2  ;;  %v4470_v57 = vpop.f32.mrf.mxu3 }
 0x16f   : > { %v6561_v62 = vmul.f32 %v12421_v46, %v4150_v56  ;;  %v6689_v63 = vmul.f32 %v12421_v46, %v4470_v57  ;;  %v3513_v0 = vpop.f32.mrf.mxu0  ;;  %v3833_v1 = vpop.f32.mrf.mxu1 }
 0x170   : > { %11621 = vst [vmem:[%s12445_s1 + $0x48] sm:$0xff] %v10381_v54   ;;  %v6306_v10 = vmul.f32 %v12421_v46, %v3513_v0  ;;  %v6434_v11 = vmul.f32 %v12421_v46, %v3833_v1 }
 0x171   : > { %11685 = vst [vmem:[%s12445_s1 + $0x248] sm:$0xff] %v10701_v55   ;;  %v7077_v4 = vadd.f32 %v12424_v48, %v6561_v62  ;;  %v7205_v5 = vadd.f32 %v12424_v48, %v6689_v63 }
 0x172   : > { %3552 = vmatmul.bf16.gmra.mxu0 %v10086_v58  ;;  %3872 = vmatmul.bf16.gmra.mxu1 %v10150_v59  ;;  %v6822_v18 = vadd.f32 %v12424_v48, %v6306_v10  ;;  %v6950_v19 = vadd.f32 %v12424_v48, %v6434_v11 }
 0x173   : > { %v7589_v8 = vmax.f32 %v7077_v4, 0.0  ;;  %v7717_v9 = vmax.f32 %v7205_v5, 0.0  ;;  %4192 = vmatmul.bf16.gmra.mxu2 %v10214_v2  ;;  %4512 = vmatmul.bf16.gmra.mxu3 %v10278_v3 }
 0x174   : > { %v7334_v26 = vmax.f32 %v6822_v18, 0.0  ;;  %v7462_v27 = vmax.f32 %v6950_v19, 0.0 }
 0x175   : > { %v11021_v12 = vpack.c.bf16 %v7589_v8, %v7588_v6  ;;  %v11341_v13 = vpack.c.bf16 %v7717_v9, %v7716_v7 }
 0x176   : > { %v4153_v14 = vpop.f32.mrf.mxu2  ;;  %v4473_v15 = vpop.f32.mrf.mxu3 }
 0x177   : > { %11749 = vst [vmem:[%s12445_s1 + $0x448] sm:$0xff] %v11021_v12   ;;  %v3515_v16 = vpop.f32.mrf.mxu0  ;;  %v3835_v17 = vpop.f32.mrf.mxu1  ;;  %v6562_v24 = vmul.f32 %v12421_v46, %v4153_v14  ;;  %v6690_v25 = vmul.f32 %v12421_v46, %v4473_v15  ;;  %v10088_v12 = vld [vmem:[%s12371_s8 + $0xa0] sm:$0xff] }
 0x178   : > { %11813 = vst [vmem:[%s12445_s1 + $0x648] sm:$0xff] %v11341_v13   ;;  %v6307_v20 = vmul.f32 %v12421_v46, %v3515_v16  ;;  %v6435_v21 = vmul.f32 %v12421_v46, %v3835_v17  ;;  %v10152_v13 = vld [vmem:[%s12371_s8 + $0x2a0] sm:$0xff] }
 0x179   : > { %v7078_v36 = vadd.f32 %v12424_v48, %v6562_v24  ;;  %v7206_v37 = vadd.f32 %v12424_v48, %v6690_v25 }
 0x17a   : > { %v6823_v22 = vadd.f32 %v12424_v48, %v6307_v20  ;;  %v6951_v23 = vadd.f32 %v12424_v48, %v6435_v21  ;;  %v10216_v20 = vld [vmem:[%s12371_s8 + $0x4a0] sm:$0xff] }
 0x17b   : > { %v7590_v48 = vmax.f32 %v7078_v36, 0.0  ;;  %v7718_v49 = vmax.f32 %v7206_v37, 0.0  ;;  %v10280_v21 = vld [vmem:[%s12371_s8 + $0x6a0] sm:$0xff] }
 0x17c   : > { %v7335_v28 = vmax.f32 %v6823_v22, 0.0  ;;  %v7463_v29 = vmax.f32 %v6951_v23, 0.0 }
 0x17e   : > { %v10386_v30 = vpack.c.bf16 %v7335_v28, %v7334_v26  ;;  %v10706_v31 = vpack.c.bf16 %v7463_v29, %v7462_v27  ;;  %v4155_v32 = vpop.f32.mrf.mxu2  ;;  %v4475_v33 = vpop.f32.mrf.mxu3 }
 0x17f   : > { %v6563_v46 = vmul.f32 %v12683_v38, %v4155_v32  ;;  %v6691_v39 = vmul.f32 %v12683_v38, %v4475_v33  ;;  %v3518_v40 = vpop.f32.mrf.mxu0  ;;  %v3838_v41 = vpop.f32.mrf.mxu1 }
 0x180   : > { %11622 = vst [vmem:[%s12445_s1 + $0x50] sm:$0xff] %v10386_v30   ;;  %v6308_v52 = vmul.f32 %v12683_v38, %v3518_v40  ;;  %v6436_v53 = vmul.f32 %v12683_v38, %v3838_v41 }
 0x181   : > { %11686 = vst [vmem:[%s12445_s1 + $0x250] sm:$0xff] %v10706_v31   ;;  %v7079_v45 = vadd.f32 %v12691_v44, %v6563_v46  ;;  %v7207_v47 = vadd.f32 %v12691_v44, %v6691_v39 }
 0x182   : > { %3557 = vmatmul.bf16.gmra.mxu0 %v10087_v34  ;;  %3877 = vmatmul.bf16.gmra.mxu1 %v10151_v35  ;;  %v6824_v60 = vadd.f32 %v12691_v44, %v6308_v52  ;;  %v6952_v61 = vadd.f32 %v12691_v44, %v6436_v53 }
 0x183   : > { %v7591_v50 = vmax.f32 %v7079_v45, 0.0  ;;  %v7719_v51 = vmax.f32 %v7207_v47, 0.0  ;;  %4197 = vmatmul.bf16.gmra.mxu2 %v10215_v42  ;;  %4517 = vmatmul.bf16.gmra.mxu3 %v10279_v43 }
 0x184   : > { %v7336_v4 = vmax.f32 %v6824_v60, 0.0  ;;  %v7464_v5 = vmax.f32 %v6952_v61, 0.0 }
 0x185   : > { %v11026_v54 = vpack.c.bf16 %v7591_v50, %v7590_v48  ;;  %v11346_v55 = vpack.c.bf16 %v7719_v51, %v7718_v49 }
 0x186   : > { %v4158_v56 = vpop.f32.mrf.mxu2  ;;  %v4478_v57 = vpop.f32.mrf.mxu3 }
 0x187   : > { %11750 = vst [vmem:[%s12445_s1 + $0x450] sm:$0xff] %v11026_v54   ;;  %v3520_v58 = vpop.f32.mrf.mxu0  ;;  %v3840_v59 = vpop.f32.mrf.mxu1  ;;  %v6564_v2 = vmul.f32 %v12683_v38, %v4158_v56  ;;  %v6692_v3 = vmul.f32 %v12683_v38, %v4478_v57  ;;  %v10089_v54 = vld [vmem:[%s12371_s8 + $0xa8] sm:$0xff] }
 0x188   : > { %11814 = vst [vmem:[%s12445_s1 + $0x650] sm:$0xff] %v11346_v55   ;;  %v6309_v62 = vmul.f32 %v12683_v38, %v3520_v58  ;;  %v6437_v63 = vmul.f32 %v12683_v38, %v3840_v59  ;;  %v10153_v55 = vld [vmem:[%s12371_s8 + $0x2a8] sm:$0xff] }
 0x189   : > { %v7080_v14 = vadd.f32 %v12691_v44, %v6564_v2  ;;  %v7208_v15 = vadd.f32 %v12691_v44, %v6692_v3 }
 0x18a   : > { %v6825_v0 = vadd.f32 %v12691_v44, %v6309_v62  ;;  %v6953_v1 = vadd.f32 %v12691_v44, %v6437_v63  ;;  %v10217_v62 = vld [vmem:[%s12371_s8 + $0x4a8] sm:$0xff] }
 0x18b   : > { %v7592_v24 = vmax.f32 %v7080_v14, 0.0  ;;  %v7720_v25 = vmax.f32 %v7208_v15, 0.0  ;;  %v10281_v63 = vld [vmem:[%s12371_s8 + $0x6a8] sm:$0xff] }
 0x18c   : > { %v7337_v6 = vmax.f32 %v6825_v0, 0.0  ;;  %v7465_v7 = vmax.f32 %v6953_v1, 0.0 }
 0x18e   : > { %v10391_v8 = vpack.c.bf16 %v7337_v6, %v7336_v4  ;;  %v10711_v9 = vpack.c.bf16 %v7465_v7, %v7464_v5  ;;  %v4160_v10 = vpop.f32.mrf.mxu2  ;;  %v4480_v11 = vpop.f32.mrf.mxu3 }
 0x18f   : > { %v6565_v16 = vmul.f32 %v12683_v38, %v4160_v10  ;;  %v6693_v17 = vmul.f32 %v12683_v38, %v4480_v11  ;;  %v3523_v18 = vpop.f32.mrf.mxu0  ;;  %v3843_v19 = vpop.f32.mrf.mxu1 }
 0x190   : > { %11623 = vst [vmem:[%s12445_s1 + $0x58] sm:$0xff] %v10391_v8   ;;  %v6310_v28 = vmul.f32 %v12683_v38, %v3523_v18  ;;  %v6438_v29 = vmul.f32 %v12683_v38, %v3843_v19 }
 0x191   : > { %11687 = vst [vmem:[%s12445_s1 + $0x258] sm:$0xff] %v10711_v9   ;;  %v7081_v22 = vadd.f32 %v12691_v44, %v6565_v16  ;;  %v7209_v23 = vadd.f32 %v12691_v44, %v6693_v17 }
 0x192   : > { %3562 = vmatmul.bf16.gmra.mxu0 %v10088_v12  ;;  %3882 = vmatmul.bf16.gmra.mxu1 %v10152_v13  ;;  %v6826_v36 = vadd.f32 %v12691_v44, %v6310_v28  ;;  %v6954_v37 = vadd.f32 %v12691_v44, %v6438_v29 }
 0x193   : > { %v7593_v26 = vmax.f32 %v7081_v22, 0.0  ;;  %v7721_v27 = vmax.f32 %v7209_v23, 0.0  ;;  %4202 = vmatmul.bf16.gmra.mxu2 %v10216_v20  ;;  %4522 = vmatmul.bf16.gmra.mxu3 %v10280_v21 }
 0x194   : > { %v7338_v45 = vmax.f32 %v6826_v36, 0.0  ;;  %v7466_v47 = vmax.f32 %v6954_v37, 0.0 }
 0x195   : > { %v11031_v30 = vpack.c.bf16 %v7593_v26, %v7592_v24  ;;  %v11351_v31 = vpack.c.bf16 %v7721_v27, %v7720_v25 }
 0x196   : > { %v4163_v32 = vpop.f32.mrf.mxu2  ;;  %v4483_v33 = vpop.f32.mrf.mxu3 }
 0x197   : > { %11751 = vst [vmem:[%s12445_s1 + $0x458] sm:$0xff] %v11031_v30   ;;  %v3525_v34 = vpop.f32.mrf.mxu0  ;;  %v3845_v35 = vpop.f32.mrf.mxu1  ;;  %v6566_v42 = vmul.f32 %v12683_v38, %v4163_v32  ;;  %v6694_v43 = vmul.f32 %v12683_v38, %v4483_v33  ;;  %v10090_v30 = vld [vmem:[%s12371_s8 + $0xb0] sm:$0xff] }
 0x198   : > { %11815 = vst [vmem:[%s12445_s1 + $0x658] sm:$0xff] %v11351_v31   ;;  %v6311_v46 = vmul.f32 %v12683_v38, %v3525_v34  ;;  %v6439_v39 = vmul.f32 %v12683_v38, %v3845_v35  ;;  %v10154_v31 = vld [vmem:[%s12371_s8 + $0x2b0] sm:$0xff] }
 0x199   : > { %v7082_v56 = vadd.f32 %v12691_v44, %v6566_v42  ;;  %v7210_v57 = vadd.f32 %v12691_v44, %v6694_v43 }
 0x19a   : > { %v6827_v40 = vadd.f32 %v12691_v44, %v6311_v46  ;;  %v6955_v41 = vadd.f32 %v12691_v44, %v6439_v39  ;;  %v10218_v46 = vld [vmem:[%s12371_s8 + $0x4b0] sm:$0xff] }
 0x19b   : > { %v7594_v2 = vmax.f32 %v7082_v56, 0.0  ;;  %v7722_v3 = vmax.f32 %v7210_v57, 0.0  ;;  %v10282_v39 = vld [vmem:[%s12371_s8 + $0x6b0] sm:$0xff] }
 0x19c   : > { %v7339_v48 = vmax.f32 %v6827_v40, 0.0  ;;  %v7467_v49 = vmax.f32 %v6955_v41, 0.0 }
 0x19e   : > { %v10396_v50 = vpack.c.bf16 %v7339_v48, %v7338_v45  ;;  %v10716_v51 = vpack.c.bf16 %v7467_v49, %v7466_v47  ;;  %v4165_v52 = vpop.f32.mrf.mxu2  ;;  %v4485_v53 = vpop.f32.mrf.mxu3 }
 0x19f   : > { %v6567_v58 = vmul.f32 %v12683_v38, %v4165_v52  ;;  %v6695_v59 = vmul.f32 %v12683_v38, %v4485_v53  ;;  %v3528_v60 = vpop.f32.mrf.mxu0  ;;  %v3848_v61 = vpop.f32.mrf.mxu1 }
 0x1a0   : > { %11624 = vst [vmem:[%s12445_s1 + $0x60] sm:$0xff] %v10396_v50   ;;  %v6312_v6 = vmul.f32 %v12683_v38, %v3528_v60  ;;  %v6440_v7 = vmul.f32 %v12683_v38, %v3848_v61 }
 0x1a1   : > { %11688 = vst [vmem:[%s12445_s1 + $0x260] sm:$0xff] %v10716_v51   ;;  %v7083_v0 = vadd.f32 %v12691_v44, %v6567_v58  ;;  %v7211_v1 = vadd.f32 %v12691_v44, %v6695_v59 }
 0x1a2   : > { %3567 = vmatmul.bf16.gmra.mxu0 %v10089_v54  ;;  %3887 = vmatmul.bf16.gmra.mxu1 %v10153_v55  ;;  %v6828_v14 = vadd.f32 %v12691_v44, %v6312_v6  ;;  %v6956_v15 = vadd.f32 %v12691_v44, %v6440_v7 }
 0x1a3   : > { %v7595_v4 = vmax.f32 %v7083_v0, 0.0  ;;  %v7723_v5 = vmax.f32 %v7211_v1, 0.0  ;;  %4207 = vmatmul.bf16.gmra.mxu2 %v10217_v62  ;;  %4527 = vmatmul.bf16.gmra.mxu3 %v10281_v63 }
 0x1a4   : > { %v7340_v22 = vmax.f32 %v6828_v14, 0.0  ;;  %v7468_v23 = vmax.f32 %v6956_v15, 0.0 }
 0x1a5   : > { %v11036_v8 = vpack.c.bf16 %v7595_v4, %v7594_v2  ;;  %v11356_v9 = vpack.c.bf16 %v7723_v5, %v7722_v3 }
 0x1a6   : > { %v4168_v10 = vpop.f32.mrf.mxu2  ;;  %v4488_v11 = vpop.f32.mrf.mxu3 }
 0x1a7   : > { %11752 = vst [vmem:[%s12445_s1 + $0x460] sm:$0xff] %v11036_v8   ;;  %v3530_v12 = vpop.f32.mrf.mxu0  ;;  %v3850_v13 = vpop.f32.mrf.mxu1  ;;  %v6568_v20 = vmul.f32 %v12683_v38, %v4168_v10  ;;  %v6696_v21 = vmul.f32 %v12683_v38, %v4488_v11  ;;  %v10091_v8 = vld [vmem:[%s12371_s8 + $0xb8] sm:$0xff] }
 0x1a8   : > { %11816 = vst [vmem:[%s12445_s1 + $0x660] sm:$0xff] %v11356_v9   ;;  %v6313_v16 = vmul.f32 %v12683_v38, %v3530_v12  ;;  %v6441_v17 = vmul.f32 %v12683_v38, %v3850_v13  ;;  %v10155_v9 = vld [vmem:[%s12371_s8 + $0x2b8] sm:$0xff] }
 0x1a9   : > { %v7084_v32 = vadd.f32 %v12691_v44, %v6568_v20  ;;  %v7212_v33 = vadd.f32 %v12691_v44, %v6696_v21 }
 0x1aa   : > { %v6829_v18 = vadd.f32 %v12691_v44, %v6313_v16  ;;  %v6957_v19 = vadd.f32 %v12691_v44, %v6441_v17  ;;  %v10219_v16 = vld [vmem:[%s12371_s8 + $0x4b8] sm:$0xff] }
 0x1ab   : > { %v7596_v42 = vmax.f32 %v7084_v32, 0.0  ;;  %v7724_v43 = vmax.f32 %v7212_v33, 0.0  ;;  %v10283_v17 = vld [vmem:[%s12371_s8 + $0x6b8] sm:$0xff] }
 0x1ac   : > { %v7341_v24 = vmax.f32 %v6829_v18, 0.0  ;;  %v7469_v25 = vmax.f32 %v6957_v19, 0.0 }
 0x1ae   : > { %v10401_v26 = vpack.c.bf16 %v7341_v24, %v7340_v22  ;;  %v10721_v27 = vpack.c.bf16 %v7469_v25, %v7468_v23  ;;  %v4170_v28 = vpop.f32.mrf.mxu2  ;;  %v4490_v29 = vpop.f32.mrf.mxu3 }
 0x1af   : > { %v6569_v34 = vmul.f32 %v12683_v38, %v4170_v28  ;;  %v6697_v35 = vmul.f32 %v12683_v38, %v4490_v29  ;;  %v3533_v36 = vpop.f32.mrf.mxu0  ;;  %v3853_v37 = vpop.f32.mrf.mxu1 }
 0x1b0   : > { %11625 = vst [vmem:[%s12445_s1 + $0x68] sm:$0xff] %v10401_v26   ;;  %v6314_v48 = vmul.f32 %v12683_v38, %v3533_v36  ;;  %v6442_v49 = vmul.f32 %v12683_v38, %v3853_v37 }
 0x1b1   : > { %11689 = vst [vmem:[%s12445_s1 + $0x268] sm:$0xff] %v10721_v27   ;;  %v7085_v40 = vadd.f32 %v12691_v44, %v6569_v34  ;;  %v7213_v41 = vadd.f32 %v12691_v44, %v6697_v35 }
 0x1b2   : > { %3572 = vmatmul.bf16.gmra.mxu0 %v10090_v30  ;;  %3892 = vmatmul.bf16.gmra.mxu1 %v10154_v31  ;;  %v6830_v56 = vadd.f32 %v12691_v44, %v6314_v48  ;;  %v6958_v57 = vadd.f32 %v12691_v44, %v6442_v49 }
 0x1b3   : > { %v7597_v45 = vmax.f32 %v7085_v40, 0.0  ;;  %v7725_v47 = vmax.f32 %v7213_v41, 0.0  ;;  %4212 = vmatmul.bf16.gmra.mxu2 %v10218_v46  ;;  %4532 = vmatmul.bf16.gmra.mxu3 %v10282_v39 }
 0x1b4   : > { %v7342_v0 = vmax.f32 %v6830_v56, 0.0  ;;  %v7470_v1 = vmax.f32 %v6958_v57, 0.0 }
 0x1b5   : > { %v11041_v50 = vpack.c.bf16 %v7597_v45, %v7596_v42  ;;  %v11361_v51 = vpack.c.bf16 %v7725_v47, %v7724_v43 }
 0x1b6   : > { %v4173_v52 = vpop.f32.mrf.mxu2  ;;  %v4493_v53 = vpop.f32.mrf.mxu3 }
 0x1b7   : > { %11753 = vst [vmem:[%s12445_s1 + $0x468] sm:$0xff] %v11041_v50   ;;  %v3535_v54 = vpop.f32.mrf.mxu0  ;;  %v3855_v55 = vpop.f32.mrf.mxu1  ;;  %v6570_v62 = vmul.f32 %v12683_v38, %v4173_v52  ;;  %v6698_v63 = vmul.f32 %v12683_v38, %v4493_v53  ;;  %v10092_v50 = vld [vmem:[%s12371_s8 + $0xc0] sm:$0xff] }
 0x1b8   : > { %11817 = vst [vmem:[%s12445_s1 + $0x668] sm:$0xff] %v11361_v51   ;;  %v6315_v58 = vmul.f32 %v12683_v38, %v3535_v54  ;;  %v6443_v59 = vmul.f32 %v12683_v38, %v3855_v55  ;;  %v10156_v51 = vld [vmem:[%s12371_s8 + $0x2c0] sm:$0xff] }
 0x1b9   : > { %v7086_v10 = vadd.f32 %v12691_v44, %v6570_v62  ;;  %v7214_v11 = vadd.f32 %v12691_v44, %v6698_v63 }
 0x1ba   : > { %v6831_v60 = vadd.f32 %v12691_v44, %v6315_v58  ;;  %v6959_v61 = vadd.f32 %v12691_v44, %v6443_v59  ;;  %v10220_v58 = vld [vmem:[%s12371_s8 + $0x4c0] sm:$0xff] }
 0x1bb   : > { %v7598_v20 = vmax.f32 %v7086_v10, 0.0  ;;  %v7726_v21 = vmax.f32 %v7214_v11, 0.0  ;;  %v10284_v59 = vld [vmem:[%s12371_s8 + $0x6c0] sm:$0xff] }
 0x1bc   : > { %v7343_v2 = vmax.f32 %v6831_v60, 0.0  ;;  %v7471_v3 = vmax.f32 %v6959_v61, 0.0 }
 0x1be   : > { %v10406_v4 = vpack.c.bf16 %v7343_v2, %v7342_v0  ;;  %v10726_v5 = vpack.c.bf16 %v7471_v3, %v7470_v1  ;;  %v4175_v6 = vpop.f32.mrf.mxu2  ;;  %v4495_v7 = vpop.f32.mrf.mxu3 }
 0x1bf   : > { %v6571_v12 = vmul.f32 %v12683_v38, %v4175_v6  ;;  %v6699_v13 = vmul.f32 %v12683_v38, %v4495_v7  ;;  %v3538_v14 = vpop.f32.mrf.mxu0  ;;  %v3858_v15 = vpop.f32.mrf.mxu1 }
 0x1c0   : > { %11626 = vst [vmem:[%s12445_s1 + $0x70] sm:$0xff] %v10406_v4   ;;  %v6316_v24 = vmul.f32 %v12683_v38, %v3538_v14  ;;  %v6444_v25 = vmul.f32 %v12683_v38, %v3858_v15 }
 0x1c1   : > { %11690 = vst [vmem:[%s12445_s1 + $0x270] sm:$0xff] %v10726_v5   ;;  %v7087_v18 = vadd.f32 %v12691_v44, %v6571_v12  ;;  %v7215_v19 = vadd.f32 %v12691_v44, %v6699_v13 }
 0x1c2   : > { %3577 = vmatmul.bf16.gmra.mxu0 %v10091_v8  ;;  %3897 = vmatmul.bf16.gmra.mxu1 %v10155_v9  ;;  %v6832_v32 = vadd.f32 %v12691_v44, %v6316_v24  ;;  %v6960_v33 = vadd.f32 %v12691_v44, %v6444_v25 }
 0x1c3   : > { %v7599_v22 = vmax.f32 %v7087_v18, 0.0  ;;  %v7727_v23 = vmax.f32 %v7215_v19, 0.0  ;;  %4217 = vmatmul.bf16.gmra.mxu2 %v10219_v16  ;;  %4537 = vmatmul.bf16.gmra.mxu3 %v10283_v17 }
 0x1c4   : > { %v7344_v40 = vmax.f32 %v6832_v32, 0.0  ;;  %v7472_v41 = vmax.f32 %v6960_v33, 0.0 }
 0x1c5   : > { %v11046_v26 = vpack.c.bf16 %v7599_v22, %v7598_v20  ;;  %v11366_v27 = vpack.c.bf16 %v7727_v23, %v7726_v21 }
 0x1c6   : > { %v4178_v28 = vpop.f32.mrf.mxu2  ;;  %v4498_v29 = vpop.f32.mrf.mxu3 }
 0x1c7   : > { %11754 = vst [vmem:[%s12445_s1 + $0x470] sm:$0xff] %v11046_v26   ;;  %v3540_v30 = vpop.f32.mrf.mxu0  ;;  %v3860_v31 = vpop.f32.mrf.mxu1  ;;  %v6572_v46 = vmul.f32 %v12683_v38, %v4178_v28  ;;  %v6700_v39 = vmul.f32 %v12683_v38, %v4498_v29  ;;  %v10093_v26 = vld [vmem:[%s12371_s8 + $0xc8] sm:$0xff] }
 0x1c8   : > { %11818 = vst [vmem:[%s12445_s1 + $0x670] sm:$0xff] %v11366_v27   ;;  %v6317_v34 = vmul.f32 %v12683_v38, %v3540_v30  ;;  %v6445_v35 = vmul.f32 %v12683_v38, %v3860_v31  ;;  %v10157_v27 = vld [vmem:[%s12371_s8 + $0x2c8] sm:$0xff] }
 0x1c9   : > { %v7088_v52 = vadd.f32 %v12691_v44, %v6572_v46  ;;  %v7216_v53 = vadd.f32 %v12691_v44, %v6700_v39 }
 0x1ca   : > { %v6833_v36 = vadd.f32 %v12691_v44, %v6317_v34  ;;  %v6961_v37 = vadd.f32 %v12691_v44, %v6445_v35  ;;  %v10221_v34 = vld [vmem:[%s12371_s8 + $0x4c8] sm:$0xff] }
 0x1cb   : > { %v7600_v62 = vmax.f32 %v7088_v52, 0.0  ;;  %v7728_v63 = vmax.f32 %v7216_v53, 0.0  ;;  %v10285_v35 = vld [vmem:[%s12371_s8 + $0x6c8] sm:$0xff] }
 0x1cc   : > { %v7345_v42 = vmax.f32 %v6833_v36, 0.0  ;;  %v7473_v43 = vmax.f32 %v6961_v37, 0.0 }
 0x1ce   : > { %v10411_v45 = vpack.c.bf16 %v7345_v42, %v7344_v40  ;;  %v10731_v47 = vpack.c.bf16 %v7473_v43, %v7472_v41  ;;  %v4180_v48 = vpop.f32.mrf.mxu2  ;;  %v4500_v49 = vpop.f32.mrf.mxu3 }
 0x1cf   : > { %v6573_v54 = vmul.f32 %v12683_v38, %v4180_v48  ;;  %v6701_v55 = vmul.f32 %v12683_v38, %v4500_v49  ;;  %v3543_v56 = vpop.f32.mrf.mxu0  ;;  %v3863_v57 = vpop.f32.mrf.mxu1 }
 0x1d0   : > { %11627 = vst [vmem:[%s12445_s1 + $0x78] sm:$0xff] %v10411_v45   ;;  %v6318_v2 = vmul.f32 %v12683_v38, %v3543_v56  ;;  %v6446_v3 = vmul.f32 %v12683_v38, %v3863_v57 }
 0x1d1   : > { %11691 = vst [vmem:[%s12445_s1 + $0x278] sm:$0xff] %v10731_v47   ;;  %v7089_v60 = vadd.f32 %v12691_v44, %v6573_v54  ;;  %v7217_v61 = vadd.f32 %v12691_v44, %v6701_v55 }
 0x1d2   : > { %3582 = vmatmul.bf16.gmra.mxu0 %v10092_v50  ;;  %3902 = vmatmul.bf16.gmra.mxu1 %v10156_v51  ;;  %v6834_v10 = vadd.f32 %v12691_v44, %v6318_v2  ;;  %v6962_v11 = vadd.f32 %v12691_v44, %v6446_v3 }
 0x1d3   : > { %v7601_v0 = vmax.f32 %v7089_v60, 0.0  ;;  %v7729_v1 = vmax.f32 %v7217_v61, 0.0  ;;  %4222 = vmatmul.bf16.gmra.mxu2 %v10220_v58  ;;  %4542 = vmatmul.bf16.gmra.mxu3 %v10284_v59 }
 0x1d4   : > { %v7346_v18 = vmax.f32 %v6834_v10, 0.0  ;;  %v7474_v19 = vmax.f32 %v6962_v11, 0.0 }
 0x1d5   : > { %v11051_v4 = vpack.c.bf16 %v7601_v0, %v7600_v62  ;;  %v11371_v5 = vpack.c.bf16 %v7729_v1, %v7728_v63 }
 0x1d6   : > { %v4183_v6 = vpop.f32.mrf.mxu2  ;;  %v4503_v7 = vpop.f32.mrf.mxu3 }
 0x1d7   : > { %11755 = vst [vmem:[%s12445_s1 + $0x478] sm:$0xff] %v11051_v4   ;;  %v3545_v8 = vpop.f32.mrf.mxu0  ;;  %v3865_v9 = vpop.f32.mrf.mxu1  ;;  %v6574_v16 = vmul.f32 %v12683_v38, %v4183_v6  ;;  %v6702_v17 = vmul.f32 %v12683_v38, %v4503_v7  ;;  %v10094_v4 = vld [vmem:[%s12371_s8 + $0xd0] sm:$0xff] }
 0x1d8   : > { %11819 = vst [vmem:[%s12445_s1 + $0x678] sm:$0xff] %v11371_v5   ;;  %v6319_v12 = vmul.f32 %v12683_v38, %v3545_v8  ;;  %v6447_v13 = vmul.f32 %v12683_v38, %v3865_v9  ;;  %v10158_v5 = vld [vmem:[%s12371_s8 + $0x2d0] sm:$0xff] }
 0x1d9   : > { %v7090_v28 = vadd.f32 %v12691_v44, %v6574_v16  ;;  %v7218_v29 = vadd.f32 %v12691_v44, %v6702_v17 }
 0x1da   : > { %v6835_v14 = vadd.f32 %v12691_v44, %v6319_v12  ;;  %v6963_v15 = vadd.f32 %v12691_v44, %v6447_v13  ;;  %v10222_v12 = vld [vmem:[%s12371_s8 + $0x4d0] sm:$0xff] }
 0x1db   : > { %v7602_v46 = vmax.f32 %v7090_v28, 0.0  ;;  %v7730_v39 = vmax.f32 %v7218_v29, 0.0  ;;  %v10286_v13 = vld [vmem:[%s12371_s8 + $0x6d0] sm:$0xff] }
 0x1dc   : > { %v7347_v20 = vmax.f32 %v6835_v14, 0.0  ;;  %v7475_v21 = vmax.f32 %v6963_v15, 0.0 }
 0x1de   : > { %v10416_v22 = vpack.c.bf16 %v7347_v20, %v7346_v18  ;;  %v10736_v23 = vpack.c.bf16 %v7475_v21, %v7474_v19  ;;  %v4185_v24 = vpop.f32.mrf.mxu2  ;;  %v4505_v25 = vpop.f32.mrf.mxu3 }
 0x1df   : > { %v6575_v30 = vmul.f32 %v12683_v38, %v4185_v24  ;;  %v6703_v31 = vmul.f32 %v12683_v38, %v4505_v25  ;;  %v3548_v32 = vpop.f32.mrf.mxu0  ;;  %v3868_v33 = vpop.f32.mrf.mxu1 }
 0x1e0   : > { %11628 = vst [vmem:[%s12445_s1 + $0x80] sm:$0xff] %v10416_v22   ;;  %v6320_v42 = vmul.f32 %v12683_v38, %v3548_v32  ;;  %v6448_v43 = vmul.f32 %v12683_v38, %v3868_v33 }
 0x1e1   : > { %11692 = vst [vmem:[%s12445_s1 + $0x280] sm:$0xff] %v10736_v23   ;;  %v7091_v36 = vadd.f32 %v12691_v44, %v6575_v30  ;;  %v7219_v37 = vadd.f32 %v12691_v44, %v6703_v31 }
 0x1e2   : > { %3587 = vmatmul.bf16.gmra.mxu0 %v10093_v26  ;;  %3907 = vmatmul.bf16.gmra.mxu1 %v10157_v27  ;;  %v6836_v52 = vadd.f32 %v12691_v44, %v6320_v42  ;;  %v6964_v53 = vadd.f32 %v12691_v44, %v6448_v43 }
 0x1e3   : > { %v7603_v40 = vmax.f32 %v7091_v36, 0.0  ;;  %v7731_v41 = vmax.f32 %v7219_v37, 0.0  ;;  %4227 = vmatmul.bf16.gmra.mxu2 %v10221_v34  ;;  %4547 = vmatmul.bf16.gmra.mxu3 %v10285_v35 }
 0x1e4   : > { %v7348_v60 = vmax.f32 %v6836_v52, 0.0  ;;  %v7476_v61 = vmax.f32 %v6964_v53, 0.0 }
 0x1e5   : > { %v11056_v45 = vpack.c.bf16 %v7603_v40, %v7602_v46  ;;  %v11376_v47 = vpack.c.bf16 %v7731_v41, %v7730_v39 }
 0x1e6   : > { %v4188_v48 = vpop.f32.mrf.mxu2  ;;  %v4508_v49 = vpop.f32.mrf.mxu3 }
 0x1e7   : > { %11756 = vst [vmem:[%s12445_s1 + $0x480] sm:$0xff] %v11056_v45   ;;  %v3550_v50 = vpop.f32.mrf.mxu0  ;;  %v3870_v51 = vpop.f32.mrf.mxu1  ;;  %v6576_v58 = vmul.f32 %v12683_v38, %v4188_v48  ;;  %v6704_v59 = vmul.f32 %v12683_v38, %v4508_v49  ;;  %v10095_v45 = vld [vmem:[%s12371_s8 + $0xd8] sm:$0xff] }
 0x1e8   : > { %11820 = vst [vmem:[%s12445_s1 + $0x680] sm:$0xff] %v11376_v47   ;;  %v6321_v54 = vmul.f32 %v12683_v38, %v3550_v50  ;;  %v6449_v55 = vmul.f32 %v12683_v38, %v3870_v51  ;;  %v10159_v47 = vld [vmem:[%s12371_s8 + $0x2d8] sm:$0xff] }
 0x1e9   : > { %v7092_v6 = vadd.f32 %v12691_v44, %v6576_v58  ;;  %v7220_v7 = vadd.f32 %v12691_v44, %v6704_v59 }
 0x1ea   : > { %v6837_v56 = vadd.f32 %v12691_v44, %v6321_v54  ;;  %v6965_v57 = vadd.f32 %v12691_v44, %v6449_v55  ;;  %v10223_v54 = vld [vmem:[%s12371_s8 + $0x4d8] sm:$0xff] }
 0x1eb   : > { %v7604_v16 = vmax.f32 %v7092_v6, 0.0  ;;  %v7732_v17 = vmax.f32 %v7220_v7, 0.0  ;;  %v10287_v55 = vld [vmem:[%s12371_s8 + $0x6d8] sm:$0xff] }
 0x1ec   : > { %v7349_v62 = vmax.f32 %v6837_v56, 0.0  ;;  %v7477_v63 = vmax.f32 %v6965_v57, 0.0 }
 0x1ee   : > { %v10421_v0 = vpack.c.bf16 %v7349_v62, %v7348_v60  ;;  %v10741_v1 = vpack.c.bf16 %v7477_v63, %v7476_v61  ;;  %v4190_v2 = vpop.f32.mrf.mxu2  ;;  %v4510_v3 = vpop.f32.mrf.mxu3 }
 0x1ef   : > { %v6577_v8 = vmul.f32 %v12683_v38, %v4190_v2  ;;  %v6705_v9 = vmul.f32 %v12683_v38, %v4510_v3  ;;  %v3553_v10 = vpop.f32.mrf.mxu0  ;;  %v3873_v11 = vpop.f32.mrf.mxu1 }
 0x1f0   : > { %11629 = vst [vmem:[%s12445_s1 + $0x88] sm:$0xff] %v10421_v0   ;;  %v6322_v20 = vmul.f32 %v12683_v38, %v3553_v10  ;;  %v6450_v21 = vmul.f32 %v12683_v38, %v3873_v11 }
 0x1f1   : > { %11693 = vst [vmem:[%s12445_s1 + $0x288] sm:$0xff] %v10741_v1   ;;  %v7093_v14 = vadd.f32 %v12691_v44, %v6577_v8  ;;  %v7221_v15 = vadd.f32 %v12691_v44, %v6705_v9 }
 0x1f2   : > { %3592 = vmatmul.bf16.gmra.mxu0 %v10094_v4  ;;  %3912 = vmatmul.bf16.gmra.mxu1 %v10158_v5  ;;  %v6838_v28 = vadd.f32 %v12691_v44, %v6322_v20  ;;  %v6966_v29 = vadd.f32 %v12691_v44, %v6450_v21 }
 0x1f3   : > { %v7605_v18 = vmax.f32 %v7093_v14, 0.0  ;;  %v7733_v19 = vmax.f32 %v7221_v15, 0.0  ;;  %4232 = vmatmul.bf16.gmra.mxu2 %v10222_v12  ;;  %4552 = vmatmul.bf16.gmra.mxu3 %v10286_v13 }
 0x1f4   : > { %v7350_v36 = vmax.f32 %v6838_v28, 0.0  ;;  %v7478_v37 = vmax.f32 %v6966_v29, 0.0 }
 0x1f5   : > { %v11061_v22 = vpack.c.bf16 %v7605_v18, %v7604_v16  ;;  %v11381_v23 = vpack.c.bf16 %v7733_v19, %v7732_v17 }
 0x1f6   : > { %v4193_v24 = vpop.f32.mrf.mxu2  ;;  %v4513_v25 = vpop.f32.mrf.mxu3 }
 0x1f7   : > { %11757 = vst [vmem:[%s12445_s1 + $0x488] sm:$0xff] %v11061_v22   ;;  %v3555_v26 = vpop.f32.mrf.mxu0  ;;  %v3875_v27 = vpop.f32.mrf.mxu1  ;;  %v6578_v34 = vmul.f32 %v12683_v38, %v4193_v24  ;;  %v6706_v35 = vmul.f32 %v12683_v38, %v4513_v25  ;;  %v10096_v22 = vld [vmem:[%s12371_s8 + $0xe0] sm:$0xff] }
 0x1f8   : > { %11821 = vst [vmem:[%s12445_s1 + $0x688] sm:$0xff] %v11381_v23   ;;  %v6323_v30 = vmul.f32 %v12683_v38, %v3555_v26  ;;  %v6451_v31 = vmul.f32 %v12683_v38, %v3875_v27  ;;  %v10160_v23 = vld [vmem:[%s12371_s8 + $0x2e0] sm:$0xff] }
 0x1f9   : > { %v7094_v48 = vadd.f32 %v12691_v44, %v6578_v34  ;;  %v7222_v49 = vadd.f32 %v12691_v44, %v6706_v35 }
 0x1fa   : > { %v6839_v32 = vadd.f32 %v12691_v44, %v6323_v30  ;;  %v6967_v33 = vadd.f32 %v12691_v44, %v6451_v31  ;;  %v10224_v30 = vld [vmem:[%s12371_s8 + $0x4e0] sm:$0xff] }
 0x1fb   : > { %v7606_v58 = vmax.f32 %v7094_v48, 0.0  ;;  %v7734_v59 = vmax.f32 %v7222_v49, 0.0  ;;  %v10288_v31 = vld [vmem:[%s12371_s8 + $0x6e0] sm:$0xff] }
 0x1fc   : > { %v7351_v46 = vmax.f32 %v6839_v32, 0.0  ;;  %v7479_v39 = vmax.f32 %v6967_v33, 0.0 }
 0x1fe   : > { %v10426_v40 = vpack.c.bf16 %v7351_v46, %v7350_v36  ;;  %v10746_v41 = vpack.c.bf16 %v7479_v39, %v7478_v37  ;;  %v4195_v42 = vpop.f32.mrf.mxu2  ;;  %v4515_v43 = vpop.f32.mrf.mxu3 }
 0x1ff   : > { %v6579_v50 = vmul.f32 %v12683_v38, %v4195_v42  ;;  %v6707_v51 = vmul.f32 %v12683_v38, %v4515_v43  ;;  %v3558_v52 = vpop.f32.mrf.mxu0  ;;  %v3878_v53 = vpop.f32.mrf.mxu1 }
 0x200   : > { %11630 = vst [vmem:[%s12445_s1 + $0x90] sm:$0xff] %v10426_v40   ;;  %v6324_v62 = vmul.f32 %v12683_v38, %v3558_v52  ;;  %v6452_v63 = vmul.f32 %v12683_v38, %v3878_v53 }
 0x201   : > { %11694 = vst [vmem:[%s12445_s1 + $0x290] sm:$0xff] %v10746_v41   ;;  %v7095_v56 = vadd.f32 %v12691_v44, %v6579_v50  ;;  %v7223_v57 = vadd.f32 %v12691_v44, %v6707_v51 }
 0x202   : > { %3597 = vmatmul.bf16.gmra.mxu0 %v10095_v45  ;;  %3917 = vmatmul.bf16.gmra.mxu1 %v10159_v47  ;;  %v6840_v6 = vadd.f32 %v12691_v44, %v6324_v62  ;;  %v6968_v7 = vadd.f32 %v12691_v44, %v6452_v63 }
 0x203   : > { %v7607_v60 = vmax.f32 %v7095_v56, 0.0  ;;  %v7735_v61 = vmax.f32 %v7223_v57, 0.0  ;;  %4237 = vmatmul.bf16.gmra.mxu2 %v10223_v54  ;;  %4557 = vmatmul.bf16.gmra.mxu3 %v10287_v55 }
 0x204   : > { %v7352_v14 = vmax.f32 %v6840_v6, 0.0  ;;  %v7480_v15 = vmax.f32 %v6968_v7, 0.0 }
 0x205   : > { %v11066_v0 = vpack.c.bf16 %v7607_v60, %v7606_v58  ;;  %v11386_v1 = vpack.c.bf16 %v7735_v61, %v7734_v59 }
 0x206   : > { %v4198_v2 = vpop.f32.mrf.mxu2  ;;  %v4518_v3 = vpop.f32.mrf.mxu3 }
 0x207   : > { %11758 = vst [vmem:[%s12445_s1 + $0x490] sm:$0xff] %v11066_v0   ;;  %v3560_v4 = vpop.f32.mrf.mxu0  ;;  %v3880_v5 = vpop.f32.mrf.mxu1  ;;  %v6580_v12 = vmul.f32 %v12683_v38, %v4198_v2  ;;  %v6708_v13 = vmul.f32 %v12683_v38, %v4518_v3  ;;  %v10097_v0 = vld [vmem:[%s12371_s8 + $0xe8] sm:$0xff] }
 0x208   : > { %11822 = vst [vmem:[%s12445_s1 + $0x690] sm:$0xff] %v11386_v1   ;;  %v6325_v8 = vmul.f32 %v12683_v38, %v3560_v4  ;;  %v6453_v9 = vmul.f32 %v12683_v38, %v3880_v5  ;;  %v10161_v1 = vld [vmem:[%s12371_s8 + $0x2e8] sm:$0xff] }
 0x209   : > { %v7096_v24 = vadd.f32 %v12691_v44, %v6580_v12  ;;  %v7224_v25 = vadd.f32 %v12691_v44, %v6708_v13 }
 0x20a   : > { %v6841_v10 = vadd.f32 %v12691_v44, %v6325_v8  ;;  %v6969_v11 = vadd.f32 %v12691_v44, %v6453_v9  ;;  %v10225_v8 = vld [vmem:[%s12371_s8 + $0x4e8] sm:$0xff] }
 0x20b   : > { %v7608_v34 = vmax.f32 %v7096_v24, 0.0  ;;  %v7736_v35 = vmax.f32 %v7224_v25, 0.0  ;;  %v10289_v9 = vld [vmem:[%s12371_s8 + $0x6e8] sm:$0xff] }
 0x20c   : > { %v7353_v16 = vmax.f32 %v6841_v10, 0.0  ;;  %v7481_v17 = vmax.f32 %v6969_v11, 0.0 }
 0x20e   : > { %v10431_v18 = vpack.c.bf16 %v7353_v16, %v7352_v14  ;;  %v10751_v19 = vpack.c.bf16 %v7481_v17, %v7480_v15  ;;  %v4200_v20 = vpop.f32.mrf.mxu2  ;;  %v4520_v21 = vpop.f32.mrf.mxu3 }
 0x20f   : > { %v6581_v26 = vmul.f32 %v12683_v38, %v4200_v20  ;;  %v6709_v27 = vmul.f32 %v12683_v38, %v4520_v21  ;;  %v3563_v28 = vpop.f32.mrf.mxu0  ;;  %v3883_v29 = vpop.f32.mrf.mxu1 }
 0x210   : > { %11631 = vst [vmem:[%s12445_s1 + $0x98] sm:$0xff] %v10431_v18   ;;  %v6326_v46 = vmul.f32 %v12683_v38, %v3563_v28  ;;  %v6454_v39 = vmul.f32 %v12683_v38, %v3883_v29 }
 0x211   : > { %11695 = vst [vmem:[%s12445_s1 + $0x298] sm:$0xff] %v10751_v19   ;;  %v7097_v32 = vadd.f32 %v12691_v44, %v6581_v26  ;;  %v7225_v33 = vadd.f32 %v12691_v44, %v6709_v27 }
 0x212   : > { %3602 = vmatmul.bf16.gmra.mxu0 %v10096_v22  ;;  %3922 = vmatmul.bf16.gmra.mxu1 %v10160_v23  ;;  %v6842_v48 = vadd.f32 %v12691_v44, %v6326_v46  ;;  %v6970_v49 = vadd.f32 %v12691_v44, %v6454_v39 }
 0x213   : > { %v7609_v36 = vmax.f32 %v7097_v32, 0.0  ;;  %v7737_v37 = vmax.f32 %v7225_v33, 0.0  ;;  %4242 = vmatmul.bf16.gmra.mxu2 %v10224_v30  ;;  %4562 = vmatmul.bf16.gmra.mxu3 %v10288_v31  ;;  %v12945_v30 = vld [vmem:[#allocation8] ss:$0 sm:$0xff] }
 0x214   : > { %v7354_v56 = vmax.f32 %v6842_v48, 0.0  ;;  %v7482_v57 = vmax.f32 %v6970_v49, 0.0 }
 0x215   : > { %v11071_v40 = vpack.c.bf16 %v7609_v36, %v7608_v34  ;;  %v11391_v41 = vpack.c.bf16 %v7737_v37, %v7736_v35 }
 0x216   : > { %v4203_v42 = vpop.f32.mrf.mxu2  ;;  %v4523_v43 = vpop.f32.mrf.mxu3 }
 0x217   : > { %11759 = vst [vmem:[%s12445_s1 + $0x498] sm:$0xff] %v11071_v40   ;;  %v3565_v45 = vpop.f32.mrf.mxu0  ;;  %v3885_v47 = vpop.f32.mrf.mxu1  ;;  %v6582_v54 = vmul.f32 %v12683_v38, %v4203_v42  ;;  %v6710_v55 = vmul.f32 %v12683_v38, %v4523_v43  ;;  %v10098_v40 = vld [vmem:[%s12371_s8 + $0xf0] sm:$0xff] }
 0x218   : > { %11823 = vst [vmem:[%s12445_s1 + $0x698] sm:$0xff] %v11391_v41   ;;  %v6327_v50 = vmul.f32 %v12683_v38, %v3565_v45  ;;  %v6455_v51 = vmul.f32 %v12683_v38, %v3885_v47  ;;  %v12951_v41 = vld [vmem:[#allocation9] ss:$0 sm:$0xff] }
 0x219   : > { %v7098_v2 = vadd.f32 %v12691_v44, %v6582_v54  ;;  %v7226_v3 = vadd.f32 %v12691_v44, %v6710_v55 }
 0x21a   : > { %v6843_v52 = vadd.f32 %v12691_v44, %v6327_v50  ;;  %v6971_v53 = vadd.f32 %v12691_v44, %v6455_v51  ;;  %v10226_v50 = vld [vmem:[%s12371_s8 + $0x4f0] sm:$0xff] }
 0x21b   : > { %v7610_v12 = vmax.f32 %v7098_v2, 0.0  ;;  %v7738_v13 = vmax.f32 %v7226_v3, 0.0  ;;  %v10290_v51 = vld [vmem:[%s12371_s8 + $0x6f0] sm:$0xff] }
 0x21c   : > { %v7355_v58 = vmax.f32 %v6843_v52, 0.0  ;;  %v7483_v59 = vmax.f32 %v6971_v53, 0.0 }
 0x21e   : > { %v10436_v60 = vpack.c.bf16 %v7355_v58, %v7354_v56  ;;  %v10756_v61 = vpack.c.bf16 %v7483_v59, %v7482_v57  ;;  %v4205_v62 = vpop.f32.mrf.mxu2  ;;  %v4525_v63 = vpop.f32.mrf.mxu3 }
 0x21f   : > { %v6583_v4 = vmul.f32 %v12683_v38, %v4205_v62  ;;  %v6711_v5 = vmul.f32 %v12683_v38, %v4525_v63  ;;  %v3568_v6 = vpop.f32.mrf.mxu0  ;;  %v3888_v7 = vpop.f32.mrf.mxu1 }
 0x220   : > { %11632 = vst [vmem:[%s12445_s1 + $0xa0] sm:$0xff] %v10436_v60   ;;  %v6328_v16 = vmul.f32 %v12683_v38, %v3568_v6  ;;  %v6456_v17 = vmul.f32 %v12683_v38, %v3888_v7 }
 0x221   : > { %11696 = vst [vmem:[%s12445_s1 + $0x2a0] sm:$0xff] %v10756_v61   ;;  %v7099_v10 = vadd.f32 %v12691_v44, %v6583_v4  ;;  %v7227_v11 = vadd.f32 %v12691_v44, %v6711_v5 }
 0x222   : > { %3607 = vmatmul.bf16.gmra.mxu0 %v10097_v0  ;;  %3927 = vmatmul.bf16.gmra.mxu1 %v10161_v1  ;;  %v6844_v24 = vadd.f32 %v12691_v44, %v6328_v16  ;;  %v6972_v25 = vadd.f32 %v12691_v44, %v6456_v17 }
 0x223   : > { %v7611_v14 = vmax.f32 %v7099_v10, 0.0  ;;  %v7739_v15 = vmax.f32 %v7227_v11, 0.0  ;;  %4247 = vmatmul.bf16.gmra.mxu2 %v10225_v8  ;;  %4567 = vmatmul.bf16.gmra.mxu3 %v10289_v9 }
 0x224   : > { %v7356_v33 = vmax.f32 %v6844_v24, 0.0  ;;  %v7484_v34 = vmax.f32 %v6972_v25, 0.0 }
 0x225   : > { %v11076_v18 = vpack.c.bf16 %v7611_v14, %v7610_v12  ;;  %v11396_v19 = vpack.c.bf16 %v7739_v15, %v7738_v13 }
 0x226   : > { %v4208_v20 = vpop.f32.mrf.mxu2  ;;  %v4528_v21 = vpop.f32.mrf.mxu3 }
 0x227   : > { %11760 = vst [vmem:[%s12445_s1 + $0x4a0] sm:$0xff] %v11076_v18   ;;  %v3570_v22 = vpop.f32.mrf.mxu0  ;;  %v3890_v23 = vpop.f32.mrf.mxu1  ;;  %v6584_v31 = vmul.f32 %v12945_v30, %v4208_v20  ;;  %v6712_v32 = vmul.f32 %v12945_v30, %v4528_v21  ;;  %v10099_v18 = vld [vmem:[%s12371_s8 + $0xf8] sm:$0xff] }
 0x228   : > { %11824 = vst [vmem:[%s12445_s1 + $0x6a0] sm:$0xff] %v11396_v19   ;;  %v6329_v26 = vmul.f32 %v12683_v38, %v3570_v22  ;;  %v6457_v27 = vmul.f32 %v12683_v38, %v3890_v23  ;;  %v10163_v19 = vld [vmem:[%s12371_s8 + $0x2f8] sm:$0xff] }
 0x229   : > { %v7100_v42 = vadd.f32 %v12951_v41, %v6584_v31  ;;  %v7228_v43 = vadd.f32 %v12951_v41, %v6712_v32 }
 0x22a   : > { %v6845_v28 = vadd.f32 %v12691_v44, %v6329_v26  ;;  %v6973_v29 = vadd.f32 %v12691_v44, %v6457_v27  ;;  %v10162_v44 = vld [vmem:[%s12371_s8 + $0x2f0] sm:$0xff]  ;;  %v10227_v26 = vld [vmem:[%s12371_s8 + $0x4f8] sm:$0xff] }
 0x22b   : > { %v7612_v54 = vmax.f32 %v7100_v42, 0.0  ;;  %v7740_v55 = vmax.f32 %v7228_v43, 0.0  ;;  %v10291_v27 = vld [vmem:[%s12371_s8 + $0x6f8] sm:$0xff] }
 0x22c   : > { %v7357_v35 = vmax.f32 %v6845_v28, 0.0  ;;  %v7485_v36 = vmax.f32 %v6973_v29, 0.0 }
 0x22e   : > { %v10441_v37 = vpack.c.bf16 %v7357_v35, %v7356_v33  ;;  %v10761_v38 = vpack.c.bf16 %v7485_v36, %v7484_v34  ;;  %v4210_v46 = vpop.f32.mrf.mxu2  ;;  %v4530_v39 = vpop.f32.mrf.mxu3 }
 0x22f   : > { %v6585_v45 = vmul.f32 %v12945_v30, %v4210_v46  ;;  %v6713_v47 = vmul.f32 %v12945_v30, %v4530_v39  ;;  %v3573_v48 = vpop.f32.mrf.mxu0  ;;  %v3893_v49 = vpop.f32.mrf.mxu1 }
 0x230   : > { %11633 = vst [vmem:[%s12445_s1 + $0xa8] sm:$0xff] %v10441_v37   ;;  %v6330_v58 = vmul.f32 %v12945_v30, %v3573_v48  ;;  %v6458_v59 = vmul.f32 %v12945_v30, %v3893_v49 }
 0x231   : > { %11697 = vst [vmem:[%s12445_s1 + $0x2a8] sm:$0xff] %v10761_v38   ;;  %v7101_v52 = vadd.f32 %v12951_v41, %v6585_v45  ;;  %v7229_v53 = vadd.f32 %v12951_v41, %v6713_v47 }
 0x232   : > { %3612 = vmatmul.bf16.gmra.mxu0 %v10098_v40  ;;  %3932 = vmatmul.bf16.gmra.mxu1 %v10162_v44  ;;  %v6846_v2 = vadd.f32 %v12951_v41, %v6330_v58  ;;  %v6974_v3 = vadd.f32 %v12951_v41, %v6458_v59 }
 0x233   : > { %v7613_v56 = vmax.f32 %v7101_v52, 0.0  ;;  %v7741_v57 = vmax.f32 %v7229_v53, 0.0  ;;  %4252 = vmatmul.bf16.gmra.mxu2 %v10226_v50  ;;  %4572 = vmatmul.bf16.gmra.mxu3 %v10290_v51 }
 0x234   : > { %v7358_v10 = vmax.f32 %v6846_v2, 0.0  ;;  %v7486_v11 = vmax.f32 %v6974_v3, 0.0 }
 0x235   : > { %v11081_v60 = vpack.c.bf16 %v7613_v56, %v7612_v54  ;;  %v11401_v61 = vpack.c.bf16 %v7741_v57, %v7740_v55 }
 0x236   : > { %v4213_v62 = vpop.f32.mrf.mxu2  ;;  %v4533_v63 = vpop.f32.mrf.mxu3 }
 0x237   : > { %11761 = vst [vmem:[%s12445_s1 + $0x4a8] sm:$0xff] %v11081_v60   ;;  %v3575_v0 = vpop.f32.mrf.mxu0  ;;  %v3895_v1 = vpop.f32.mrf.mxu1  ;;  %v6586_v8 = vmul.f32 %v12945_v30, %v4213_v62  ;;  %v6714_v9 = vmul.f32 %v12945_v30, %v4533_v63  ;;  %v10100_v60 = vld [vmem:[%s12371_s8 + $0x100] sm:$0xff] }
 0x238   : > { %11825 = vst [vmem:[%s12445_s1 + $0x6a8] sm:$0xff] %v11401_v61   ;;  %v6331_v4 = vmul.f32 %v12945_v30, %v3575_v0  ;;  %v6459_v5 = vmul.f32 %v12945_v30, %v3895_v1  ;;  %v10164_v61 = vld [vmem:[%s12371_s8 + $0x300] sm:$0xff] }
 0x239   : > { %v7102_v20 = vadd.f32 %v12951_v41, %v6586_v8  ;;  %v7230_v21 = vadd.f32 %v12951_v41, %v6714_v9 }
 0x23a   : > { %v6847_v6 = vadd.f32 %v12951_v41, %v6331_v4  ;;  %v6975_v7 = vadd.f32 %v12951_v41, %v6459_v5  ;;  %v10228_v4 = vld [vmem:[%s12371_s8 + $0x500] sm:$0xff] }
 0x23b   : > { %v7614_v31 = vmax.f32 %v7102_v20, 0.0  ;;  %v7742_v32 = vmax.f32 %v7230_v21, 0.0  ;;  %v10292_v5 = vld [vmem:[%s12371_s8 + $0x700] sm:$0xff] }
 0x23c   : > { %v7359_v12 = vmax.f32 %v6847_v6, 0.0  ;;  %v7487_v13 = vmax.f32 %v6975_v7, 0.0 }
 0x23e   : > { %v10446_v14 = vpack.c.bf16 %v7359_v12, %v7358_v10  ;;  %v10766_v15 = vpack.c.bf16 %v7487_v13, %v7486_v11  ;;  %v4215_v16 = vpop.f32.mrf.mxu2  ;;  %v4535_v17 = vpop.f32.mrf.mxu3 }
 0x23f   : > { %v6587_v22 = vmul.f32 %v12945_v30, %v4215_v16  ;;  %v6715_v23 = vmul.f32 %v12945_v30, %v4535_v17  ;;  %v3578_v24 = vpop.f32.mrf.mxu0  ;;  %v3898_v25 = vpop.f32.mrf.mxu1 }
 0x240   : > { %11634 = vst [vmem:[%s12445_s1 + $0xb0] sm:$0xff] %v10446_v14   ;;  %v6332_v35 = vmul.f32 %v12945_v30, %v3578_v24  ;;  %v6460_v36 = vmul.f32 %v12945_v30, %v3898_v25 }
 0x241   : > { %11698 = vst [vmem:[%s12445_s1 + $0x2b0] sm:$0xff] %v10766_v15   ;;  %v7103_v28 = vadd.f32 %v12951_v41, %v6587_v22  ;;  %v7231_v29 = vadd.f32 %v12951_v41, %v6715_v23 }
 0x242   : > { %3617 = vmatmul.bf16.gmra.mxu0 %v10099_v18  ;;  %3937 = vmatmul.bf16.gmra.mxu1 %v10163_v19  ;;  %v6848_v42 = vadd.f32 %v12951_v41, %v6332_v35  ;;  %v6976_v43 = vadd.f32 %v12951_v41, %v6460_v36 }
 0x243   : > { %v7615_v33 = vmax.f32 %v7103_v28, 0.0  ;;  %v7743_v34 = vmax.f32 %v7231_v29, 0.0  ;;  %4257 = vmatmul.bf16.gmra.mxu2 %v10227_v26  ;;  %4577 = vmatmul.bf16.gmra.mxu3 %v10291_v27 }
 0x244   : > { %v7360_v52 = vmax.f32 %v6848_v42, 0.0  ;;  %v7488_v53 = vmax.f32 %v6976_v43, 0.0 }
 0x245   : > { %v11086_v37 = vpack.c.bf16 %v7615_v33, %v7614_v31  ;;  %v11406_v38 = vpack.c.bf16 %v7743_v34, %v7742_v32 }
 0x246   : > { %v4218_v46 = vpop.f32.mrf.mxu2  ;;  %v4538_v39 = vpop.f32.mrf.mxu3 }
 0x247   : > { %11762 = vst [vmem:[%s12445_s1 + $0x4b0] sm:$0xff] %v11086_v37   ;;  %v3580_v40 = vpop.f32.mrf.mxu0  ;;  %v3900_v44 = vpop.f32.mrf.mxu1  ;;  %v6588_v50 = vmul.f32 %v12945_v30, %v4218_v46  ;;  %v6716_v51 = vmul.f32 %v12945_v30, %v4538_v39  ;;  %v10101_v37 = vld [vmem:[%s12371_s8 + $0x108] sm:$0xff] }
 0x248   : > { %11826 = vst [vmem:[%s12445_s1 + $0x6b0] sm:$0xff] %v11406_v38   ;;  %v6333_v45 = vmul.f32 %v12945_v30, %v3580_v40  ;;  %v6461_v47 = vmul.f32 %v12945_v30, %v3900_v44  ;;  %v10165_v38 = vld [vmem:[%s12371_s8 + $0x308] sm:$0xff] }
 0x249   : > { %v7104_v62 = vadd.f32 %v12951_v41, %v6588_v50  ;;  %v7232_v63 = vadd.f32 %v12951_v41, %v6716_v51 }
 0x24a   : > { %v6849_v48 = vadd.f32 %v12951_v41, %v6333_v45  ;;  %v6977_v49 = vadd.f32 %v12951_v41, %v6461_v47  ;;  %v10229_v45 = vld [vmem:[%s12371_s8 + $0x508] sm:$0xff] }
 0x24b   : > { %v7616_v8 = vmax.f32 %v7104_v62, 0.0  ;;  %v7744_v9 = vmax.f32 %v7232_v63, 0.0  ;;  %v10293_v47 = vld [vmem:[%s12371_s8 + $0x708] sm:$0xff] }
 0x24c   : > { %v7361_v54 = vmax.f32 %v6849_v48, 0.0  ;;  %v7489_v55 = vmax.f32 %v6977_v49, 0.0 }
 0x24e   : > { %v10451_v56 = vpack.c.bf16 %v7361_v54, %v7360_v52  ;;  %v10771_v57 = vpack.c.bf16 %v7489_v55, %v7488_v53  ;;  %v4220_v58 = vpop.f32.mrf.mxu2  ;;  %v4540_v59 = vpop.f32.mrf.mxu3 }
 0x24f   : > { %v6589_v0 = vmul.f32 %v12945_v30, %v4220_v58  ;;  %v6717_v1 = vmul.f32 %v12945_v30, %v4540_v59  ;;  %v3583_v2 = vpop.f32.mrf.mxu0  ;;  %v3903_v3 = vpop.f32.mrf.mxu1 }
 0x250   : > { %11635 = vst [vmem:[%s12445_s1 + $0xb8] sm:$0xff] %v10451_v56   ;;  %v6334_v12 = vmul.f32 %v12945_v30, %v3583_v2  ;;  %v6462_v13 = vmul.f32 %v12945_v30, %v3903_v3 }
 0x251   : > { %11699 = vst [vmem:[%s12445_s1 + $0x2b8] sm:$0xff] %v10771_v57   ;;  %v7105_v6 = vadd.f32 %v12951_v41, %v6589_v0  ;;  %v7233_v7 = vadd.f32 %v12951_v41, %v6717_v1 }
 0x252   : > { %3622 = vmatmul.bf16.gmra.mxu0 %v10100_v60  ;;  %3942 = vmatmul.bf16.gmra.mxu1 %v10164_v61  ;;  %v6850_v20 = vadd.f32 %v12951_v41, %v6334_v12  ;;  %v6978_v21 = vadd.f32 %v12951_v41, %v6462_v13 }
 0x253   : > { %v7617_v10 = vmax.f32 %v7105_v6, 0.0  ;;  %v7745_v11 = vmax.f32 %v7233_v7, 0.0  ;;  %4262 = vmatmul.bf16.gmra.mxu2 %v10228_v4  ;;  %4582 = vmatmul.bf16.gmra.mxu3 %v10292_v5 }
 0x254   : > { %v7362_v28 = vmax.f32 %v6850_v20, 0.0  ;;  %v7490_v29 = vmax.f32 %v6978_v21, 0.0 }
 0x255   : > { %v11091_v14 = vpack.c.bf16 %v7617_v10, %v7616_v8  ;;  %v11411_v15 = vpack.c.bf16 %v7745_v11, %v7744_v9 }
 0x256   : > { %v4223_v16 = vpop.f32.mrf.mxu2  ;;  %v4543_v17 = vpop.f32.mrf.mxu3 }
 0x257   : > { %11763 = vst [vmem:[%s12445_s1 + $0x4b8] sm:$0xff] %v11091_v14   ;;  %v3585_v18 = vpop.f32.mrf.mxu0  ;;  %v3905_v19 = vpop.f32.mrf.mxu1  ;;  %v6590_v26 = vmul.f32 %v12945_v30, %v4223_v16  ;;  %v6718_v27 = vmul.f32 %v12945_v30, %v4543_v17  ;;  %v10102_v14 = vld [vmem:[%s12371_s8 + $0x110] sm:$0xff] }
 0x258   : > { %11827 = vst [vmem:[%s12445_s1 + $0x6b8] sm:$0xff] %v11411_v15   ;;  %v6335_v22 = vmul.f32 %v12945_v30, %v3585_v18  ;;  %v6463_v23 = vmul.f32 %v12945_v30, %v3905_v19  ;;  %v10166_v15 = vld [vmem:[%s12371_s8 + $0x310] sm:$0xff] }
 0x259   : > { %v7106_v46 = vadd.f32 %v12951_v41, %v6590_v26  ;;  %v7234_v39 = vadd.f32 %v12951_v41, %v6718_v27 }
 0x25a   : > { %v6851_v24 = vadd.f32 %v12951_v41, %v6335_v22  ;;  %v6979_v25 = vadd.f32 %v12951_v41, %v6463_v23  ;;  %v10230_v22 = vld [vmem:[%s12371_s8 + $0x510] sm:$0xff] }
 0x25b   : > { %v7618_v50 = vmax.f32 %v7106_v46, 0.0  ;;  %v7746_v51 = vmax.f32 %v7234_v39, 0.0  ;;  %v10294_v23 = vld [vmem:[%s12371_s8 + $0x710] sm:$0xff] }
 0x25c   : > { %v7363_v31 = vmax.f32 %v6851_v24, 0.0  ;;  %v7491_v32 = vmax.f32 %v6979_v25, 0.0 }
 0x25e   : > { %v10456_v33 = vpack.c.bf16 %v7363_v31, %v7362_v28  ;;  %v10776_v34 = vpack.c.bf16 %v7491_v32, %v7490_v29  ;;  %v4225_v35 = vpop.f32.mrf.mxu2  ;;  %v4545_v36 = vpop.f32.mrf.mxu3 }
 0x25f   : > { %v6591_v40 = vmul.f32 %v12945_v30, %v4225_v35  ;;  %v6719_v44 = vmul.f32 %v12945_v30, %v4545_v36  ;;  %v3588_v42 = vpop.f32.mrf.mxu0  ;;  %v3908_v43 = vpop.f32.mrf.mxu1 }
 0x260   : > { %11636 = vst [vmem:[%s12445_s1 + $0xc0] sm:$0xff] %v10456_v33   ;;  %v6336_v54 = vmul.f32 %v12945_v30, %v3588_v42  ;;  %v6464_v55 = vmul.f32 %v12945_v30, %v3908_v43 }
 0x261   : > { %11700 = vst [vmem:[%s12445_s1 + $0x2c0] sm:$0xff] %v10776_v34   ;;  %v7107_v48 = vadd.f32 %v12951_v41, %v6591_v40  ;;  %v7235_v49 = vadd.f32 %v12951_v41, %v6719_v44 }
 0x262   : > { %3627 = vmatmul.bf16.gmra.mxu0 %v10101_v37  ;;  %3947 = vmatmul.bf16.gmra.mxu1 %v10165_v38  ;;  %v6852_v62 = vadd.f32 %v12951_v41, %v6336_v54  ;;  %v6980_v63 = vadd.f32 %v12951_v41, %v6464_v55 }
 0x263   : > { %v7619_v52 = vmax.f32 %v7107_v48, 0.0  ;;  %v7747_v53 = vmax.f32 %v7235_v49, 0.0  ;;  %4267 = vmatmul.bf16.gmra.mxu2 %v10229_v45  ;;  %4587 = vmatmul.bf16.gmra.mxu3 %v10293_v47 }
 0x264   : > { %v7364_v6 = vmax.f32 %v6852_v62, 0.0  ;;  %v7492_v7 = vmax.f32 %v6980_v63, 0.0 }
 0x265   : > { %v11096_v56 = vpack.c.bf16 %v7619_v52, %v7618_v50  ;;  %v11416_v57 = vpack.c.bf16 %v7747_v53, %v7746_v51 }
 0x266   : > { %v4228_v58 = vpop.f32.mrf.mxu2  ;;  %v4548_v59 = vpop.f32.mrf.mxu3 }
 0x267   : > { %11764 = vst [vmem:[%s12445_s1 + $0x4c0] sm:$0xff] %v11096_v56   ;;  %v3590_v60 = vpop.f32.mrf.mxu0  ;;  %v3910_v61 = vpop.f32.mrf.mxu1  ;;  %v6592_v4 = vmul.f32 %v12945_v30, %v4228_v58  ;;  %v6720_v5 = vmul.f32 %v12945_v30, %v4548_v59  ;;  %v10103_v56 = vld [vmem:[%s12371_s8 + $0x118] sm:$0xff] }
 0x268   : > { %11828 = vst [vmem:[%s12445_s1 + $0x6c0] sm:$0xff] %v11416_v57   ;;  %v6337_v0 = vmul.f32 %v12945_v30, %v3590_v60  ;;  %v6465_v1 = vmul.f32 %v12945_v30, %v3910_v61  ;;  %v10167_v57 = vld [vmem:[%s12371_s8 + $0x318] sm:$0xff] }
 0x269   : > { %v7108_v16 = vadd.f32 %v12951_v41, %v6592_v4  ;;  %v7236_v17 = vadd.f32 %v12951_v41, %v6720_v5 }
 0x26a   : > { %v6853_v2 = vadd.f32 %v12951_v41, %v6337_v0  ;;  %v6981_v3 = vadd.f32 %v12951_v41, %v6465_v1  ;;  %v10231_v0 = vld [vmem:[%s12371_s8 + $0x518] sm:$0xff] }
 0x26b   : > { %v7620_v26 = vmax.f32 %v7108_v16, 0.0  ;;  %v7748_v27 = vmax.f32 %v7236_v17, 0.0  ;;  %v10295_v1 = vld [vmem:[%s12371_s8 + $0x718] sm:$0xff] }
 0x26c   : > { %v7365_v8 = vmax.f32 %v6853_v2, 0.0  ;;  %v7493_v9 = vmax.f32 %v6981_v3, 0.0 }
 0x26e   : > { %v10461_v10 = vpack.c.bf16 %v7365_v8, %v7364_v6  ;;  %v10781_v11 = vpack.c.bf16 %v7493_v9, %v7492_v7  ;;  %v4230_v12 = vpop.f32.mrf.mxu2  ;;  %v4550_v13 = vpop.f32.mrf.mxu3 }
 0x26f   : > { %v6593_v18 = vmul.f32 %v12945_v30, %v4230_v12  ;;  %v6721_v19 = vmul.f32 %v12945_v30, %v4550_v13  ;;  %v3593_v20 = vpop.f32.mrf.mxu0  ;;  %v3913_v21 = vpop.f32.mrf.mxu1 }
 0x270   : > { %11637 = vst [vmem:[%s12445_s1 + $0xc8] sm:$0xff] %v10461_v10   ;;  %v6338_v31 = vmul.f32 %v12945_v30, %v3593_v20  ;;  %v6466_v32 = vmul.f32 %v12945_v30, %v3913_v21 }
 0x271   : > { %11701 = vst [vmem:[%s12445_s1 + $0x2c8] sm:$0xff] %v10781_v11   ;;  %v7109_v24 = vadd.f32 %v12951_v41, %v6593_v18  ;;  %v7237_v25 = vadd.f32 %v12951_v41, %v6721_v19 }
 0x272   : > { %3632 = vmatmul.bf16.gmra.mxu0 %v10102_v14  ;;  %3952 = vmatmul.bf16.gmra.mxu1 %v10166_v15  ;;  %v6854_v46 = vadd.f32 %v12951_v41, %v6338_v31  ;;  %v6982_v39 = vadd.f32 %v12951_v41, %v6466_v32 }
 0x273   : > { %v7621_v28 = vmax.f32 %v7109_v24, 0.0  ;;  %v7749_v29 = vmax.f32 %v7237_v25, 0.0  ;;  %4272 = vmatmul.bf16.gmra.mxu2 %v10230_v22  ;;  %4592 = vmatmul.bf16.gmra.mxu3 %v10294_v23 }
 0x274   : > { %v7366_v48 = vmax.f32 %v6854_v46, 0.0  ;;  %v7494_v49 = vmax.f32 %v6982_v39, 0.0 }
 0x275   : > { %v11101_v33 = vpack.c.bf16 %v7621_v28, %v7620_v26  ;;  %v11421_v34 = vpack.c.bf16 %v7749_v29, %v7748_v27 }
 0x276   : > { %v4233_v35 = vpop.f32.mrf.mxu2  ;;  %v4553_v36 = vpop.f32.mrf.mxu3 }
 0x277   : > { %11765 = vst [vmem:[%s12445_s1 + $0x4c8] sm:$0xff] %v11101_v33   ;;  %v3595_v37 = vpop.f32.mrf.mxu0  ;;  %v3915_v38 = vpop.f32.mrf.mxu1  ;;  %v6594_v45 = vmul.f32 %v12945_v30, %v4233_v35  ;;  %v6722_v47 = vmul.f32 %v12945_v30, %v4553_v36  ;;  %v10104_v33 = vld [vmem:[%s12371_s8 + $0x120] sm:$0xff] }
 0x278   : > { %11829 = vst [vmem:[%s12445_s1 + $0x6c8] sm:$0xff] %v11421_v34   ;;  %v6339_v40 = vmul.f32 %v12945_v30, %v3595_v37  ;;  %v6467_v44 = vmul.f32 %v12945_v30, %v3915_v38  ;;  %v10168_v34 = vld [vmem:[%s12371_s8 + $0x320] sm:$0xff] }
 0x279   : > { %v7110_v58 = vadd.f32 %v12951_v41, %v6594_v45  ;;  %v7238_v59 = vadd.f32 %v12951_v41, %v6722_v47 }
 0x27a   : > { %v6855_v42 = vadd.f32 %v12951_v41, %v6339_v40  ;;  %v6983_v43 = vadd.f32 %v12951_v41, %v6467_v44  ;;  %v10232_v40 = vld [vmem:[%s12371_s8 + $0x520] sm:$0xff] }
 0x27b   : > { %v7622_v4 = vmax.f32 %v7110_v58, 0.0  ;;  %v7750_v5 = vmax.f32 %v7238_v59, 0.0  ;;  %v10296_v44 = vld [vmem:[%s12371_s8 + $0x720] sm:$0xff] }
 0x27c   : > { %v7367_v50 = vmax.f32 %v6855_v42, 0.0  ;;  %v7495_v51 = vmax.f32 %v6983_v43, 0.0 }
 0x27e   : > { %v10466_v52 = vpack.c.bf16 %v7367_v50, %v7366_v48  ;;  %v10786_v53 = vpack.c.bf16 %v7495_v51, %v7494_v49  ;;  %v4235_v54 = vpop.f32.mrf.mxu2  ;;  %v4555_v55 = vpop.f32.mrf.mxu3 }
 0x27f   : > { %v6595_v60 = vmul.f32 %v12945_v30, %v4235_v54  ;;  %v6723_v61 = vmul.f32 %v12945_v30, %v4555_v55  ;;  %v3598_v62 = vpop.f32.mrf.mxu0  ;;  %v3918_v63 = vpop.f32.mrf.mxu1 }
 0x280   : > { %11638 = vst [vmem:[%s12445_s1 + $0xd0] sm:$0xff] %v10466_v52   ;;  %v6340_v8 = vmul.f32 %v12945_v30, %v3598_v62  ;;  %v6468_v9 = vmul.f32 %v12945_v30, %v3918_v63 }
 0x281   : > { %11702 = vst [vmem:[%s12445_s1 + $0x2d0] sm:$0xff] %v10786_v53   ;;  %v7111_v2 = vadd.f32 %v12951_v41, %v6595_v60  ;;  %v7239_v3 = vadd.f32 %v12951_v41, %v6723_v61 }
 0x282   : > { %3637 = vmatmul.bf16.gmra.mxu0 %v10103_v56  ;;  %3957 = vmatmul.bf16.gmra.mxu1 %v10167_v57  ;;  %v6856_v16 = vadd.f32 %v12951_v41, %v6340_v8  ;;  %v6984_v17 = vadd.f32 %v12951_v41, %v6468_v9 }
 0x283   : > { %v7623_v6 = vmax.f32 %v7111_v2, 0.0  ;;  %v7751_v7 = vmax.f32 %v7239_v3, 0.0  ;;  %4277 = vmatmul.bf16.gmra.mxu2 %v10231_v0  ;;  %4597 = vmatmul.bf16.gmra.mxu3 %v10295_v1 }
 0x284   : > { %v7368_v24 = vmax.f32 %v6856_v16, 0.0  ;;  %v7496_v25 = vmax.f32 %v6984_v17, 0.0 }
 0x285   : > { %v11106_v10 = vpack.c.bf16 %v7623_v6, %v7622_v4  ;;  %v11426_v11 = vpack.c.bf16 %v7751_v7, %v7750_v5 }
 0x286   : > { %v4238_v12 = vpop.f32.mrf.mxu2  ;;  %v4558_v13 = vpop.f32.mrf.mxu3 }
 0x287   : > { %11766 = vst [vmem:[%s12445_s1 + $0x4d0] sm:$0xff] %v11106_v10   ;;  %v3600_v14 = vpop.f32.mrf.mxu0  ;;  %v3920_v15 = vpop.f32.mrf.mxu1  ;;  %v6596_v22 = vmul.f32 %v12945_v30, %v4238_v12  ;;  %v6724_v23 = vmul.f32 %v12945_v30, %v4558_v13  ;;  %v10105_v10 = vld [vmem:[%s12371_s8 + $0x128] sm:$0xff] }
 0x288   : > { %11830 = vst [vmem:[%s12445_s1 + $0x6d0] sm:$0xff] %v11426_v11   ;;  %v6341_v18 = vmul.f32 %v12945_v30, %v3600_v14  ;;  %v6469_v19 = vmul.f32 %v12945_v30, %v3920_v15  ;;  %v10169_v11 = vld [vmem:[%s12371_s8 + $0x328] sm:$0xff] }
 0x289   : > { %v7112_v35 = vadd.f32 %v12951_v41, %v6596_v22  ;;  %v7240_v36 = vadd.f32 %v12951_v41, %v6724_v23 }
 0x28a   : > { %v6857_v20 = vadd.f32 %v12951_v41, %v6341_v18  ;;  %v6985_v21 = vadd.f32 %v12951_v41, %v6469_v19  ;;  %v10233_v18 = vld [vmem:[%s12371_s8 + $0x528] sm:$0xff] }
 0x28b   : > { %v7624_v45 = vmax.f32 %v7112_v35, 0.0  ;;  %v7752_v47 = vmax.f32 %v7240_v36, 0.0  ;;  %v10297_v19 = vld [vmem:[%s12371_s8 + $0x728] sm:$0xff] }
 0x28c   : > { %v7369_v26 = vmax.f32 %v6857_v20, 0.0  ;;  %v7497_v27 = vmax.f32 %v6985_v21, 0.0 }
 0x28e   : > { %v10471_v28 = vpack.c.bf16 %v7369_v26, %v7368_v24  ;;  %v10791_v29 = vpack.c.bf16 %v7497_v27, %v7496_v25  ;;  %v4240_v31 = vpop.f32.mrf.mxu2  ;;  %v4560_v32 = vpop.f32.mrf.mxu3 }
 0x28f   : > { %v6597_v37 = vmul.f32 %v12945_v30, %v4240_v31  ;;  %v6725_v38 = vmul.f32 %v12945_v30, %v4560_v32  ;;  %v3603_v46 = vpop.f32.mrf.mxu0  ;;  %v3923_v39 = vpop.f32.mrf.mxu1 }
 0x290   : > { %11639 = vst [vmem:[%s12445_s1 + $0xd8] sm:$0xff] %v10471_v28   ;;  %v6342_v50 = vmul.f32 %v12945_v30, %v3603_v46  ;;  %v6470_v51 = vmul.f32 %v12945_v30, %v3923_v39 }
 0x291   : > { %11703 = vst [vmem:[%s12445_s1 + $0x2d8] sm:$0xff] %v10791_v29   ;;  %v7113_v42 = vadd.f32 %v12951_v41, %v6597_v37  ;;  %v7241_v43 = vadd.f32 %v12951_v41, %v6725_v38 }
 0x292   : > { %3642 = vmatmul.bf16.gmra.mxu0 %v10104_v33  ;;  %3962 = vmatmul.bf16.gmra.mxu1 %v10168_v34  ;;  %v6858_v58 = vadd.f32 %v12951_v41, %v6342_v50  ;;  %v6986_v59 = vadd.f32 %v12951_v41, %v6470_v51 }
 0x293   : > { %v7625_v48 = vmax.f32 %v7113_v42, 0.0  ;;  %v7753_v49 = vmax.f32 %v7241_v43, 0.0  ;;  %4282 = vmatmul.bf16.gmra.mxu2 %v10232_v40  ;;  %4602 = vmatmul.bf16.gmra.mxu3 %v10296_v44 }
 0x294   : > { %v7370_v2 = vmax.f32 %v6858_v58, 0.0  ;;  %v7498_v3 = vmax.f32 %v6986_v59, 0.0 }
 0x295   : > { %v11111_v52 = vpack.c.bf16 %v7625_v48, %v7624_v45  ;;  %v11431_v53 = vpack.c.bf16 %v7753_v49, %v7752_v47 }
 0x296   : > { %v4243_v54 = vpop.f32.mrf.mxu2  ;;  %v4563_v55 = vpop.f32.mrf.mxu3 }
 0x297   : > { %11767 = vst [vmem:[%s12445_s1 + $0x4d8] sm:$0xff] %v11111_v52   ;;  %v3605_v56 = vpop.f32.mrf.mxu0  ;;  %v3925_v57 = vpop.f32.mrf.mxu1  ;;  %v6598_v0 = vmul.f32 %v12945_v30, %v4243_v54  ;;  %v6726_v1 = vmul.f32 %v12945_v30, %v4563_v55  ;;  %v10106_v52 = vld [vmem:[%s12371_s8 + $0x130] sm:$0xff] }
 0x298   : > { %11831 = vst [vmem:[%s12445_s1 + $0x6d8] sm:$0xff] %v11431_v53   ;;  %v6343_v60 = vmul.f32 %v12945_v30, %v3605_v56  ;;  %v6471_v61 = vmul.f32 %v12945_v30, %v3925_v57  ;;  %v10170_v53 = vld [vmem:[%s12371_s8 + $0x330] sm:$0xff] }
 0x299   : > { %v7114_v12 = vadd.f32 %v12951_v41, %v6598_v0  ;;  %v7242_v13 = vadd.f32 %v12951_v41, %v6726_v1 }
 0x29a   : > { %v6859_v62 = vadd.f32 %v12951_v41, %v6343_v60  ;;  %v6987_v63 = vadd.f32 %v12951_v41, %v6471_v61  ;;  %v10234_v60 = vld [vmem:[%s12371_s8 + $0x530] sm:$0xff] }
 0x29b   : > { %v7626_v22 = vmax.f32 %v7114_v12, 0.0  ;;  %v7754_v23 = vmax.f32 %v7242_v13, 0.0  ;;  %v10298_v61 = vld [vmem:[%s12371_s8 + $0x730] sm:$0xff] }
 0x29c   : > { %v7371_v4 = vmax.f32 %v6859_v62, 0.0  ;;  %v7499_v5 = vmax.f32 %v6987_v63, 0.0 }
 0x29e   : > { %v10476_v6 = vpack.c.bf16 %v7371_v4, %v7370_v2  ;;  %v10796_v7 = vpack.c.bf16 %v7499_v5, %v7498_v3  ;;  %v4245_v8 = vpop.f32.mrf.mxu2  ;;  %v4565_v9 = vpop.f32.mrf.mxu3 }
 0x29f   : > { %v6599_v14 = vmul.f32 %v12945_v30, %v4245_v8  ;;  %v6727_v15 = vmul.f32 %v12945_v30, %v4565_v9  ;;  %v3608_v16 = vpop.f32.mrf.mxu0  ;;  %v3928_v17 = vpop.f32.mrf.mxu1 }
 0x2a0   : > { %11640 = vst [vmem:[%s12445_s1 + $0xe0] sm:$0xff] %v10476_v6   ;;  %v6344_v26 = vmul.f32 %v12945_v30, %v3608_v16  ;;  %v6472_v27 = vmul.f32 %v12945_v30, %v3928_v17 }
 0x2a1   : > { %11704 = vst [vmem:[%s12445_s1 + $0x2e0] sm:$0xff] %v10796_v7   ;;  %v7115_v20 = vadd.f32 %v12951_v41, %v6599_v14  ;;  %v7243_v21 = vadd.f32 %v12951_v41, %v6727_v15 }
 0x2a2   : > { %3647 = vmatmul.bf16.gmra.mxu0 %v10105_v10  ;;  %3967 = vmatmul.bf16.gmra.mxu1 %v10169_v11  ;;  %v6860_v35 = vadd.f32 %v12951_v41, %v6344_v26  ;;  %v6988_v36 = vadd.f32 %v12951_v41, %v6472_v27 }
 0x2a3   : > { %v7627_v24 = vmax.f32 %v7115_v20, 0.0  ;;  %v7755_v25 = vmax.f32 %v7243_v21, 0.0  ;;  %4287 = vmatmul.bf16.gmra.mxu2 %v10233_v18  ;;  %4607 = vmatmul.bf16.gmra.mxu3 %v10297_v19 }
 0x2a4   : > { %v7372_v42 = vmax.f32 %v6860_v35, 0.0  ;;  %v7500_v43 = vmax.f32 %v6988_v36, 0.0 }
 0x2a5   : > { %v11116_v28 = vpack.c.bf16 %v7627_v24, %v7626_v22  ;;  %v11436_v29 = vpack.c.bf16 %v7755_v25, %v7754_v23 }
 0x2a6   : > { %v4248_v31 = vpop.f32.mrf.mxu2  ;;  %v4568_v32 = vpop.f32.mrf.mxu3 }
 0x2a7   : > { %11768 = vst [vmem:[%s12445_s1 + $0x4e0] sm:$0xff] %v11116_v28   ;;  %v3610_v33 = vpop.f32.mrf.mxu0  ;;  %v3930_v34 = vpop.f32.mrf.mxu1  ;;  %v6600_v40 = vmul.f32 %v12945_v30, %v4248_v31  ;;  %v6728_v44 = vmul.f32 %v12945_v30, %v4568_v32  ;;  %v10107_v28 = vld [vmem:[%s12371_s8 + $0x138] sm:$0xff] }
 0x2a8   : > { %11832 = vst [vmem:[%s12445_s1 + $0x6e0] sm:$0xff] %v11436_v29   ;;  %v6345_v37 = vmul.f32 %v12945_v30, %v3610_v33  ;;  %v6473_v38 = vmul.f32 %v12945_v30, %v3930_v34  ;;  %v10171_v29 = vld [vmem:[%s12371_s8 + $0x338] sm:$0xff] }
 0x2a9   : > { %v7116_v54 = vadd.f32 %v12951_v41, %v6600_v40  ;;  %v7244_v55 = vadd.f32 %v12951_v41, %v6728_v44 }
 0x2aa   : > { %v6861_v46 = vadd.f32 %v12951_v41, %v6345_v37  ;;  %v6989_v39 = vadd.f32 %v12951_v41, %v6473_v38  ;;  %v10235_v37 = vld [vmem:[%s12371_s8 + $0x538] sm:$0xff] }
 0x2ab   : > { %v7628_v0 = vmax.f32 %v7116_v54, 0.0  ;;  %v7756_v1 = vmax.f32 %v7244_v55, 0.0  ;;  %v10299_v38 = vld [vmem:[%s12371_s8 + $0x738] sm:$0xff] }
 0x2ac   : > { %v7373_v45 = vmax.f32 %v6861_v46, 0.0  ;;  %v7501_v47 = vmax.f32 %v6989_v39, 0.0 }
 0x2ae   : > { %v10481_v48 = vpack.c.bf16 %v7373_v45, %v7372_v42  ;;  %v10801_v49 = vpack.c.bf16 %v7501_v47, %v7500_v43  ;;  %v4250_v50 = vpop.f32.mrf.mxu2  ;;  %v4570_v51 = vpop.f32.mrf.mxu3 }
 0x2af   : > { %v6601_v56 = vmul.f32 %v12945_v30, %v4250_v50  ;;  %v6729_v57 = vmul.f32 %v12945_v30, %v4570_v51  ;;  %v3613_v58 = vpop.f32.mrf.mxu0  ;;  %v3933_v59 = vpop.f32.mrf.mxu1 }
 0x2b0   : > { %11641 = vst [vmem:[%s12445_s1 + $0xe8] sm:$0xff] %v10481_v48   ;;  %v6346_v4 = vmul.f32 %v12945_v30, %v3613_v58  ;;  %v6474_v5 = vmul.f32 %v12945_v30, %v3933_v59 }
 0x2b1   : > { %11705 = vst [vmem:[%s12445_s1 + $0x2e8] sm:$0xff] %v10801_v49   ;;  %v7117_v62 = vadd.f32 %v12951_v41, %v6601_v56  ;;  %v7245_v63 = vadd.f32 %v12951_v41, %v6729_v57 }
 0x2b2   : > { %3652 = vmatmul.bf16.gmra.mxu0 %v10106_v52  ;;  %3972 = vmatmul.bf16.gmra.mxu1 %v10170_v53  ;;  %v6862_v12 = vadd.f32 %v12951_v41, %v6346_v4  ;;  %v6990_v13 = vadd.f32 %v12951_v41, %v6474_v5 }
 0x2b3   : > { %v7629_v2 = vmax.f32 %v7117_v62, 0.0  ;;  %v7757_v3 = vmax.f32 %v7245_v63, 0.0  ;;  %4292 = vmatmul.bf16.gmra.mxu2 %v10234_v60  ;;  %4612 = vmatmul.bf16.gmra.mxu3 %v10298_v61 }
 0x2b4   : > { %v7374_v20 = vmax.f32 %v6862_v12, 0.0  ;;  %v7502_v21 = vmax.f32 %v6990_v13, 0.0 }
 0x2b5   : > { %v11121_v6 = vpack.c.bf16 %v7629_v2, %v7628_v0  ;;  %v11441_v7 = vpack.c.bf16 %v7757_v3, %v7756_v1 }
 0x2b6   : > { %v4253_v8 = vpop.f32.mrf.mxu2  ;;  %v4573_v9 = vpop.f32.mrf.mxu3 }
 0x2b7   : > { %11769 = vst [vmem:[%s12445_s1 + $0x4e8] sm:$0xff] %v11121_v6   ;;  %v3615_v10 = vpop.f32.mrf.mxu0  ;;  %v3935_v11 = vpop.f32.mrf.mxu1  ;;  %v6602_v18 = vmul.f32 %v12945_v30, %v4253_v8  ;;  %v6730_v19 = vmul.f32 %v12945_v30, %v4573_v9  ;;  %v10108_v6 = vld [vmem:[%s12371_s8 + $0x140] sm:$0xff] }
 0x2b8   : > { %11833 = vst [vmem:[%s12445_s1 + $0x6e8] sm:$0xff] %v11441_v7   ;;  %v6347_v14 = vmul.f32 %v12945_v30, %v3615_v10  ;;  %v6475_v15 = vmul.f32 %v12945_v30, %v3935_v11  ;;  %v10172_v7 = vld [vmem:[%s12371_s8 + $0x340] sm:$0xff] }
 0x2b9   : > { %v7118_v31 = vadd.f32 %v12951_v41, %v6602_v18  ;;  %v7246_v32 = vadd.f32 %v12951_v41, %v6730_v19 }
 0x2ba   : > { %v6863_v16 = vadd.f32 %v12951_v41, %v6347_v14  ;;  %v6991_v17 = vadd.f32 %v12951_v41, %v6475_v15  ;;  %v10236_v14 = vld [vmem:[%s12371_s8 + $0x540] sm:$0xff] }
 0x2bb   : > { %v7630_v40 = vmax.f32 %v7118_v31, 0.0  ;;  %v7758_v44 = vmax.f32 %v7246_v32, 0.0  ;;  %v10300_v15 = vld [vmem:[%s12371_s8 + $0x740] sm:$0xff] }
 0x2bc   : > { %v7375_v22 = vmax.f32 %v6863_v16, 0.0  ;;  %v7503_v23 = vmax.f32 %v6991_v17, 0.0 }
 0x2be   : > { %v10486_v24 = vpack.c.bf16 %v7375_v22, %v7374_v20  ;;  %v10806_v25 = vpack.c.bf16 %v7503_v23, %v7502_v21  ;;  %v4255_v26 = vpop.f32.mrf.mxu2  ;;  %v4575_v27 = vpop.f32.mrf.mxu3 }
 0x2bf   : > { %v6603_v33 = vmul.f32 %v12945_v30, %v4255_v26  ;;  %v6731_v34 = vmul.f32 %v12945_v30, %v4575_v27  ;;  %v3618_v35 = vpop.f32.mrf.mxu0  ;;  %v3938_v36 = vpop.f32.mrf.mxu1 }
 0x2c0   : > { %11642 = vst [vmem:[%s12445_s1 + $0xf0] sm:$0xff] %v10486_v24   ;;  %v6348_v45 = vmul.f32 %v12945_v30, %v3618_v35  ;;  %v6476_v47 = vmul.f32 %v12945_v30, %v3938_v36  ;;  %v13213_v35 = vld [vmem:[#allocation9] ss:$0 sm:$0xff] }
 0x2c1   : > { %11706 = vst [vmem:[%s12445_s1 + $0x2f0] sm:$0xff] %v10806_v25   ;;  %v7119_v46 = vadd.f32 %v12951_v41, %v6603_v33  ;;  %v7247_v39 = vadd.f32 %v12951_v41, %v6731_v34 }
 0x2c2   : > { %3657 = vmatmul.bf16.gmra.mxu0 %v10107_v28  ;;  %3977 = vmatmul.bf16.gmra.mxu1 %v10171_v29  ;;  %v6864_v54 = vadd.f32 %v12951_v41, %v6348_v45  ;;  %v6992_v55 = vadd.f32 %v12951_v41, %v6476_v47 }
 0x2c3   : > { %v7631_v42 = vmax.f32 %v7119_v46, 0.0  ;;  %v7759_v43 = vmax.f32 %v7247_v39, 0.0  ;;  %4297 = vmatmul.bf16.gmra.mxu2 %v10235_v37  ;;  %4617 = vmatmul.bf16.gmra.mxu3 %v10299_v38 }
 0x2c4   : > { %v7376_v62 = vmax.f32 %v6864_v54, 0.0  ;;  %v7504_v63 = vmax.f32 %v6992_v55, 0.0 }
 0x2c5   : > { %v11126_v48 = vpack.c.bf16 %v7631_v42, %v7630_v40  ;;  %v11446_v49 = vpack.c.bf16 %v7759_v43, %v7758_v44 }
 0x2c6   : > { %v4258_v50 = vpop.f32.mrf.mxu2  ;;  %v4578_v51 = vpop.f32.mrf.mxu3 }
 0x2c7   : > { %11770 = vst [vmem:[%s12445_s1 + $0x4f0] sm:$0xff] %v11126_v48   ;;  %v3620_v52 = vpop.f32.mrf.mxu0  ;;  %v3940_v53 = vpop.f32.mrf.mxu1  ;;  %v6604_v60 = vmul.f32 %v12945_v30, %v4258_v50  ;;  %v6732_v61 = vmul.f32 %v12945_v30, %v4578_v51  ;;  %v10109_v48 = vld [vmem:[%s12371_s8 + $0x148] sm:$0xff] }
 0x2c8   : > { %11834 = vst [vmem:[%s12445_s1 + $0x6f0] sm:$0xff] %v11446_v49   ;;  %v6349_v56 = vmul.f32 %v12945_v30, %v3620_v52  ;;  %v6477_v57 = vmul.f32 %v12945_v30, %v3940_v53  ;;  %v10173_v49 = vld [vmem:[%s12371_s8 + $0x348] sm:$0xff] }
 0x2c9   : > { %v7120_v8 = vadd.f32 %v12951_v41, %v6604_v60  ;;  %v7248_v9 = vadd.f32 %v12951_v41, %v6732_v61 }
 0x2ca   : > { %v6865_v58 = vadd.f32 %v12951_v41, %v6349_v56  ;;  %v6993_v59 = vadd.f32 %v12951_v41, %v6477_v57  ;;  %v10237_v56 = vld [vmem:[%s12371_s8 + $0x548] sm:$0xff] }
 0x2cb   : > { %v7632_v18 = vmax.f32 %v7120_v8, 0.0  ;;  %v7760_v19 = vmax.f32 %v7248_v9, 0.0  ;;  %v10301_v57 = vld [vmem:[%s12371_s8 + $0x748] sm:$0xff] }
 0x2cc   : > { %v7377_v0 = vmax.f32 %v6865_v58, 0.0  ;;  %v7505_v1 = vmax.f32 %v6993_v59, 0.0 }
 0x2ce   : > { %v10491_v2 = vpack.c.bf16 %v7377_v0, %v7376_v62  ;;  %v10811_v3 = vpack.c.bf16 %v7505_v1, %v7504_v63  ;;  %v4260_v4 = vpop.f32.mrf.mxu2  ;;  %v4580_v5 = vpop.f32.mrf.mxu3 }
 0x2cf   : > { %v6605_v10 = vmul.f32 %v12945_v30, %v4260_v4  ;;  %v6733_v11 = vmul.f32 %v12945_v30, %v4580_v5  ;;  %v3623_v12 = vpop.f32.mrf.mxu0  ;;  %v3943_v13 = vpop.f32.mrf.mxu1  ;;  %v13203_v30 = vld [vmem:[#allocation8] ss:$0 sm:$0xff] }
 0x2d0   : > { %11643 = vst [vmem:[%s12445_s1 + $0xf8] sm:$0xff] %v10491_v2   ;;  %v6350_v22 = vmul.f32 %v13203_v30, %v3623_v12  ;;  %v6478_v23 = vmul.f32 %v13203_v30, %v3943_v13 }
 0x2d1   : > { %11707 = vst [vmem:[%s12445_s1 + $0x2f8] sm:$0xff] %v10811_v3   ;;  %v7121_v16 = vadd.f32 %v12951_v41, %v6605_v10  ;;  %v7249_v17 = vadd.f32 %v12951_v41, %v6733_v11 }
 0x2d2   : > { %3662 = vmatmul.bf16.gmra.mxu0 %v10108_v6  ;;  %3982 = vmatmul.bf16.gmra.mxu1 %v10172_v7  ;;  %v6866_v31 = vadd.f32 %v12951_v41, %v6350_v22  ;;  %v6994_v32 = vadd.f32 %v12951_v41, %v6478_v23 }
 0x2d3   : > { %v7633_v20 = vmax.f32 %v7121_v16, 0.0  ;;  %v7761_v21 = vmax.f32 %v7249_v17, 0.0  ;;  %4302 = vmatmul.bf16.gmra.mxu2 %v10236_v14  ;;  %4622 = vmatmul.bf16.gmra.mxu3 %v10300_v15 }
 0x2d4   : > { %v7378_v39 = vmax.f32 %v6866_v31, 0.0  ;;  %v7506_v40 = vmax.f32 %v6994_v32, 0.0 }
 0x2d5   : > { %v11131_v24 = vpack.c.bf16 %v7633_v20, %v7632_v18  ;;  %v11451_v25 = vpack.c.bf16 %v7761_v21, %v7760_v19 }
 0x2d6   : > { %v4263_v26 = vpop.f32.mrf.mxu2  ;;  %v4583_v27 = vpop.f32.mrf.mxu3 }
 0x2d7   : > { %11771 = vst [vmem:[%s12445_s1 + $0x4f8] sm:$0xff] %v11131_v24   ;;  %v3625_v28 = vpop.f32.mrf.mxu0  ;;  %v3945_v29 = vpop.f32.mrf.mxu1  ;;  %v6606_v38 = vmul.f32 %v13203_v30, %v4263_v26  ;;  %v6734_v46 = vmul.f32 %v13203_v30, %v4583_v27  ;;  %v10110_v24 = vld [vmem:[%s12371_s8 + $0x150] sm:$0xff] }
 0x2d8   : > { %11835 = vst [vmem:[%s12445_s1 + $0x6f8] sm:$0xff] %v11451_v25   ;;  %v6351_v33 = vmul.f32 %v13203_v30, %v3625_v28  ;;  %v6479_v34 = vmul.f32 %v13203_v30, %v3945_v29  ;;  %v10174_v25 = vld [vmem:[%s12371_s8 + $0x350] sm:$0xff] }
 0x2d9   : > { %v7122_v50 = vadd.f32 %v13213_v35, %v6606_v38  ;;  %v7250_v51 = vadd.f32 %v13213_v35, %v6734_v46 }
 0x2da   : > { %v6867_v36 = vadd.f32 %v13213_v35, %v6351_v33  ;;  %v6995_v37 = vadd.f32 %v13213_v35, %v6479_v34  ;;  %v10238_v33 = vld [vmem:[%s12371_s8 + $0x550] sm:$0xff] }
 0x2db   : > { %v7634_v60 = vmax.f32 %v7122_v50, 0.0  ;;  %v7762_v61 = vmax.f32 %v7250_v51, 0.0  ;;  %v10302_v34 = vld [vmem:[%s12371_s8 + $0x750] sm:$0xff] }
 0x2dc   : > { %v7379_v41 = vmax.f32 %v6867_v36, 0.0  ;;  %v7507_v44 = vmax.f32 %v6995_v37, 0.0 }
 0x2de   : > { %v10496_v42 = vpack.c.bf16 %v7379_v41, %v7378_v39  ;;  %v10816_v43 = vpack.c.bf16 %v7507_v44, %v7506_v40  ;;  %v4265_v45 = vpop.f32.mrf.mxu2  ;;  %v4585_v47 = vpop.f32.mrf.mxu3 }
 0x2df   : > { %v6607_v52 = vmul.f32 %v13203_v30, %v4265_v45  ;;  %v6735_v53 = vmul.f32 %v13203_v30, %v4585_v47  ;;  %v3628_v54 = vpop.f32.mrf.mxu0  ;;  %v3948_v55 = vpop.f32.mrf.mxu1 }
 0x2e0   : > { %11644 = vst [vmem:[%s12445_s1 + $0x100] sm:$0xff] %v10496_v42   ;;  %v6352_v0 = vmul.f32 %v13203_v30, %v3628_v54  ;;  %v6480_v1 = vmul.f32 %v13203_v30, %v3948_v55 }
 0x2e1   : > { %11708 = vst [vmem:[%s12445_s1 + $0x300] sm:$0xff] %v10816_v43   ;;  %v7123_v58 = vadd.f32 %v13213_v35, %v6607_v52  ;;  %v7251_v59 = vadd.f32 %v13213_v35, %v6735_v53 }
 0x2e2   : > { %3667 = vmatmul.bf16.gmra.mxu0 %v10109_v48  ;;  %3987 = vmatmul.bf16.gmra.mxu1 %v10173_v49  ;;  %v6868_v8 = vadd.f32 %v13213_v35, %v6352_v0  ;;  %v6996_v9 = vadd.f32 %v13213_v35, %v6480_v1 }
 0x2e3   : > { %v7635_v62 = vmax.f32 %v7123_v58, 0.0  ;;  %v7763_v63 = vmax.f32 %v7251_v59, 0.0  ;;  %4307 = vmatmul.bf16.gmra.mxu2 %v10237_v56  ;;  %4627 = vmatmul.bf16.gmra.mxu3 %v10301_v57 }
 0x2e4   : > { %v7380_v16 = vmax.f32 %v6868_v8, 0.0  ;;  %v7508_v17 = vmax.f32 %v6996_v9, 0.0 }
 0x2e5   : > { %v11136_v2 = vpack.c.bf16 %v7635_v62, %v7634_v60  ;;  %v11456_v3 = vpack.c.bf16 %v7763_v63, %v7762_v61 }
 0x2e6   : > { %v4268_v4 = vpop.f32.mrf.mxu2  ;;  %v4588_v5 = vpop.f32.mrf.mxu3 }
 0x2e7   : > { %11772 = vst [vmem:[%s12445_s1 + $0x500] sm:$0xff] %v11136_v2   ;;  %v3630_v6 = vpop.f32.mrf.mxu0  ;;  %v3950_v7 = vpop.f32.mrf.mxu1  ;;  %v6608_v14 = vmul.f32 %v13203_v30, %v4268_v4  ;;  %v6736_v15 = vmul.f32 %v13203_v30, %v4588_v5  ;;  %v10111_v2 = vld [vmem:[%s12371_s8 + $0x158] sm:$0xff] }
 0x2e8   : > { %11836 = vst [vmem:[%s12445_s1 + $0x700] sm:$0xff] %v11456_v3   ;;  %v6353_v10 = vmul.f32 %v13203_v30, %v3630_v6  ;;  %v6481_v11 = vmul.f32 %v13203_v30, %v3950_v7  ;;  %v10175_v3 = vld [vmem:[%s12371_s8 + $0x358] sm:$0xff] }
 0x2e9   : > { %v7124_v26 = vadd.f32 %v13213_v35, %v6608_v14  ;;  %v7252_v27 = vadd.f32 %v13213_v35, %v6736_v15 }
 0x2ea   : > { %v6869_v12 = vadd.f32 %v13213_v35, %v6353_v10  ;;  %v6997_v13 = vadd.f32 %v13213_v35, %v6481_v11  ;;  %v10239_v10 = vld [vmem:[%s12371_s8 + $0x558] sm:$0xff] }
 0x2eb   : > { %v7636_v38 = vmax.f32 %v7124_v26, 0.0  ;;  %v7764_v46 = vmax.f32 %v7252_v27, 0.0  ;;  %v10303_v11 = vld [vmem:[%s12371_s8 + $0x758] sm:$0xff] }
 0x2ec   : > { %v7381_v18 = vmax.f32 %v6869_v12, 0.0  ;;  %v7509_v19 = vmax.f32 %v6997_v13, 0.0 }
 0x2ee   : > { %v10501_v20 = vpack.c.bf16 %v7381_v18, %v7380_v16  ;;  %v10821_v21 = vpack.c.bf16 %v7509_v19, %v7508_v17  ;;  %v4270_v22 = vpop.f32.mrf.mxu2  ;;  %v4590_v23 = vpop.f32.mrf.mxu3 }
 0x2ef   : > { %v6609_v28 = vmul.f32 %v13203_v30, %v4270_v22  ;;  %v6737_v29 = vmul.f32 %v13203_v30, %v4590_v23  ;;  %v3633_v31 = vpop.f32.mrf.mxu0  ;;  %v3953_v32 = vpop.f32.mrf.mxu1 }
 0x2f0   : > { %11645 = vst [vmem:[%s12445_s1 + $0x108] sm:$0xff] %v10501_v20   ;;  %v6354_v41 = vmul.f32 %v13203_v30, %v3633_v31  ;;  %v6482_v44 = vmul.f32 %v13203_v30, %v3953_v32 }
 0x2f1   : > { %11709 = vst [vmem:[%s12445_s1 + $0x308] sm:$0xff] %v10821_v21   ;;  %v7125_v36 = vadd.f32 %v13213_v35, %v6609_v28  ;;  %v7253_v37 = vadd.f32 %v13213_v35, %v6737_v29 }
 0x2f2   : > { %3672 = vmatmul.bf16.gmra.mxu0 %v10110_v24  ;;  %3992 = vmatmul.bf16.gmra.mxu1 %v10174_v25  ;;  %v6870_v50 = vadd.f32 %v13213_v35, %v6354_v41  ;;  %v6998_v51 = vadd.f32 %v13213_v35, %v6482_v44 }
 0x2f3   : > { %v7637_v39 = vmax.f32 %v7125_v36, 0.0  ;;  %v7765_v40 = vmax.f32 %v7253_v37, 0.0  ;;  %4312 = vmatmul.bf16.gmra.mxu2 %v10238_v33  ;;  %4632 = vmatmul.bf16.gmra.mxu3 %v10302_v34 }
 0x2f4   : > { %v7382_v58 = vmax.f32 %v6870_v50, 0.0  ;;  %v7510_v59 = vmax.f32 %v6998_v51, 0.0 }
 0x2f5   : > { %v11141_v42 = vpack.c.bf16 %v7637_v39, %v7636_v38  ;;  %v11461_v43 = vpack.c.bf16 %v7765_v40, %v7764_v46 }
 0x2f6   : > { %v4273_v45 = vpop.f32.mrf.mxu2  ;;  %v4593_v47 = vpop.f32.mrf.mxu3 }
 0x2f7   : > { %11773 = vst [vmem:[%s12445_s1 + $0x508] sm:$0xff] %v11141_v42   ;;  %v3635_v48 = vpop.f32.mrf.mxu0  ;;  %v3955_v49 = vpop.f32.mrf.mxu1  ;;  %v6610_v56 = vmul.f32 %v13203_v30, %v4273_v45  ;;  %v6738_v57 = vmul.f32 %v13203_v30, %v4593_v47  ;;  %v10112_v42 = vld [vmem:[%s12371_s8 + $0x160] sm:$0xff] }
 0x2f8   : > { %11837 = vst [vmem:[%s12445_s1 + $0x708] sm:$0xff] %v11461_v43   ;;  %v6355_v52 = vmul.f32 %v13203_v30, %v3635_v48  ;;  %v6483_v53 = vmul.f32 %v13203_v30, %v3955_v49  ;;  %v10176_v43 = vld [vmem:[%s12371_s8 + $0x360] sm:$0xff] }
 0x2f9   : > { %v7126_v4 = vadd.f32 %v13213_v35, %v6610_v56  ;;  %v7254_v5 = vadd.f32 %v13213_v35, %v6738_v57 }
 0x2fa   : > { %v6871_v54 = vadd.f32 %v13213_v35, %v6355_v52  ;;  %v6999_v55 = vadd.f32 %v13213_v35, %v6483_v53  ;;  %v10240_v52 = vld [vmem:[%s12371_s8 + $0x560] sm:$0xff] }
 0x2fb   : > { %v7638_v14 = vmax.f32 %v7126_v4, 0.0  ;;  %v7766_v15 = vmax.f32 %v7254_v5, 0.0  ;;  %v10304_v53 = vld [vmem:[%s12371_s8 + $0x760] sm:$0xff] }
 0x2fc   : > { %v7383_v60 = vmax.f32 %v6871_v54, 0.0  ;;  %v7511_v61 = vmax.f32 %v6999_v55, 0.0 }
 0x2fe   : > { %v10506_v62 = vpack.c.bf16 %v7383_v60, %v7382_v58  ;;  %v10826_v63 = vpack.c.bf16 %v7511_v61, %v7510_v59  ;;  %v4275_v0 = vpop.f32.mrf.mxu2  ;;  %v4595_v1 = vpop.f32.mrf.mxu3 }
 0x2ff   : > { %v6611_v6 = vmul.f32 %v13203_v30, %v4275_v0  ;;  %v6739_v7 = vmul.f32 %v13203_v30, %v4595_v1  ;;  %v3638_v8 = vpop.f32.mrf.mxu0  ;;  %v3958_v9 = vpop.f32.mrf.mxu1 }
 0x300   : > { %11646 = vst [vmem:[%s12445_s1 + $0x110] sm:$0xff] %v10506_v62   ;;  %v6356_v18 = vmul.f32 %v13203_v30, %v3638_v8  ;;  %v6484_v19 = vmul.f32 %v13203_v30, %v3958_v9 }
 0x301   : > { %11710 = vst [vmem:[%s12445_s1 + $0x310] sm:$0xff] %v10826_v63   ;;  %v7127_v12 = vadd.f32 %v13213_v35, %v6611_v6  ;;  %v7255_v13 = vadd.f32 %v13213_v35, %v6739_v7 }
 0x302   : > { %3677 = vmatmul.bf16.gmra.mxu0 %v10111_v2  ;;  %3997 = vmatmul.bf16.gmra.mxu1 %v10175_v3  ;;  %v6872_v26 = vadd.f32 %v13213_v35, %v6356_v18  ;;  %v7000_v27 = vadd.f32 %v13213_v35, %v6484_v19 }
 0x303   : > { %v7639_v16 = vmax.f32 %v7127_v12, 0.0  ;;  %v7767_v17 = vmax.f32 %v7255_v13, 0.0  ;;  %4317 = vmatmul.bf16.gmra.mxu2 %v10239_v10  ;;  %4637 = vmatmul.bf16.gmra.mxu3 %v10303_v11 }
 0x304   : > { %v7384_v36 = vmax.f32 %v6872_v26, 0.0  ;;  %v7512_v37 = vmax.f32 %v7000_v27, 0.0 }
 0x305   : > { %v11146_v20 = vpack.c.bf16 %v7639_v16, %v7638_v14  ;;  %v11466_v21 = vpack.c.bf16 %v7767_v17, %v7766_v15 }
 0x306   : > { %v4278_v22 = vpop.f32.mrf.mxu2  ;;  %v4598_v23 = vpop.f32.mrf.mxu3 }
 0x307   : > { %11774 = vst [vmem:[%s12445_s1 + $0x510] sm:$0xff] %v11146_v20   ;;  %v3640_v24 = vpop.f32.mrf.mxu0  ;;  %v3960_v25 = vpop.f32.mrf.mxu1  ;;  %v6612_v33 = vmul.f32 %v13203_v30, %v4278_v22  ;;  %v6740_v34 = vmul.f32 %v13203_v30, %v4598_v23  ;;  %v10113_v20 = vld [vmem:[%s12371_s8 + $0x168] sm:$0xff] }
 0x308   : > { %11838 = vst [vmem:[%s12445_s1 + $0x710] sm:$0xff] %v11466_v21   ;;  %v6357_v28 = vmul.f32 %v13203_v30, %v3640_v24  ;;  %v6485_v29 = vmul.f32 %v13203_v30, %v3960_v25  ;;  %v10177_v21 = vld [vmem:[%s12371_s8 + $0x368] sm:$0xff] }
 0x309   : > { %v7128_v45 = vadd.f32 %v13213_v35, %v6612_v33  ;;  %v7256_v47 = vadd.f32 %v13213_v35, %v6740_v34 }
 0x30a   : > { %v6873_v31 = vadd.f32 %v13213_v35, %v6357_v28  ;;  %v7001_v32 = vadd.f32 %v13213_v35, %v6485_v29  ;;  %v10241_v28 = vld [vmem:[%s12371_s8 + $0x568] sm:$0xff] }
 0x30b   : > { %v7640_v56 = vmax.f32 %v7128_v45, 0.0  ;;  %v7768_v57 = vmax.f32 %v7256_v47, 0.0  ;;  %v10305_v29 = vld [vmem:[%s12371_s8 + $0x768] sm:$0xff] }
 0x30c   : > { %v7385_v38 = vmax.f32 %v6873_v31, 0.0  ;;  %v7513_v46 = vmax.f32 %v7001_v32, 0.0 }
 0x30e   : > { %v10511_v39 = vpack.c.bf16 %v7385_v38, %v7384_v36  ;;  %v10831_v40 = vpack.c.bf16 %v7513_v46, %v7512_v37  ;;  %v4280_v41 = vpop.f32.mrf.mxu2  ;;  %v4600_v44 = vpop.f32.mrf.mxu3 }
 0x30f   : > { %v6613_v48 = vmul.f32 %v13203_v30, %v4280_v41  ;;  %v6741_v49 = vmul.f32 %v13203_v30, %v4600_v44  ;;  %v3643_v50 = vpop.f32.mrf.mxu0  ;;  %v3963_v51 = vpop.f32.mrf.mxu1 }
 0x310   : > { %11647 = vst [vmem:[%s12445_s1 + $0x118] sm:$0xff] %v10511_v39   ;;  %v6358_v60 = vmul.f32 %v13203_v30, %v3643_v50  ;;  %v6486_v61 = vmul.f32 %v13203_v30, %v3963_v51 }
 0x311   : > { %11711 = vst [vmem:[%s12445_s1 + $0x318] sm:$0xff] %v10831_v40   ;;  %v7129_v54 = vadd.f32 %v13213_v35, %v6613_v48  ;;  %v7257_v55 = vadd.f32 %v13213_v35, %v6741_v49 }
 0x312   : > { %3682 = vmatmul.bf16.gmra.mxu0 %v10112_v42  ;;  %4002 = vmatmul.bf16.gmra.mxu1 %v10176_v43  ;;  %v6874_v4 = vadd.f32 %v13213_v35, %v6358_v60  ;;  %v7002_v5 = vadd.f32 %v13213_v35, %v6486_v61 }
 0x313   : > { %v7641_v58 = vmax.f32 %v7129_v54, 0.0  ;;  %v7769_v59 = vmax.f32 %v7257_v55, 0.0  ;;  %4322 = vmatmul.bf16.gmra.mxu2 %v10240_v52  ;;  %4642 = vmatmul.bf16.gmra.mxu3 %v10304_v53 }
 0x314   : > { %v7386_v12 = vmax.f32 %v6874_v4, 0.0  ;;  %v7514_v13 = vmax.f32 %v7002_v5, 0.0 }
 0x315   : > { %v11151_v62 = vpack.c.bf16 %v7641_v58, %v7640_v56  ;;  %v11471_v63 = vpack.c.bf16 %v7769_v59, %v7768_v57 }
 0x316   : > { %v4283_v0 = vpop.f32.mrf.mxu2  ;;  %v4603_v1 = vpop.f32.mrf.mxu3 }
 0x317   : > { %11775 = vst [vmem:[%s12445_s1 + $0x518] sm:$0xff] %v11151_v62   ;;  %v3645_v2 = vpop.f32.mrf.mxu0  ;;  %v3965_v3 = vpop.f32.mrf.mxu1  ;;  %v6614_v10 = vmul.f32 %v13203_v30, %v4283_v0  ;;  %v6742_v11 = vmul.f32 %v13203_v30, %v4603_v1  ;;  %v10114_v62 = vld [vmem:[%s12371_s8 + $0x170] sm:$0xff] }
 0x318   : > { %11839 = vst [vmem:[%s12445_s1 + $0x718] sm:$0xff] %v11471_v63   ;;  %v6359_v6 = vmul.f32 %v13203_v30, %v3645_v2  ;;  %v6487_v7 = vmul.f32 %v13203_v30, %v3965_v3  ;;  %v10178_v63 = vld [vmem:[%s12371_s8 + $0x370] sm:$0xff] }
 0x319   : > { %v7130_v22 = vadd.f32 %v13213_v35, %v6614_v10  ;;  %v7258_v23 = vadd.f32 %v13213_v35, %v6742_v11 }
 0x31a   : > { %v6875_v8 = vadd.f32 %v13213_v35, %v6359_v6  ;;  %v7003_v9 = vadd.f32 %v13213_v35, %v6487_v7  ;;  %v10242_v6 = vld [vmem:[%s12371_s8 + $0x570] sm:$0xff] }
 0x31b   : > { %v7642_v33 = vmax.f32 %v7130_v22, 0.0  ;;  %v7770_v34 = vmax.f32 %v7258_v23, 0.0  ;;  %v10306_v7 = vld [vmem:[%s12371_s8 + $0x770] sm:$0xff] }
 0x31c   : > { %v7387_v14 = vmax.f32 %v6875_v8, 0.0  ;;  %v7515_v15 = vmax.f32 %v7003_v9, 0.0 }
 0x31e   : > { %v10516_v16 = vpack.c.bf16 %v7387_v14, %v7386_v12  ;;  %v10836_v17 = vpack.c.bf16 %v7515_v15, %v7514_v13  ;;  %v4285_v18 = vpop.f32.mrf.mxu2  ;;  %v4605_v19 = vpop.f32.mrf.mxu3 }
 0x31f   : > { %v6615_v24 = vmul.f32 %v13203_v30, %v4285_v18  ;;  %v6743_v25 = vmul.f32 %v13203_v30, %v4605_v19  ;;  %v3648_v26 = vpop.f32.mrf.mxu0  ;;  %v3968_v27 = vpop.f32.mrf.mxu1 }
 0x320   : > { %11648 = vst [vmem:[%s12445_s1 + $0x120] sm:$0xff] %v10516_v16   ;;  %v6360_v38 = vmul.f32 %v13203_v30, %v3648_v26  ;;  %v6488_v46 = vmul.f32 %v13203_v30, %v3968_v27 }
 0x321   : > { %11712 = vst [vmem:[%s12445_s1 + $0x320] sm:$0xff] %v10836_v17   ;;  %v7131_v31 = vadd.f32 %v13213_v35, %v6615_v24  ;;  %v7259_v32 = vadd.f32 %v13213_v35, %v6743_v25 }
 0x322   : > { %3687 = vmatmul.bf16.gmra.mxu0 %v10113_v20  ;;  %4007 = vmatmul.bf16.gmra.mxu1 %v10177_v21  ;;  %v6876_v45 = vadd.f32 %v13213_v35, %v6360_v38  ;;  %v7004_v47 = vadd.f32 %v13213_v35, %v6488_v46 }
 0x323   : > { %v7643_v36 = vmax.f32 %v7131_v31, 0.0  ;;  %v7771_v37 = vmax.f32 %v7259_v32, 0.0  ;;  %4327 = vmatmul.bf16.gmra.mxu2 %v10241_v28  ;;  %4647 = vmatmul.bf16.gmra.mxu3 %v10305_v29 }
 0x324   : > { %v7388_v54 = vmax.f32 %v6876_v45, 0.0  ;;  %v7516_v55 = vmax.f32 %v7004_v47, 0.0 }
 0x325   : > { %v11156_v39 = vpack.c.bf16 %v7643_v36, %v7642_v33  ;;  %v11476_v40 = vpack.c.bf16 %v7771_v37, %v7770_v34 }
 0x326   : > { %v4288_v41 = vpop.f32.mrf.mxu2  ;;  %v4608_v44 = vpop.f32.mrf.mxu3 }
 0x327   : > { %11776 = vst [vmem:[%s12445_s1 + $0x520] sm:$0xff] %v11156_v39   ;;  %v3650_v42 = vpop.f32.mrf.mxu0  ;;  %v3970_v43 = vpop.f32.mrf.mxu1  ;;  %v6616_v52 = vmul.f32 %v13203_v30, %v4288_v41  ;;  %v6744_v53 = vmul.f32 %v13203_v30, %v4608_v44  ;;  %v10115_v39 = vld [vmem:[%s12371_s8 + $0x178] sm:$0xff] }
 0x328   : > { %11840 = vst [vmem:[%s12445_s1 + $0x720] sm:$0xff] %v11476_v40   ;;  %v6361_v48 = vmul.f32 %v13203_v30, %v3650_v42  ;;  %v6489_v49 = vmul.f32 %v13203_v30, %v3970_v43  ;;  %v10179_v40 = vld [vmem:[%s12371_s8 + $0x378] sm:$0xff] }
 0x329   : > { %v7132_v0 = vadd.f32 %v13213_v35, %v6616_v52  ;;  %v7260_v1 = vadd.f32 %v13213_v35, %v6744_v53 }
 0x32a   : > { %v6877_v50 = vadd.f32 %v13213_v35, %v6361_v48  ;;  %v7005_v51 = vadd.f32 %v13213_v35, %v6489_v49  ;;  %v10243_v48 = vld [vmem:[%s12371_s8 + $0x578] sm:$0xff] }
 0x32b   : > { %v7644_v10 = vmax.f32 %v7132_v0, 0.0  ;;  %v7772_v11 = vmax.f32 %v7260_v1, 0.0  ;;  %v10307_v49 = vld [vmem:[%s12371_s8 + $0x778] sm:$0xff] }
 0x32c   : > { %v7389_v56 = vmax.f32 %v6877_v50, 0.0  ;;  %v7517_v57 = vmax.f32 %v7005_v51, 0.0 }
 0x32e   : > { %v10521_v58 = vpack.c.bf16 %v7389_v56, %v7388_v54  ;;  %v10841_v59 = vpack.c.bf16 %v7517_v57, %v7516_v55  ;;  %v4290_v60 = vpop.f32.mrf.mxu2  ;;  %v4610_v61 = vpop.f32.mrf.mxu3 }
 0x32f   : > { %v6617_v2 = vmul.f32 %v13203_v30, %v4290_v60  ;;  %v6745_v3 = vmul.f32 %v13203_v30, %v4610_v61  ;;  %v3653_v4 = vpop.f32.mrf.mxu0  ;;  %v3973_v5 = vpop.f32.mrf.mxu1 }
 0x330   : > { %11649 = vst [vmem:[%s12445_s1 + $0x128] sm:$0xff] %v10521_v58   ;;  %v6362_v14 = vmul.f32 %v13203_v30, %v3653_v4  ;;  %v6490_v15 = vmul.f32 %v13203_v30, %v3973_v5 }
 0x331   : > { %11713 = vst [vmem:[%s12445_s1 + $0x328] sm:$0xff] %v10841_v59   ;;  %v7133_v8 = vadd.f32 %v13213_v35, %v6617_v2  ;;  %v7261_v9 = vadd.f32 %v13213_v35, %v6745_v3 }
 0x332   : > { %3692 = vmatmul.bf16.gmra.mxu0 %v10114_v62  ;;  %4012 = vmatmul.bf16.gmra.mxu1 %v10178_v63  ;;  %v6878_v22 = vadd.f32 %v13213_v35, %v6362_v14  ;;  %v7006_v23 = vadd.f32 %v13213_v35, %v6490_v15 }
 0x333   : > { %v7645_v12 = vmax.f32 %v7133_v8, 0.0  ;;  %v7773_v13 = vmax.f32 %v7261_v9, 0.0  ;;  %4332 = vmatmul.bf16.gmra.mxu2 %v10242_v6  ;;  %4652 = vmatmul.bf16.gmra.mxu3 %v10306_v7 }
 0x334   : > { %v7390_v31 = vmax.f32 %v6878_v22, 0.0  ;;  %v7518_v32 = vmax.f32 %v7006_v23, 0.0 }
 0x335   : > { %v11161_v16 = vpack.c.bf16 %v7645_v12, %v7644_v10  ;;  %v11481_v17 = vpack.c.bf16 %v7773_v13, %v7772_v11 }
 0x336   : > { %v4293_v18 = vpop.f32.mrf.mxu2  ;;  %v4613_v19 = vpop.f32.mrf.mxu3 }
 0x337   : > { %11777 = vst [vmem:[%s12445_s1 + $0x528] sm:$0xff] %v11161_v16   ;;  %v3655_v20 = vpop.f32.mrf.mxu0  ;;  %v3975_v21 = vpop.f32.mrf.mxu1  ;;  %v6618_v28 = vmul.f32 %v13203_v30, %v4293_v18  ;;  %v6746_v29 = vmul.f32 %v13203_v30, %v4613_v19  ;;  %v10116_v16 = vld [vmem:[%s12371_s8 + $0x180] sm:$0xff] }
 0x338   : > { %11841 = vst [vmem:[%s12445_s1 + $0x728] sm:$0xff] %v11481_v17   ;;  %v6363_v24 = vmul.f32 %v13203_v30, %v3655_v20  ;;  %v6491_v25 = vmul.f32 %v13203_v30, %v3975_v21  ;;  %v10180_v17 = vld [vmem:[%s12371_s8 + $0x380] sm:$0xff] }
 0x339   : > { %v7134_v41 = vadd.f32 %v13213_v35, %v6618_v28  ;;  %v7262_v44 = vadd.f32 %v13213_v35, %v6746_v29 }
 0x33a   : > { %v6879_v26 = vadd.f32 %v13213_v35, %v6363_v24  ;;  %v7007_v27 = vadd.f32 %v13213_v35, %v6491_v25  ;;  %v10244_v24 = vld [vmem:[%s12371_s8 + $0x580] sm:$0xff] }
 0x33b   : > { %v7646_v52 = vmax.f32 %v7134_v41, 0.0  ;;  %v7774_v53 = vmax.f32 %v7262_v44, 0.0  ;;  %v10308_v25 = vld [vmem:[%s12371_s8 + $0x780] sm:$0xff] }
 0x33c   : > { %v7391_v33 = vmax.f32 %v6879_v26, 0.0  ;;  %v7519_v34 = vmax.f32 %v7007_v27, 0.0 }
 0x33e   : > { %v10526_v36 = vpack.c.bf16 %v7391_v33, %v7390_v31  ;;  %v10846_v37 = vpack.c.bf16 %v7519_v34, %v7518_v32  ;;  %v4295_v38 = vpop.f32.mrf.mxu2  ;;  %v4615_v46 = vpop.f32.mrf.mxu3 }
 0x33f   : > { %v6619_v42 = vmul.f32 %v13203_v30, %v4295_v38  ;;  %v6747_v43 = vmul.f32 %v13203_v30, %v4615_v46  ;;  %v3658_v45 = vpop.f32.mrf.mxu0  ;;  %v3978_v47 = vpop.f32.mrf.mxu1 }
 0x340   : > { %11650 = vst [vmem:[%s12445_s1 + $0x130] sm:$0xff] %v10526_v36   ;;  %v6364_v56 = vmul.f32 %v13203_v30, %v3658_v45  ;;  %v6492_v57 = vmul.f32 %v13203_v30, %v3978_v47 }
 0x341   : > { %11714 = vst [vmem:[%s12445_s1 + $0x330] sm:$0xff] %v10846_v37   ;;  %v7135_v50 = vadd.f32 %v13213_v35, %v6619_v42  ;;  %v7263_v51 = vadd.f32 %v13213_v35, %v6747_v43 }
 0x342   : > { %3697 = vmatmul.bf16.gmra.mxu0 %v10115_v39  ;;  %4017 = vmatmul.bf16.gmra.mxu1 %v10179_v40  ;;  %v6880_v0 = vadd.f32 %v13213_v35, %v6364_v56  ;;  %v7008_v1 = vadd.f32 %v13213_v35, %v6492_v57 }
 0x343   : > { %v7647_v54 = vmax.f32 %v7135_v50, 0.0  ;;  %v7775_v55 = vmax.f32 %v7263_v51, 0.0  ;;  %4337 = vmatmul.bf16.gmra.mxu2 %v10243_v48  ;;  %4657 = vmatmul.bf16.gmra.mxu3 %v10307_v49 }
 0x344   : > { %v7392_v8 = vmax.f32 %v6880_v0, 0.0  ;;  %v7520_v9 = vmax.f32 %v7008_v1, 0.0 }
 0x345   : > { %v11166_v58 = vpack.c.bf16 %v7647_v54, %v7646_v52  ;;  %v11486_v59 = vpack.c.bf16 %v7775_v55, %v7774_v53 }
 0x346   : > { %v4298_v60 = vpop.f32.mrf.mxu2  ;;  %v4618_v61 = vpop.f32.mrf.mxu3 }
 0x347   : > { %11778 = vst [vmem:[%s12445_s1 + $0x530] sm:$0xff] %v11166_v58   ;;  %v3660_v62 = vpop.f32.mrf.mxu0  ;;  %v3980_v63 = vpop.f32.mrf.mxu1  ;;  %v6620_v6 = vmul.f32 %v13203_v30, %v4298_v60  ;;  %v6748_v7 = vmul.f32 %v13203_v30, %v4618_v61  ;;  %v10117_v58 = vld [vmem:[%s12371_s8 + $0x188] sm:$0xff] }
 0x348   : > { %11842 = vst [vmem:[%s12445_s1 + $0x730] sm:$0xff] %v11486_v59   ;;  %v6365_v2 = vmul.f32 %v13203_v30, %v3660_v62  ;;  %v6493_v3 = vmul.f32 %v13203_v30, %v3980_v63  ;;  %v10181_v59 = vld [vmem:[%s12371_s8 + $0x388] sm:$0xff] }
 0x349   : > { %v7136_v18 = vadd.f32 %v13213_v35, %v6620_v6  ;;  %v7264_v19 = vadd.f32 %v13213_v35, %v6748_v7 }
 0x34a   : > { %v6881_v4 = vadd.f32 %v13213_v35, %v6365_v2  ;;  %v7009_v5 = vadd.f32 %v13213_v35, %v6493_v3  ;;  %v10245_v2 = vld [vmem:[%s12371_s8 + $0x588] sm:$0xff] }
 0x34b   : > { %v7648_v28 = vmax.f32 %v7136_v18, 0.0  ;;  %v7776_v29 = vmax.f32 %v7264_v19, 0.0  ;;  %v10309_v3 = vld [vmem:[%s12371_s8 + $0x788] sm:$0xff] }
 0x34c   : > { %v7393_v10 = vmax.f32 %v6881_v4, 0.0  ;;  %v7521_v11 = vmax.f32 %v7009_v5, 0.0 }
 0x34e   : > { %v10531_v12 = vpack.c.bf16 %v7393_v10, %v7392_v8  ;;  %v10851_v13 = vpack.c.bf16 %v7521_v11, %v7520_v9  ;;  %v4300_v14 = vpop.f32.mrf.mxu2  ;;  %v4620_v15 = vpop.f32.mrf.mxu3 }
 0x34f   : > { %v6621_v20 = vmul.f32 %v13203_v30, %v4300_v14  ;;  %v6749_v21 = vmul.f32 %v13203_v30, %v4620_v15  ;;  %v3663_v22 = vpop.f32.mrf.mxu0  ;;  %v3983_v23 = vpop.f32.mrf.mxu1 }
 0x350   : > { %11651 = vst [vmem:[%s12445_s1 + $0x138] sm:$0xff] %v10531_v12   ;;  %v6366_v33 = vmul.f32 %v13203_v30, %v3663_v22  ;;  %v6494_v34 = vmul.f32 %v13203_v30, %v3983_v23 }
 0x351   : > { %11715 = vst [vmem:[%s12445_s1 + $0x338] sm:$0xff] %v10851_v13   ;;  %v7137_v26 = vadd.f32 %v13213_v35, %v6621_v20  ;;  %v7265_v27 = vadd.f32 %v13213_v35, %v6749_v21 }
 0x352   : > { %3702 = vmatmul.bf16.gmra.mxu0 %v10116_v16  ;;  %4022 = vmatmul.bf16.gmra.mxu1 %v10180_v17  ;;  %v6882_v41 = vadd.f32 %v13213_v35, %v6366_v33  ;;  %v7010_v44 = vadd.f32 %v13213_v35, %v6494_v34 }
 0x353   : > { %v7649_v31 = vmax.f32 %v7137_v26, 0.0  ;;  %v7777_v32 = vmax.f32 %v7265_v27, 0.0  ;;  %4342 = vmatmul.bf16.gmra.mxu2 %v10244_v24  ;;  %4662 = vmatmul.bf16.gmra.mxu3 %v10308_v25 }
 0x354   : > { %v7394_v50 = vmax.f32 %v6882_v41, 0.0  ;;  %v7522_v51 = vmax.f32 %v7010_v44, 0.0 }
 0x355   : > { %v11171_v36 = vpack.c.bf16 %v7649_v31, %v7648_v28  ;;  %v11491_v37 = vpack.c.bf16 %v7777_v32, %v7776_v29 }
 0x356   : > { %v4303_v38 = vpop.f32.mrf.mxu2  ;;  %v4623_v46 = vpop.f32.mrf.mxu3 }
 0x357   : > { %11779 = vst [vmem:[%s12445_s1 + $0x538] sm:$0xff] %v11171_v36   ;;  %v3665_v39 = vpop.f32.mrf.mxu0  ;;  %v3985_v40 = vpop.f32.mrf.mxu1  ;;  %v6622_v48 = vmul.f32 %v13203_v30, %v4303_v38  ;;  %v6750_v49 = vmul.f32 %v13203_v30, %v4623_v46  ;;  %v10118_v36 = vld [vmem:[%s12371_s8 + $0x190] sm:$0xff] }
 0x358   : > { %11843 = vst [vmem:[%s12445_s1 + $0x738] sm:$0xff] %v11491_v37   ;;  %v6367_v42 = vmul.f32 %v13203_v30, %v3665_v39  ;;  %v6495_v43 = vmul.f32 %v13203_v30, %v3985_v40  ;;  %v10182_v37 = vld [vmem:[%s12371_s8 + $0x390] sm:$0xff] }
 0x359   : > { %v7138_v60 = vadd.f32 %v13213_v35, %v6622_v48  ;;  %v7266_v61 = vadd.f32 %v13213_v35, %v6750_v49 }
 0x35a   : > { %v6883_v45 = vadd.f32 %v13213_v35, %v6367_v42  ;;  %v7011_v47 = vadd.f32 %v13213_v35, %v6495_v43  ;;  %v10246_v42 = vld [vmem:[%s12371_s8 + $0x590] sm:$0xff] }
 0x35b   : > { %v7650_v6 = vmax.f32 %v7138_v60, 0.0  ;;  %v7778_v7 = vmax.f32 %v7266_v61, 0.0  ;;  %v10310_v43 = vld [vmem:[%s12371_s8 + $0x790] sm:$0xff] }
 0x35c   : > { %v7395_v52 = vmax.f32 %v6883_v45, 0.0  ;;  %v7523_v53 = vmax.f32 %v7011_v47, 0.0 }
 0x35e   : > { %v10536_v54 = vpack.c.bf16 %v7395_v52, %v7394_v50  ;;  %v10856_v55 = vpack.c.bf16 %v7523_v53, %v7522_v51  ;;  %v4305_v56 = vpop.f32.mrf.mxu2  ;;  %v4625_v57 = vpop.f32.mrf.mxu3 }
 0x35f   : > { %v6623_v62 = vmul.f32 %v13203_v30, %v4305_v56  ;;  %v6751_v63 = vmul.f32 %v13203_v30, %v4625_v57  ;;  %v3668_v0 = vpop.f32.mrf.mxu0  ;;  %v3988_v1 = vpop.f32.mrf.mxu1 }
 0x360   : > { %11652 = vst [vmem:[%s12445_s1 + $0x140] sm:$0xff] %v10536_v54   ;;  %v6368_v10 = vmul.f32 %v13203_v30, %v3668_v0  ;;  %v6496_v11 = vmul.f32 %v13203_v30, %v3988_v1 }
 0x361   : > { %11716 = vst [vmem:[%s12445_s1 + $0x340] sm:$0xff] %v10856_v55   ;;  %v7139_v4 = vadd.f32 %v13213_v35, %v6623_v62  ;;  %v7267_v5 = vadd.f32 %v13213_v35, %v6751_v63 }
 0x362   : > { %3707 = vmatmul.bf16.gmra.mxu0 %v10117_v58  ;;  %4027 = vmatmul.bf16.gmra.mxu1 %v10181_v59  ;;  %v6884_v18 = vadd.f32 %v13213_v35, %v6368_v10  ;;  %v7012_v19 = vadd.f32 %v13213_v35, %v6496_v11 }
 0x363   : > { %v7651_v8 = vmax.f32 %v7139_v4, 0.0  ;;  %v7779_v9 = vmax.f32 %v7267_v5, 0.0  ;;  %4347 = vmatmul.bf16.gmra.mxu2 %v10245_v2  ;;  %4667 = vmatmul.bf16.gmra.mxu3 %v10309_v3 }
 0x364   : > { %v7396_v26 = vmax.f32 %v6884_v18, 0.0  ;;  %v7524_v27 = vmax.f32 %v7012_v19, 0.0 }
 0x365   : > { %v11176_v12 = vpack.c.bf16 %v7651_v8, %v7650_v6  ;;  %v11496_v13 = vpack.c.bf16 %v7779_v9, %v7778_v7 }
 0x366   : > { %v4308_v14 = vpop.f32.mrf.mxu2  ;;  %v4628_v15 = vpop.f32.mrf.mxu3 }
 0x367   : > { %11780 = vst [vmem:[%s12445_s1 + $0x540] sm:$0xff] %v11176_v12   ;;  %v3670_v16 = vpop.f32.mrf.mxu0  ;;  %v3990_v17 = vpop.f32.mrf.mxu1  ;;  %v6624_v24 = vmul.f32 %v13203_v30, %v4308_v14  ;;  %v6752_v25 = vmul.f32 %v13203_v30, %v4628_v15  ;;  %v10119_v12 = vld [vmem:[%s12371_s8 + $0x198] sm:$0xff] }
 0x368   : > { %11844 = vst [vmem:[%s12445_s1 + $0x740] sm:$0xff] %v11496_v13   ;;  %v6369_v20 = vmul.f32 %v13203_v30, %v3670_v16  ;;  %v6497_v21 = vmul.f32 %v13203_v30, %v3990_v17  ;;  %v10183_v13 = vld [vmem:[%s12371_s8 + $0x398] sm:$0xff] }
 0x369   : > { %v7140_v38 = vadd.f32 %v13213_v35, %v6624_v24  ;;  %v7268_v46 = vadd.f32 %v13213_v35, %v6752_v25 }
 0x36a   : > { %v6885_v22 = vadd.f32 %v13213_v35, %v6369_v20  ;;  %v7013_v23 = vadd.f32 %v13213_v35, %v6497_v21  ;;  %v10247_v20 = vld [vmem:[%s12371_s8 + $0x598] sm:$0xff] }
 0x36b   : > { %v7652_v48 = vmax.f32 %v7140_v38, 0.0  ;;  %v7780_v49 = vmax.f32 %v7268_v46, 0.0  ;;  %v10311_v21 = vld [vmem:[%s12371_s8 + $0x798] sm:$0xff] }
 0x36c   : > { %v7397_v28 = vmax.f32 %v6885_v22, 0.0  ;;  %v7525_v29 = vmax.f32 %v7013_v23, 0.0 }
 0x36e   : > { %v10541_v31 = vpack.c.bf16 %v7397_v28, %v7396_v26  ;;  %v10861_v32 = vpack.c.bf16 %v7525_v29, %v7524_v27  ;;  %v4310_v33 = vpop.f32.mrf.mxu2  ;;  %v4630_v34 = vpop.f32.mrf.mxu3 }
 0x36f   : > { %v6625_v39 = vmul.f32 %v13203_v30, %v4310_v33  ;;  %v6753_v40 = vmul.f32 %v13203_v30, %v4630_v34  ;;  %v3673_v41 = vpop.f32.mrf.mxu0  ;;  %v3993_v44 = vpop.f32.mrf.mxu1 }
 0x370   : > { %11653 = vst [vmem:[%s12445_s1 + $0x148] sm:$0xff] %v10541_v31   ;;  %v6370_v52 = vmul.f32 %v13203_v30, %v3673_v41  ;;  %v6498_v53 = vmul.f32 %v13203_v30, %v3993_v44 }
 0x371   : > { %11717 = vst [vmem:[%s12445_s1 + $0x348] sm:$0xff] %v10861_v32   ;;  %v7141_v45 = vadd.f32 %v13213_v35, %v6625_v39  ;;  %v7269_v47 = vadd.f32 %v13213_v35, %v6753_v40 }
 0x372   : > { %3712 = vmatmul.bf16.gmra.mxu0 %v10118_v36  ;;  %4032 = vmatmul.bf16.gmra.mxu1 %v10182_v37  ;;  %v6886_v60 = vadd.f32 %v13213_v35, %v6370_v52  ;;  %v7014_v61 = vadd.f32 %v13213_v35, %v6498_v53  ;;  %v13477_v37 = vld [vmem:[#allocation9] ss:$0 sm:$0xff] }
 0x373   : > { %v7653_v50 = vmax.f32 %v7141_v45, 0.0  ;;  %v7781_v51 = vmax.f32 %v7269_v47, 0.0  ;;  %4352 = vmatmul.bf16.gmra.mxu2 %v10246_v42  ;;  %4672 = vmatmul.bf16.gmra.mxu3 %v10310_v43 }
 0x374   : > { %v7398_v4 = vmax.f32 %v6886_v60, 0.0  ;;  %v7526_v5 = vmax.f32 %v7014_v61, 0.0 }
 0x375   : > { %v11181_v54 = vpack.c.bf16 %v7653_v50, %v7652_v48  ;;  %v11501_v55 = vpack.c.bf16 %v7781_v51, %v7780_v49 }
 0x376   : > { %v4313_v56 = vpop.f32.mrf.mxu2  ;;  %v4633_v57 = vpop.f32.mrf.mxu3 }
 0x377   : > { %11781 = vst [vmem:[%s12445_s1 + $0x548] sm:$0xff] %v11181_v54   ;;  %v3675_v58 = vpop.f32.mrf.mxu0  ;;  %v3995_v59 = vpop.f32.mrf.mxu1  ;;  %v6626_v2 = vmul.f32 %v13203_v30, %v4313_v56  ;;  %v6754_v3 = vmul.f32 %v13203_v30, %v4633_v57  ;;  %v10120_v54 = vld [vmem:[%s12371_s8 + $0x1a0] sm:$0xff] }
 0x378   : > { %11845 = vst [vmem:[%s12445_s1 + $0x748] sm:$0xff] %v11501_v55   ;;  %v6371_v62 = vmul.f32 %v13203_v30, %v3675_v58  ;;  %v6499_v63 = vmul.f32 %v13203_v30, %v3995_v59  ;;  %v10184_v55 = vld [vmem:[%s12371_s8 + $0x3a0] sm:$0xff] }
 0x379   : > { %v7142_v14 = vadd.f32 %v13213_v35, %v6626_v2  ;;  %v7270_v15 = vadd.f32 %v13213_v35, %v6754_v3 }
 0x37a   : > { %v6887_v0 = vadd.f32 %v13213_v35, %v6371_v62  ;;  %v7015_v1 = vadd.f32 %v13213_v35, %v6499_v63  ;;  %v10248_v62 = vld [vmem:[%s12371_s8 + $0x5a0] sm:$0xff] }
 0x37b   : > { %v7654_v24 = vmax.f32 %v7142_v14, 0.0  ;;  %v7782_v25 = vmax.f32 %v7270_v15, 0.0  ;;  %v10312_v63 = vld [vmem:[%s12371_s8 + $0x7a0] sm:$0xff] }
 0x37c   : > { %v7399_v6 = vmax.f32 %v6887_v0, 0.0  ;;  %v7527_v7 = vmax.f32 %v7015_v1, 0.0 }
 0x37e   : > { %v10546_v8 = vpack.c.bf16 %v7399_v6, %v7398_v4  ;;  %v10866_v9 = vpack.c.bf16 %v7527_v7, %v7526_v5  ;;  %v4315_v10 = vpop.f32.mrf.mxu2  ;;  %v4635_v11 = vpop.f32.mrf.mxu3 }
 0x37f   : > { %v6627_v16 = vmul.f32 %v13203_v30, %v4315_v10  ;;  %v6755_v17 = vmul.f32 %v13203_v30, %v4635_v11  ;;  %v3678_v18 = vpop.f32.mrf.mxu0  ;;  %v3998_v19 = vpop.f32.mrf.mxu1  ;;  %v13471_v30 = vld [vmem:[#allocation8] ss:$0 sm:$0xff] }
 0x380   : > { %11654 = vst [vmem:[%s12445_s1 + $0x150] sm:$0xff] %v10546_v8   ;;  %v6372_v28 = vmul.f32 %v13471_v30, %v3678_v18  ;;  %v6500_v29 = vmul.f32 %v13471_v30, %v3998_v19 }
 0x381   : > { %11718 = vst [vmem:[%s12445_s1 + $0x350] sm:$0xff] %v10866_v9   ;;  %v7143_v22 = vadd.f32 %v13213_v35, %v6627_v16  ;;  %v7271_v23 = vadd.f32 %v13213_v35, %v6755_v17 }
 0x382   : > { %3717 = vmatmul.bf16.gmra.mxu0 %v10119_v12  ;;  %4037 = vmatmul.bf16.gmra.mxu1 %v10183_v13  ;;  %v6888_v38 = vadd.f32 %v13477_v37, %v6372_v28  ;;  %v7016_v46 = vadd.f32 %v13477_v37, %v6500_v29 }
 0x383   : > { %v7655_v26 = vmax.f32 %v7143_v22, 0.0  ;;  %v7783_v27 = vmax.f32 %v7271_v23, 0.0  ;;  %4357 = vmatmul.bf16.gmra.mxu2 %v10247_v20  ;;  %4677 = vmatmul.bf16.gmra.mxu3 %v10311_v21 }
 0x384   : > { %v7400_v45 = vmax.f32 %v6888_v38, 0.0  ;;  %v7528_v47 = vmax.f32 %v7016_v46, 0.0 }
 0x385   : > { %v11186_v31 = vpack.c.bf16 %v7655_v26, %v7654_v24  ;;  %v11506_v32 = vpack.c.bf16 %v7783_v27, %v7782_v25 }
 0x386   : > { %v4318_v33 = vpop.f32.mrf.mxu2  ;;  %v4638_v35 = vpop.f32.mrf.mxu3 }
 0x387   : > { %11782 = vst [vmem:[%s12445_s1 + $0x550] sm:$0xff] %v11186_v31   ;;  %v3680_v34 = vpop.f32.mrf.mxu0  ;;  %v4000_v36 = vpop.f32.mrf.mxu1  ;;  %v6628_v42 = vmul.f32 %v13471_v30, %v4318_v33  ;;  %v6756_v43 = vmul.f32 %v13471_v30, %v4638_v35  ;;  %v10121_v31 = vld [vmem:[%s12371_s8 + $0x1a8] sm:$0xff] }
 0x388   : > { %11846 = vst [vmem:[%s12445_s1 + $0x750] sm:$0xff] %v11506_v32   ;;  %v6373_v39 = vmul.f32 %v13471_v30, %v3680_v34  ;;  %v6501_v40 = vmul.f32 %v13471_v30, %v4000_v36  ;;  %v10185_v32 = vld [vmem:[%s12371_s8 + $0x3a8] sm:$0xff] }
 0x389   : > { %v7144_v56 = vadd.f32 %v13477_v37, %v6628_v42  ;;  %v7272_v57 = vadd.f32 %v13477_v37, %v6756_v43 }
 0x38a   : > { %v6889_v41 = vadd.f32 %v13477_v37, %v6373_v39  ;;  %v7017_v44 = vadd.f32 %v13477_v37, %v6501_v40  ;;  %v10249_v39 = vld [vmem:[%s12371_s8 + $0x5a8] sm:$0xff] }
 0x38b   : > { %v7656_v2 = vmax.f32 %v7144_v56, 0.0  ;;  %v7784_v3 = vmax.f32 %v7272_v57, 0.0  ;;  %v10313_v40 = vld [vmem:[%s12371_s8 + $0x7a8] sm:$0xff] }
 0x38c   : > { %v7401_v48 = vmax.f32 %v6889_v41, 0.0  ;;  %v7529_v49 = vmax.f32 %v7017_v44, 0.0 }
 0x38e   : > { %v10551_v50 = vpack.c.bf16 %v7401_v48, %v7400_v45  ;;  %v10871_v51 = vpack.c.bf16 %v7529_v49, %v7528_v47  ;;  %v4320_v52 = vpop.f32.mrf.mxu2  ;;  %v4640_v53 = vpop.f32.mrf.mxu3 }
 0x38f   : > { %v6629_v58 = vmul.f32 %v13471_v30, %v4320_v52  ;;  %v6757_v59 = vmul.f32 %v13471_v30, %v4640_v53  ;;  %v3683_v60 = vpop.f32.mrf.mxu0  ;;  %v4003_v61 = vpop.f32.mrf.mxu1 }
 0x390   : > { %11655 = vst [vmem:[%s12445_s1 + $0x158] sm:$0xff] %v10551_v50   ;;  %v6374_v6 = vmul.f32 %v13471_v30, %v3683_v60  ;;  %v6502_v7 = vmul.f32 %v13471_v30, %v4003_v61 }
 0x391   : > { %11719 = vst [vmem:[%s12445_s1 + $0x358] sm:$0xff] %v10871_v51   ;;  %v7145_v0 = vadd.f32 %v13477_v37, %v6629_v58  ;;  %v7273_v1 = vadd.f32 %v13477_v37, %v6757_v59 }
 0x392   : > { %3722 = vmatmul.bf16.gmra.mxu0 %v10120_v54  ;;  %4042 = vmatmul.bf16.gmra.mxu1 %v10184_v55  ;;  %v6890_v14 = vadd.f32 %v13477_v37, %v6374_v6  ;;  %v7018_v15 = vadd.f32 %v13477_v37, %v6502_v7 }
 0x393   : > { %v7657_v4 = vmax.f32 %v7145_v0, 0.0  ;;  %v7785_v5 = vmax.f32 %v7273_v1, 0.0  ;;  %4362 = vmatmul.bf16.gmra.mxu2 %v10248_v62  ;;  %4682 = vmatmul.bf16.gmra.mxu3 %v10312_v63 }
 0x394   : > { %v7402_v22 = vmax.f32 %v6890_v14, 0.0  ;;  %v7530_v23 = vmax.f32 %v7018_v15, 0.0 }
 0x395   : > { %v11191_v8 = vpack.c.bf16 %v7657_v4, %v7656_v2  ;;  %v11511_v9 = vpack.c.bf16 %v7785_v5, %v7784_v3 }
 0x396   : > { %v4323_v10 = vpop.f32.mrf.mxu2  ;;  %v4643_v11 = vpop.f32.mrf.mxu3 }
 0x397   : > { %11783 = vst [vmem:[%s12445_s1 + $0x558] sm:$0xff] %v11191_v8   ;;  %v3685_v12 = vpop.f32.mrf.mxu0  ;;  %v4005_v13 = vpop.f32.mrf.mxu1  ;;  %v6630_v20 = vmul.f32 %v13471_v30, %v4323_v10  ;;  %v6758_v21 = vmul.f32 %v13471_v30, %v4643_v11  ;;  %v10122_v8 = vld [vmem:[%s12371_s8 + $0x1b0] sm:$0xff] }
 0x398   : > { %11847 = vst [vmem:[%s12445_s1 + $0x758] sm:$0xff] %v11511_v9   ;;  %v6375_v16 = vmul.f32 %v13471_v30, %v3685_v12  ;;  %v6503_v17 = vmul.f32 %v13471_v30, %v4005_v13  ;;  %v10186_v9 = vld [vmem:[%s12371_s8 + $0x3b0] sm:$0xff] }
 0x399   : > { %v7146_v33 = vadd.f32 %v13477_v37, %v6630_v20  ;;  %v7274_v35 = vadd.f32 %v13477_v37, %v6758_v21 }
 0x39a   : > { %v6891_v18 = vadd.f32 %v13477_v37, %v6375_v16  ;;  %v7019_v19 = vadd.f32 %v13477_v37, %v6503_v17  ;;  %v10250_v16 = vld [vmem:[%s12371_s8 + $0x5b0] sm:$0xff] }
 0x39b   : > { %v7658_v42 = vmax.f32 %v7146_v33, 0.0  ;;  %v7786_v43 = vmax.f32 %v7274_v35, 0.0  ;;  %v10314_v17 = vld [vmem:[%s12371_s8 + $0x7b0] sm:$0xff] }
 0x39c   : > { %v7403_v24 = vmax.f32 %v6891_v18, 0.0  ;;  %v7531_v25 = vmax.f32 %v7019_v19, 0.0 }
 0x39e   : > { %v10556_v26 = vpack.c.bf16 %v7403_v24, %v7402_v22  ;;  %v10876_v27 = vpack.c.bf16 %v7531_v25, %v7530_v23  ;;  %v4325_v28 = vpop.f32.mrf.mxu2  ;;  %v4645_v29 = vpop.f32.mrf.mxu3 }
 0x39f   : > { %v6631_v34 = vmul.f32 %v13471_v30, %v4325_v28  ;;  %v6759_v36 = vmul.f32 %v13471_v30, %v4645_v29  ;;  %v3688_v38 = vpop.f32.mrf.mxu0  ;;  %v4008_v46 = vpop.f32.mrf.mxu1 }
 0x3a0   : > { %11656 = vst [vmem:[%s12445_s1 + $0x160] sm:$0xff] %v10556_v26   ;;  %v6376_v48 = vmul.f32 %v13471_v30, %v3688_v38  ;;  %v6504_v49 = vmul.f32 %v13471_v30, %v4008_v46 }
 0x3a1   : > { %11720 = vst [vmem:[%s12445_s1 + $0x360] sm:$0xff] %v10876_v27   ;;  %v7147_v41 = vadd.f32 %v13477_v37, %v6631_v34  ;;  %v7275_v44 = vadd.f32 %v13477_v37, %v6759_v36 }
 0x3a2   : > { %3727 = vmatmul.bf16.gmra.mxu0 %v10121_v31  ;;  %4047 = vmatmul.bf16.gmra.mxu1 %v10185_v32  ;;  %v6892_v56 = vadd.f32 %v13477_v37, %v6376_v48  ;;  %v7020_v57 = vadd.f32 %v13477_v37, %v6504_v49 }
 0x3a3   : > { %v7659_v45 = vmax.f32 %v7147_v41, 0.0  ;;  %v7787_v47 = vmax.f32 %v7275_v44, 0.0  ;;  %4367 = vmatmul.bf16.gmra.mxu2 %v10249_v39  ;;  %4687 = vmatmul.bf16.gmra.mxu3 %v10313_v40 }
 0x3a4   : > { %v7404_v0 = vmax.f32 %v6892_v56, 0.0  ;;  %v7532_v1 = vmax.f32 %v7020_v57, 0.0 }
 0x3a5   : > { %v11196_v50 = vpack.c.bf16 %v7659_v45, %v7658_v42  ;;  %v11516_v51 = vpack.c.bf16 %v7787_v47, %v7786_v43 }
 0x3a6   : > { %v4328_v52 = vpop.f32.mrf.mxu2  ;;  %v4648_v53 = vpop.f32.mrf.mxu3 }
 0x3a7   : > { %11784 = vst [vmem:[%s12445_s1 + $0x560] sm:$0xff] %v11196_v50   ;;  %v3690_v54 = vpop.f32.mrf.mxu0  ;;  %v4010_v55 = vpop.f32.mrf.mxu1  ;;  %v6632_v62 = vmul.f32 %v13471_v30, %v4328_v52  ;;  %v6760_v63 = vmul.f32 %v13471_v30, %v4648_v53  ;;  %v10123_v50 = vld [vmem:[%s12371_s8 + $0x1b8] sm:$0xff] }
 0x3a8   : > { %11848 = vst [vmem:[%s12445_s1 + $0x760] sm:$0xff] %v11516_v51   ;;  %v6377_v58 = vmul.f32 %v13471_v30, %v3690_v54  ;;  %v6505_v59 = vmul.f32 %v13471_v30, %v4010_v55  ;;  %v10187_v51 = vld [vmem:[%s12371_s8 + $0x3b8] sm:$0xff] }
 0x3a9   : > { %v7148_v10 = vadd.f32 %v13477_v37, %v6632_v62  ;;  %v7276_v11 = vadd.f32 %v13477_v37, %v6760_v63 }
 0x3aa   : > { %v6893_v60 = vadd.f32 %v13477_v37, %v6377_v58  ;;  %v7021_v61 = vadd.f32 %v13477_v37, %v6505_v59  ;;  %v10251_v58 = vld [vmem:[%s12371_s8 + $0x5b8] sm:$0xff] }
 0x3ab   : > { %v7660_v20 = vmax.f32 %v7148_v10, 0.0  ;;  %v7788_v21 = vmax.f32 %v7276_v11, 0.0  ;;  %v10315_v59 = vld [vmem:[%s12371_s8 + $0x7b8] sm:$0xff] }
 0x3ac   : > { %v7405_v2 = vmax.f32 %v6893_v60, 0.0  ;;  %v7533_v3 = vmax.f32 %v7021_v61, 0.0 }
 0x3ae   : > { %v10561_v4 = vpack.c.bf16 %v7405_v2, %v7404_v0  ;;  %v10881_v5 = vpack.c.bf16 %v7533_v3, %v7532_v1  ;;  %v4330_v6 = vpop.f32.mrf.mxu2  ;;  %v4650_v7 = vpop.f32.mrf.mxu3 }
 0x3af   : > { %v6633_v12 = vmul.f32 %v13471_v30, %v4330_v6  ;;  %v6761_v13 = vmul.f32 %v13471_v30, %v4650_v7  ;;  %v3693_v14 = vpop.f32.mrf.mxu0  ;;  %v4013_v15 = vpop.f32.mrf.mxu1 }
 0x3b0   : > { %11657 = vst [vmem:[%s12445_s1 + $0x168] sm:$0xff] %v10561_v4   ;;  %v6378_v24 = vmul.f32 %v13471_v30, %v3693_v14  ;;  %v6506_v25 = vmul.f32 %v13471_v30, %v4013_v15 }
 0x3b1   : > { %11721 = vst [vmem:[%s12445_s1 + $0x368] sm:$0xff] %v10881_v5   ;;  %v7149_v18 = vadd.f32 %v13477_v37, %v6633_v12  ;;  %v7277_v19 = vadd.f32 %v13477_v37, %v6761_v13 }
 0x3b2   : > { %3732 = vmatmul.bf16.gmra.mxu0 %v10122_v8  ;;  %4052 = vmatmul.bf16.gmra.mxu1 %v10186_v9  ;;  %v6894_v33 = vadd.f32 %v13477_v37, %v6378_v24  ;;  %v7022_v35 = vadd.f32 %v13477_v37, %v6506_v25 }
 0x3b3   : > { %v7661_v22 = vmax.f32 %v7149_v18, 0.0  ;;  %v7789_v23 = vmax.f32 %v7277_v19, 0.0  ;;  %4372 = vmatmul.bf16.gmra.mxu2 %v10250_v16  ;;  %4692 = vmatmul.bf16.gmra.mxu3 %v10314_v17 }
 0x3b4   : > { %v7406_v41 = vmax.f32 %v6894_v33, 0.0  ;;  %v7534_v44 = vmax.f32 %v7022_v35, 0.0 }
 0x3b5   : > { %v11201_v26 = vpack.c.bf16 %v7661_v22, %v7660_v20  ;;  %v11521_v27 = vpack.c.bf16 %v7789_v23, %v7788_v21 }
 0x3b6   : > { %v4333_v28 = vpop.f32.mrf.mxu2  ;;  %v4653_v29 = vpop.f32.mrf.mxu3 }
 0x3b7   : > { %11785 = vst [vmem:[%s12445_s1 + $0x568] sm:$0xff] %v11201_v26   ;;  %v3695_v31 = vpop.f32.mrf.mxu0  ;;  %v4015_v32 = vpop.f32.mrf.mxu1  ;;  %v6634_v39 = vmul.f32 %v13471_v30, %v4333_v28  ;;  %v6762_v40 = vmul.f32 %v13471_v30, %v4653_v29  ;;  %v10124_v26 = vld [vmem:[%s12371_s8 + $0x1c0] sm:$0xff] }
 0x3b8   : > { %11849 = vst [vmem:[%s12445_s1 + $0x768] sm:$0xff] %v11521_v27   ;;  %v6379_v34 = vmul.f32 %v13471_v30, %v3695_v31  ;;  %v6507_v36 = vmul.f32 %v13471_v30, %v4015_v32  ;;  %v10188_v27 = vld [vmem:[%s12371_s8 + $0x3c0] sm:$0xff] }
 0x3b9   : > { %v7150_v52 = vadd.f32 %v13477_v37, %v6634_v39  ;;  %v7278_v53 = vadd.f32 %v13477_v37, %v6762_v40 }
 0x3ba   : > { %v6895_v38 = vadd.f32 %v13477_v37, %v6379_v34  ;;  %v7023_v46 = vadd.f32 %v13477_v37, %v6507_v36  ;;  %v10252_v34 = vld [vmem:[%s12371_s8 + $0x5c0] sm:$0xff] }
 0x3bb   : > { %v7662_v62 = vmax.f32 %v7150_v52, 0.0  ;;  %v7790_v63 = vmax.f32 %v7278_v53, 0.0  ;;  %v10316_v36 = vld [vmem:[%s12371_s8 + $0x7c0] sm:$0xff] }
 0x3bc   : > { %v7407_v42 = vmax.f32 %v6895_v38, 0.0  ;;  %v7535_v43 = vmax.f32 %v7023_v46, 0.0 }
 0x3be   : > { %v10566_v45 = vpack.c.bf16 %v7407_v42, %v7406_v41  ;;  %v10886_v47 = vpack.c.bf16 %v7535_v43, %v7534_v44  ;;  %v4335_v48 = vpop.f32.mrf.mxu2  ;;  %v4655_v49 = vpop.f32.mrf.mxu3 }
 0x3bf   : > { %v6635_v54 = vmul.f32 %v13471_v30, %v4335_v48  ;;  %v6763_v55 = vmul.f32 %v13471_v30, %v4655_v49  ;;  %v3698_v56 = vpop.f32.mrf.mxu0  ;;  %v4018_v57 = vpop.f32.mrf.mxu1 }
 0x3c0   : > { %11658 = vst [vmem:[%s12445_s1 + $0x170] sm:$0xff] %v10566_v45   ;;  %v6380_v2 = vmul.f32 %v13471_v30, %v3698_v56  ;;  %v6508_v3 = vmul.f32 %v13471_v30, %v4018_v57 }
 0x3c1   : > { %11722 = vst [vmem:[%s12445_s1 + $0x370] sm:$0xff] %v10886_v47   ;;  %v7151_v60 = vadd.f32 %v13477_v37, %v6635_v54  ;;  %v7279_v61 = vadd.f32 %v13477_v37, %v6763_v55 }
 0x3c2   : > { %3737 = vmatmul.bf16.gmra.mxu0 %v10123_v50  ;;  %4057 = vmatmul.bf16.gmra.mxu1 %v10187_v51  ;;  %v6896_v10 = vadd.f32 %v13477_v37, %v6380_v2  ;;  %v7024_v11 = vadd.f32 %v13477_v37, %v6508_v3 }
 0x3c3   : > { %v7663_v0 = vmax.f32 %v7151_v60, 0.0  ;;  %v7791_v1 = vmax.f32 %v7279_v61, 0.0  ;;  %4377 = vmatmul.bf16.gmra.mxu2 %v10251_v58  ;;  %4697 = vmatmul.bf16.gmra.mxu3 %v10315_v59 }
 0x3c4   : > { %v7408_v18 = vmax.f32 %v6896_v10, 0.0  ;;  %v7536_v19 = vmax.f32 %v7024_v11, 0.0 }
 0x3c5   : > { %v11206_v4 = vpack.c.bf16 %v7663_v0, %v7662_v62  ;;  %v11526_v5 = vpack.c.bf16 %v7791_v1, %v7790_v63 }
 0x3c6   : > { %v4338_v6 = vpop.f32.mrf.mxu2  ;;  %v4658_v7 = vpop.f32.mrf.mxu3 }
 0x3c7   : > { %11786 = vst [vmem:[%s12445_s1 + $0x570] sm:$0xff] %v11206_v4   ;;  %v3700_v8 = vpop.f32.mrf.mxu0  ;;  %v4020_v9 = vpop.f32.mrf.mxu1  ;;  %v6636_v16 = vmul.f32 %v13471_v30, %v4338_v6  ;;  %v6764_v17 = vmul.f32 %v13471_v30, %v4658_v7  ;;  %v10125_v4 = vld [vmem:[%s12371_s8 + $0x1c8] sm:$0xff] }
 0x3c8   : > { %11850 = vst [vmem:[%s12445_s1 + $0x770] sm:$0xff] %v11526_v5   ;;  %v6381_v12 = vmul.f32 %v13471_v30, %v3700_v8  ;;  %v6509_v13 = vmul.f32 %v13471_v30, %v4020_v9  ;;  %v10189_v5 = vld [vmem:[%s12371_s8 + $0x3c8] sm:$0xff] }
 0x3c9   : > { %v7152_v28 = vadd.f32 %v13477_v37, %v6636_v16  ;;  %v7280_v29 = vadd.f32 %v13477_v37, %v6764_v17 }
 0x3ca   : > { %v6897_v14 = vadd.f32 %v13477_v37, %v6381_v12  ;;  %v7025_v15 = vadd.f32 %v13477_v37, %v6509_v13  ;;  %v10253_v12 = vld [vmem:[%s12371_s8 + $0x5c8] sm:$0xff] }
 0x3cb   : > { %v7664_v39 = vmax.f32 %v7152_v28, 0.0  ;;  %v7792_v40 = vmax.f32 %v7280_v29, 0.0  ;;  %v10317_v13 = vld [vmem:[%s12371_s8 + $0x7c8] sm:$0xff] }
 0x3cc   : > { %v7409_v20 = vmax.f32 %v6897_v14, 0.0  ;;  %v7537_v21 = vmax.f32 %v7025_v15, 0.0 }
 0x3ce   : > { %v10571_v22 = vpack.c.bf16 %v7409_v20, %v7408_v18  ;;  %v10891_v23 = vpack.c.bf16 %v7537_v21, %v7536_v19  ;;  %v4340_v24 = vpop.f32.mrf.mxu2  ;;  %v4660_v25 = vpop.f32.mrf.mxu3 }
 0x3cf   : > { %v6637_v31 = vmul.f32 %v13471_v30, %v4340_v24  ;;  %v6765_v32 = vmul.f32 %v13471_v30, %v4660_v25  ;;  %v3703_v33 = vpop.f32.mrf.mxu0  ;;  %v4023_v35 = vpop.f32.mrf.mxu1 }
 0x3d0   : > { %11659 = vst [vmem:[%s12445_s1 + $0x178] sm:$0xff] %v10571_v22   ;;  %v6382_v42 = vmul.f32 %v13471_v30, %v3703_v33  ;;  %v6510_v43 = vmul.f32 %v13471_v30, %v4023_v35 }
 0x3d1   : > { %11723 = vst [vmem:[%s12445_s1 + $0x378] sm:$0xff] %v10891_v23   ;;  %v7153_v38 = vadd.f32 %v13477_v37, %v6637_v31  ;;  %v7281_v46 = vadd.f32 %v13477_v37, %v6765_v32 }
 0x3d2   : > { %3742 = vmatmul.bf16.gmra.mxu0 %v10124_v26  ;;  %4062 = vmatmul.bf16.gmra.mxu1 %v10188_v27  ;;  %v6898_v52 = vadd.f32 %v13477_v37, %v6382_v42  ;;  %v7026_v53 = vadd.f32 %v13477_v37, %v6510_v43 }
 0x3d3   : > { %v7665_v41 = vmax.f32 %v7153_v38, 0.0  ;;  %v7793_v44 = vmax.f32 %v7281_v46, 0.0  ;;  %4382 = vmatmul.bf16.gmra.mxu2 %v10252_v34  ;;  %4702 = vmatmul.bf16.gmra.mxu3 %v10316_v36 }
 0x3d4   : > { %v7410_v60 = vmax.f32 %v6898_v52, 0.0  ;;  %v7538_v61 = vmax.f32 %v7026_v53, 0.0 }
 0x3d5   : > { %v11211_v45 = vpack.c.bf16 %v7665_v41, %v7664_v39  ;;  %v11531_v47 = vpack.c.bf16 %v7793_v44, %v7792_v40 }
 0x3d6   : > { %v4343_v48 = vpop.f32.mrf.mxu2  ;;  %v4663_v49 = vpop.f32.mrf.mxu3 }
 0x3d7   : > { %11787 = vst [vmem:[%s12445_s1 + $0x578] sm:$0xff] %v11211_v45   ;;  %v3705_v50 = vpop.f32.mrf.mxu0  ;;  %v4025_v51 = vpop.f32.mrf.mxu1  ;;  %v6638_v58 = vmul.f32 %v13471_v30, %v4343_v48  ;;  %v6766_v59 = vmul.f32 %v13471_v30, %v4663_v49  ;;  %v10126_v45 = vld [vmem:[%s12371_s8 + $0x1d0] sm:$0xff] }
 0x3d8   : > { %11851 = vst [vmem:[%s12445_s1 + $0x778] sm:$0xff] %v11531_v47   ;;  %v6383_v54 = vmul.f32 %v13471_v30, %v3705_v50  ;;  %v6511_v55 = vmul.f32 %v13471_v30, %v4025_v51  ;;  %v10190_v47 = vld [vmem:[%s12371_s8 + $0x3d0] sm:$0xff] }
 0x3d9   : > { %v7154_v6 = vadd.f32 %v13477_v37, %v6638_v58  ;;  %v7282_v7 = vadd.f32 %v13477_v37, %v6766_v59 }
 0x3da   : > { %v6899_v56 = vadd.f32 %v13477_v37, %v6383_v54  ;;  %v7027_v57 = vadd.f32 %v13477_v37, %v6511_v55  ;;  %v10254_v54 = vld [vmem:[%s12371_s8 + $0x5d0] sm:$0xff] }
 0x3db   : > { %v7666_v16 = vmax.f32 %v7154_v6, 0.0  ;;  %v7794_v17 = vmax.f32 %v7282_v7, 0.0  ;;  %v10318_v55 = vld [vmem:[%s12371_s8 + $0x7d0] sm:$0xff] }
 0x3dc   : > { %v7411_v62 = vmax.f32 %v6899_v56, 0.0  ;;  %v7539_v63 = vmax.f32 %v7027_v57, 0.0 }
 0x3de   : > { %v10576_v0 = vpack.c.bf16 %v7411_v62, %v7410_v60  ;;  %v10896_v1 = vpack.c.bf16 %v7539_v63, %v7538_v61  ;;  %v4345_v2 = vpop.f32.mrf.mxu2  ;;  %v4665_v3 = vpop.f32.mrf.mxu3 }
 0x3df   : > { %v6639_v8 = vmul.f32 %v13471_v30, %v4345_v2  ;;  %v6767_v9 = vmul.f32 %v13471_v30, %v4665_v3  ;;  %v3708_v10 = vpop.f32.mrf.mxu0  ;;  %v4028_v11 = vpop.f32.mrf.mxu1 }
 0x3e0   : > { %11660 = vst [vmem:[%s12445_s1 + $0x180] sm:$0xff] %v10576_v0   ;;  %v6384_v20 = vmul.f32 %v13471_v30, %v3708_v10  ;;  %v6512_v21 = vmul.f32 %v13471_v30, %v4028_v11 }
 0x3e1   : > { %11724 = vst [vmem:[%s12445_s1 + $0x380] sm:$0xff] %v10896_v1   ;;  %v7155_v14 = vadd.f32 %v13477_v37, %v6639_v8  ;;  %v7283_v15 = vadd.f32 %v13477_v37, %v6767_v9 }
 0x3e2   : > { %3747 = vmatmul.bf16.gmra.mxu0 %v10125_v4  ;;  %4067 = vmatmul.bf16.gmra.mxu1 %v10189_v5  ;;  %v6900_v28 = vadd.f32 %v13477_v37, %v6384_v20  ;;  %v7028_v29 = vadd.f32 %v13477_v37, %v6512_v21 }
 0x3e3   : > { %v7667_v18 = vmax.f32 %v7155_v14, 0.0  ;;  %v7795_v19 = vmax.f32 %v7283_v15, 0.0  ;;  %4387 = vmatmul.bf16.gmra.mxu2 %v10253_v12  ;;  %4707 = vmatmul.bf16.gmra.mxu3 %v10317_v13 }
 0x3e4   : > { %v7412_v38 = vmax.f32 %v6900_v28, 0.0  ;;  %v7540_v46 = vmax.f32 %v7028_v29, 0.0 }
 0x3e5   : > { %v11216_v22 = vpack.c.bf16 %v7667_v18, %v7666_v16  ;;  %v11536_v23 = vpack.c.bf16 %v7795_v19, %v7794_v17 }
 0x3e6   : > { %v4348_v24 = vpop.f32.mrf.mxu2  ;;  %v4668_v25 = vpop.f32.mrf.mxu3 }
 0x3e7   : > { %11788 = vst [vmem:[%s12445_s1 + $0x580] sm:$0xff] %v11216_v22   ;;  %v3710_v26 = vpop.f32.mrf.mxu0  ;;  %v4030_v27 = vpop.f32.mrf.mxu1  ;;  %v6640_v34 = vmul.f32 %v13471_v30, %v4348_v24  ;;  %v6768_v36 = vmul.f32 %v13471_v30, %v4668_v25  ;;  %v10127_v22 = vld [vmem:[%s12371_s8 + $0x1d8] sm:$0xff] }
 0x3e8   : > { %11852 = vst [vmem:[%s12445_s1 + $0x780] sm:$0xff] %v11536_v23   ;;  %v6385_v31 = vmul.f32 %v13471_v30, %v3710_v26  ;;  %v6513_v32 = vmul.f32 %v13471_v30, %v4030_v27  ;;  %v10191_v23 = vld [vmem:[%s12371_s8 + $0x3d8] sm:$0xff] }
 0x3e9   : > { %v7156_v48 = vadd.f32 %v13477_v37, %v6640_v34  ;;  %v7284_v49 = vadd.f32 %v13477_v37, %v6768_v36 }
 0x3ea   : > { %v6901_v33 = vadd.f32 %v13477_v37, %v6385_v31  ;;  %v7029_v35 = vadd.f32 %v13477_v37, %v6513_v32  ;;  %v10255_v31 = vld [vmem:[%s12371_s8 + $0x5d8] sm:$0xff] }
 0x3eb   : > { %v7668_v58 = vmax.f32 %v7156_v48, 0.0  ;;  %v7796_v59 = vmax.f32 %v7284_v49, 0.0  ;;  %v10319_v32 = vld [vmem:[%s12371_s8 + $0x7d8] sm:$0xff] }
 0x3ec   : > { %v7413_v39 = vmax.f32 %v6901_v33, 0.0  ;;  %v7541_v40 = vmax.f32 %v7029_v35, 0.0 }
 0x3ee   : > { %v10581_v41 = vpack.c.bf16 %v7413_v39, %v7412_v38  ;;  %v10901_v44 = vpack.c.bf16 %v7541_v40, %v7540_v46  ;;  %v4350_v42 = vpop.f32.mrf.mxu2  ;;  %v4670_v43 = vpop.f32.mrf.mxu3 }
 0x3ef   : > { %v6641_v50 = vmul.f32 %v13471_v30, %v4350_v42  ;;  %v6769_v51 = vmul.f32 %v13471_v30, %v4670_v43  ;;  %v3713_v52 = vpop.f32.mrf.mxu0  ;;  %v4033_v53 = vpop.f32.mrf.mxu1 }
 0x3f0   : > { %11661 = vst [vmem:[%s12445_s1 + $0x188] sm:$0xff] %v10581_v41   ;;  %v6386_v62 = vmul.f32 %v13471_v30, %v3713_v52  ;;  %v6514_v63 = vmul.f32 %v13471_v30, %v4033_v53 }
 0x3f1   : > { %11725 = vst [vmem:[%s12445_s1 + $0x388] sm:$0xff] %v10901_v44   ;;  %v7157_v56 = vadd.f32 %v13477_v37, %v6641_v50  ;;  %v7285_v57 = vadd.f32 %v13477_v37, %v6769_v51 }
 0x3f2   : > { %3752 = vmatmul.bf16.gmra.mxu0 %v10126_v45  ;;  %4072 = vmatmul.bf16.gmra.mxu1 %v10190_v47  ;;  %v6902_v6 = vadd.f32 %v13477_v37, %v6386_v62  ;;  %v7030_v7 = vadd.f32 %v13477_v37, %v6514_v63 }
 0x3f3   : > { %v7669_v60 = vmax.f32 %v7157_v56, 0.0  ;;  %v7797_v61 = vmax.f32 %v7285_v57, 0.0  ;;  %4392 = vmatmul.bf16.gmra.mxu2 %v10254_v54  ;;  %4712 = vmatmul.bf16.gmra.mxu3 %v10318_v55 }
 0x3f4   : > { %v7414_v14 = vmax.f32 %v6902_v6, 0.0  ;;  %v7542_v15 = vmax.f32 %v7030_v7, 0.0 }
 0x3f5   : > { %v11221_v0 = vpack.c.bf16 %v7669_v60, %v7668_v58  ;;  %v11541_v1 = vpack.c.bf16 %v7797_v61, %v7796_v59 }
 0x3f6   : > { %v4353_v2 = vpop.f32.mrf.mxu2  ;;  %v4673_v3 = vpop.f32.mrf.mxu3 }
 0x3f7   : > { %11789 = vst [vmem:[%s12445_s1 + $0x588] sm:$0xff] %v11221_v0   ;;  %v3715_v4 = vpop.f32.mrf.mxu0  ;;  %v4035_v5 = vpop.f32.mrf.mxu1  ;;  %v6642_v12 = vmul.f32 %v13471_v30, %v4353_v2  ;;  %v6770_v13 = vmul.f32 %v13471_v30, %v4673_v3  ;;  %v10128_v0 = vld [vmem:[%s12371_s8 + $0x1e0] sm:$0xff] }
 0x3f8   : > { %11853 = vst [vmem:[%s12445_s1 + $0x788] sm:$0xff] %v11541_v1   ;;  %v6387_v8 = vmul.f32 %v13471_v30, %v3715_v4  ;;  %v6515_v9 = vmul.f32 %v13471_v30, %v4035_v5  ;;  %v10192_v1 = vld [vmem:[%s12371_s8 + $0x3e0] sm:$0xff] }
 0x3f9   : > { %v7158_v24 = vadd.f32 %v13477_v37, %v6642_v12  ;;  %v7286_v25 = vadd.f32 %v13477_v37, %v6770_v13 }
 0x3fa   : > { %v6903_v10 = vadd.f32 %v13477_v37, %v6387_v8  ;;  %v7031_v11 = vadd.f32 %v13477_v37, %v6515_v9  ;;  %v10256_v8 = vld [vmem:[%s12371_s8 + $0x5e0] sm:$0xff] }
 0x3fb   : > { %v7670_v34 = vmax.f32 %v7158_v24, 0.0  ;;  %v7798_v36 = vmax.f32 %v7286_v25, 0.0  ;;  %v10320_v9 = vld [vmem:[%s12371_s8 + $0x7e0] sm:$0xff] }
 0x3fc   : > { %v7415_v16 = vmax.f32 %v6903_v10, 0.0  ;;  %v7543_v17 = vmax.f32 %v7031_v11, 0.0 }
 0x3fe   : > { %v10586_v18 = vpack.c.bf16 %v7415_v16, %v7414_v14  ;;  %v10906_v19 = vpack.c.bf16 %v7543_v17, %v7542_v15  ;;  %v4355_v20 = vpop.f32.mrf.mxu2  ;;  %v4675_v21 = vpop.f32.mrf.mxu3 }
 0x3ff   : > { %v6643_v26 = vmul.f32 %v13471_v30, %v4355_v20  ;;  %v6771_v27 = vmul.f32 %v13471_v30, %v4675_v21  ;;  %v3718_v28 = vpop.f32.mrf.mxu0  ;;  %v4038_v29 = vpop.f32.mrf.mxu1 }
 0x400   : > { %11662 = vst [vmem:[%s12445_s1 + $0x190] sm:$0xff] %v10586_v18   ;;  %v6388_v39 = vmul.f32 %v13471_v30, %v3718_v28  ;;  %v6516_v40 = vmul.f32 %v13471_v30, %v4038_v29 }
 0x401   : > { %11726 = vst [vmem:[%s12445_s1 + $0x390] sm:$0xff] %v10906_v19   ;;  %v7159_v33 = vadd.f32 %v13477_v37, %v6643_v26  ;;  %v7287_v35 = vadd.f32 %v13477_v37, %v6771_v27 }
 0x402   : > { %3757 = vmatmul.bf16.gmra.mxu0 %v10127_v22  ;;  %4077 = vmatmul.bf16.gmra.mxu1 %v10191_v23  ;;  %v6904_v48 = vadd.f32 %v13477_v37, %v6388_v39  ;;  %v7032_v49 = vadd.f32 %v13477_v37, %v6516_v40 }
 0x403   : > { %v7671_v38 = vmax.f32 %v7159_v33, 0.0  ;;  %v7799_v46 = vmax.f32 %v7287_v35, 0.0  ;;  %4397 = vmatmul.bf16.gmra.mxu2 %v10255_v31  ;;  %4717 = vmatmul.bf16.gmra.mxu3 %v10319_v32 }
 0x404   : > { %v7416_v56 = vmax.f32 %v6904_v48, 0.0  ;;  %v7544_v57 = vmax.f32 %v7032_v49, 0.0 }
 0x405   : > { %v11226_v41 = vpack.c.bf16 %v7671_v38, %v7670_v34  ;;  %v11546_v44 = vpack.c.bf16 %v7799_v46, %v7798_v36 }
 0x406   : > { %v4358_v42 = vpop.f32.mrf.mxu2  ;;  %v4678_v43 = vpop.f32.mrf.mxu3 }
 0x407   : > { %11790 = vst [vmem:[%s12445_s1 + $0x590] sm:$0xff] %v11226_v41   ;;  %v3720_v45 = vpop.f32.mrf.mxu0  ;;  %v4040_v47 = vpop.f32.mrf.mxu1  ;;  %v6644_v54 = vmul.f32 %v13471_v30, %v4358_v42  ;;  %v6772_v55 = vmul.f32 %v13471_v30, %v4678_v43  ;;  %v10129_v41 = vld [vmem:[%s12371_s8 + $0x1e8] sm:$0xff] }
 0x408   : > { %11854 = vst [vmem:[%s12445_s1 + $0x790] sm:$0xff] %v11546_v44   ;;  %v6389_v50 = vmul.f32 %v13471_v30, %v3720_v45  ;;  %v6517_v51 = vmul.f32 %v13471_v30, %v4040_v47  ;;  %v10193_v44 = vld [vmem:[%s12371_s8 + $0x3e8] sm:$0xff] }
 0x409   : > { %v7160_v2 = vadd.f32 %v13477_v37, %v6644_v54  ;;  %v7288_v3 = vadd.f32 %v13477_v37, %v6772_v55 }
 0x40a   : > { %v6905_v52 = vadd.f32 %v13477_v37, %v6389_v50  ;;  %v7033_v53 = vadd.f32 %v13477_v37, %v6517_v51  ;;  %v10257_v50 = vld [vmem:[%s12371_s8 + $0x5e8] sm:$0xff] }
 0x40b   : > { %v7672_v12 = vmax.f32 %v7160_v2, 0.0  ;;  %v7800_v13 = vmax.f32 %v7288_v3, 0.0  ;;  %v10321_v51 = vld [vmem:[%s12371_s8 + $0x7e8] sm:$0xff] }
 0x40c   : > { %v7417_v58 = vmax.f32 %v6905_v52, 0.0  ;;  %v7545_v59 = vmax.f32 %v7033_v53, 0.0 }
 0x40e   : > { %v10591_v60 = vpack.c.bf16 %v7417_v58, %v7416_v56  ;;  %v10911_v61 = vpack.c.bf16 %v7545_v59, %v7544_v57  ;;  %v4360_v62 = vpop.f32.mrf.mxu2  ;;  %v4680_v63 = vpop.f32.mrf.mxu3 }
 0x40f   : > { %v6645_v4 = vmul.f32 %v13471_v30, %v4360_v62  ;;  %v6773_v5 = vmul.f32 %v13471_v30, %v4680_v63  ;;  %v3723_v6 = vpop.f32.mrf.mxu0  ;;  %v4043_v7 = vpop.f32.mrf.mxu1 }
 0x410   : > { %11663 = vst [vmem:[%s12445_s1 + $0x198] sm:$0xff] %v10591_v60   ;;  %v6390_v16 = vmul.f32 %v13471_v30, %v3723_v6  ;;  %v6518_v17 = vmul.f32 %v13471_v30, %v4043_v7 }
 0x411   : > { %11727 = vst [vmem:[%s12445_s1 + $0x398] sm:$0xff] %v10911_v61   ;;  %v7161_v10 = vadd.f32 %v13477_v37, %v6645_v4  ;;  %v7289_v11 = vadd.f32 %v13477_v37, %v6773_v5 }
 0x412   : > { %3762 = vmatmul.bf16.gmra.mxu0 %v10128_v0  ;;  %4082 = vmatmul.bf16.gmra.mxu1 %v10192_v1  ;;  %v6906_v24 = vadd.f32 %v13477_v37, %v6390_v16  ;;  %v7034_v25 = vadd.f32 %v13477_v37, %v6518_v17 }
 0x413   : > { %v7673_v14 = vmax.f32 %v7161_v10, 0.0  ;;  %v7801_v15 = vmax.f32 %v7289_v11, 0.0  ;;  %4402 = vmatmul.bf16.gmra.mxu2 %v10256_v8  ;;  %4722 = vmatmul.bf16.gmra.mxu3 %v10320_v9 }
 0x414   : > { %v7418_v33 = vmax.f32 %v6906_v24, 0.0  ;;  %v7546_v35 = vmax.f32 %v7034_v25, 0.0 }
 0x415   : > { %v11231_v18 = vpack.c.bf16 %v7673_v14, %v7672_v12  ;;  %v11551_v19 = vpack.c.bf16 %v7801_v15, %v7800_v13 }
 0x416   : > { %v4363_v20 = vpop.f32.mrf.mxu2  ;;  %v4683_v21 = vpop.f32.mrf.mxu3 }
 0x417   : > { %11791 = vst [vmem:[%s12445_s1 + $0x598] sm:$0xff] %v11231_v18   ;;  %v3725_v22 = vpop.f32.mrf.mxu0  ;;  %v4045_v23 = vpop.f32.mrf.mxu1  ;;  %v6646_v31 = vmul.f32 %v13471_v30, %v4363_v20  ;;  %v6774_v32 = vmul.f32 %v13471_v30, %v4683_v21  ;;  %v10130_v18 = vld [vmem:[%s12371_s8 + $0x1f0] sm:$0xff] }
 0x418   : > { %11855 = vst [vmem:[%s12445_s1 + $0x798] sm:$0xff] %v11551_v19   ;;  %v6391_v26 = vmul.f32 %v13471_v30, %v3725_v22  ;;  %v6519_v27 = vmul.f32 %v13471_v30, %v4045_v23  ;;  %v10194_v19 = vld [vmem:[%s12371_s8 + $0x3f0] sm:$0xff] }
 0x419   : > { %v7162_v42 = vadd.f32 %v13477_v37, %v6646_v31  ;;  %v7290_v43 = vadd.f32 %v13477_v37, %v6774_v32 }
 0x41a   : > { %v6907_v28 = vadd.f32 %v13477_v37, %v6391_v26  ;;  %v7035_v29 = vadd.f32 %v13477_v37, %v6519_v27  ;;  %v10258_v26 = vld [vmem:[%s12371_s8 + $0x5f0] sm:$0xff] }
 0x41b   : > { %v7674_v54 = vmax.f32 %v7162_v42, 0.0  ;;  %v7802_v55 = vmax.f32 %v7290_v43, 0.0  ;;  %v10322_v27 = vld [vmem:[%s12371_s8 + $0x7f0] sm:$0xff] }
 0x41c   : > { %v7419_v34 = vmax.f32 %v6907_v28, 0.0  ;;  %v7547_v36 = vmax.f32 %v7035_v29, 0.0 }
 0x41e   : > { %v10596_v38 = vpack.c.bf16 %v7419_v34, %v7418_v33  ;;  %v10916_v46 = vpack.c.bf16 %v7547_v36, %v7546_v35  ;;  %v4365_v39 = vpop.f32.mrf.mxu2  ;;  %v4685_v40 = vpop.f32.mrf.mxu3 }
 0x41f   : > { %v6647_v45 = vmul.f32 %v13471_v30, %v4365_v39  ;;  %v6775_v47 = vmul.f32 %v13471_v30, %v4685_v40  ;;  %v3728_v48 = vpop.f32.mrf.mxu0  ;;  %v4048_v49 = vpop.f32.mrf.mxu1 }
 0x420   : > { %11664 = vst [vmem:[%s12445_s1 + $0x1a0] sm:$0xff] %v10596_v38   ;;  %v6392_v58 = vmul.f32 %v13471_v30, %v3728_v48  ;;  %v6520_v59 = vmul.f32 %v13471_v30, %v4048_v49 }
 0x421   : > { %11728 = vst [vmem:[%s12445_s1 + $0x3a0] sm:$0xff] %v10916_v46   ;;  %v7163_v52 = vadd.f32 %v13477_v37, %v6647_v45  ;;  %v7291_v53 = vadd.f32 %v13477_v37, %v6775_v47 }
 0x422   : > { %3767 = vmatmul.bf16.gmra.mxu0 %v10129_v41  ;;  %4087 = vmatmul.bf16.gmra.mxu1 %v10193_v44  ;;  %v6908_v2 = vadd.f32 %v13477_v37, %v6392_v58  ;;  %v7036_v3 = vadd.f32 %v13477_v37, %v6520_v59  ;;  %v13745_v44 = vld [vmem:[#allocation9] ss:$0 sm:$0xff] }
 0x423   : > { %v7675_v56 = vmax.f32 %v7163_v52, 0.0  ;;  %v7803_v57 = vmax.f32 %v7291_v53, 0.0  ;;  %4407 = vmatmul.bf16.gmra.mxu2 %v10257_v50  ;;  %4727 = vmatmul.bf16.gmra.mxu3 %v10321_v51 }
 0x424   : > { %v7420_v10 = vmax.f32 %v6908_v2, 0.0  ;;  %v7548_v11 = vmax.f32 %v7036_v3, 0.0 }
 0x425   : > { %v11236_v60 = vpack.c.bf16 %v7675_v56, %v7674_v54  ;;  %v11556_v61 = vpack.c.bf16 %v7803_v57, %v7802_v55 }
 0x426   : > { %v4368_v62 = vpop.f32.mrf.mxu2  ;;  %v4688_v63 = vpop.f32.mrf.mxu3 }
 0x427   : > { %11792 = vst [vmem:[%s12445_s1 + $0x5a0] sm:$0xff] %v11236_v60   ;;  %v3730_v0 = vpop.f32.mrf.mxu0  ;;  %v4050_v1 = vpop.f32.mrf.mxu1  ;;  %v6648_v8 = vmul.f32 %v13471_v30, %v4368_v62  ;;  %v6776_v9 = vmul.f32 %v13471_v30, %v4688_v63  ;;  %v10131_v60 = vld [vmem:[%s12371_s8 + $0x1f8] sm:$0xff] }
 0x428   : > { %11856 = vst [vmem:[%s12445_s1 + $0x7a0] sm:$0xff] %v11556_v61   ;;  %v6393_v4 = vmul.f32 %v13471_v30, %v3730_v0  ;;  %v6521_v5 = vmul.f32 %v13471_v30, %v4050_v1  ;;  %v10195_v61 = vld [vmem:[%s12371_s8 + $0x3f8] sm:$0xff] }
 0x429   : > { %v7164_v20 = vadd.f32 %v13477_v37, %v6648_v8  ;;  %v7292_v21 = vadd.f32 %v13477_v37, %v6776_v9 }
 0x42a   : > { %v6909_v6 = vadd.f32 %v13477_v37, %v6393_v4  ;;  %v7037_v7 = vadd.f32 %v13477_v37, %v6521_v5  ;;  %v10259_v4 = vld [vmem:[%s12371_s8 + $0x5f8] sm:$0xff] }
 0x42b   : > { %v7676_v31 = vmax.f32 %v7164_v20, 0.0  ;;  %v7804_v32 = vmax.f32 %v7292_v21, 0.0  ;;  %v10323_v5 = vld [vmem:[%s12371_s8 + $0x7f8] sm:$0xff] }
 0x42c   : > { %v7421_v12 = vmax.f32 %v6909_v6, 0.0  ;;  %v7549_v13 = vmax.f32 %v7037_v7, 0.0 }
 0x42e   : > { %v10601_v14 = vpack.c.bf16 %v7421_v12, %v7420_v10  ;;  %v10921_v15 = vpack.c.bf16 %v7549_v13, %v7548_v11  ;;  %v4370_v16 = vpop.f32.mrf.mxu2  ;;  %v4690_v17 = vpop.f32.mrf.mxu3 }
 0x42f   : > { %v6649_v22 = vmul.f32 %v13471_v30, %v4370_v16  ;;  %v6777_v23 = vmul.f32 %v13471_v30, %v4690_v17  ;;  %v3733_v24 = vpop.f32.mrf.mxu0  ;;  %v4053_v25 = vpop.f32.mrf.mxu1  ;;  %v13739_v30 = vld [vmem:[#allocation8] ss:$0 sm:$0xff] }
 0x430   : > { %11665 = vst [vmem:[%s12445_s1 + $0x1a8] sm:$0xff] %v10601_v14   ;;  %v6394_v34 = vmul.f32 %v13739_v30, %v3733_v24  ;;  %v6522_v36 = vmul.f32 %v13739_v30, %v4053_v25 }
 0x431   : > { %11729 = vst [vmem:[%s12445_s1 + $0x3a8] sm:$0xff] %v10921_v15   ;;  %v7165_v28 = vadd.f32 %v13477_v37, %v6649_v22  ;;  %v7293_v29 = vadd.f32 %v13477_v37, %v6777_v23 }
 0x432   : > { %3772 = vmatmul.bf16.gmra.mxu0 %v10130_v18  ;;  %4092 = vmatmul.bf16.gmra.mxu1 %v10194_v19  ;;  %v6910_v42 = vadd.f32 %v13745_v44, %v6394_v34  ;;  %v7038_v43 = vadd.f32 %v13745_v44, %v6522_v36 }
 0x433   : > { %v7677_v33 = vmax.f32 %v7165_v28, 0.0  ;;  %v7805_v35 = vmax.f32 %v7293_v29, 0.0  ;;  %4412 = vmatmul.bf16.gmra.mxu2 %v10258_v26  ;;  %4732 = vmatmul.bf16.gmra.mxu3 %v10322_v27 }
 0x434   : > { %v7422_v52 = vmax.f32 %v6910_v42, 0.0  ;;  %v7550_v53 = vmax.f32 %v7038_v43, 0.0 }
 0x435   : > { %v11241_v38 = vpack.c.bf16 %v7677_v33, %v7676_v31  ;;  %v11561_v46 = vpack.c.bf16 %v7805_v35, %v7804_v32 }
 0x436   : > { %v4373_v39 = vpop.f32.mrf.mxu2  ;;  %v4693_v37 = vpop.f32.mrf.mxu3 }
 0x437   : > { %11793 = vst [vmem:[%s12445_s1 + $0x5a8] sm:$0xff] %v11241_v38   ;;  %v3735_v40 = vpop.f32.mrf.mxu0  ;;  %v4055_v41 = vpop.f32.mrf.mxu1  ;;  %v6650_v50 = vmul.f32 %v13739_v30, %v4373_v39  ;;  %v6778_v51 = vmul.f32 %v13739_v30, %v4693_v37 }
 0x438   : > { %11857 = vst [vmem:[%s12445_s1 + $0x7a8] sm:$0xff] %v11561_v46   ;;  %v6395_v45 = vmul.f32 %v13739_v30, %v3735_v40  ;;  %v6523_v47 = vmul.f32 %v13739_v30, %v4055_v41 }
 0x439   : > { %v7166_v62 = vadd.f32 %v13745_v44, %v6650_v50  ;;  %v7294_v63 = vadd.f32 %v13745_v44, %v6778_v51 }
 0x43a   : > { %v6911_v48 = vadd.f32 %v13745_v44, %v6395_v45  ;;  %v7039_v49 = vadd.f32 %v13745_v44, %v6523_v47 }
 0x43b   : > { %v7678_v8 = vmax.f32 %v7166_v62, 0.0  ;;  %v7806_v9 = vmax.f32 %v7294_v63, 0.0 }
 0x43c   : > { %v7423_v54 = vmax.f32 %v6911_v48, 0.0  ;;  %v7551_v55 = vmax.f32 %v7039_v49, 0.0 }
 0x43e   : > { %v10606_v56 = vpack.c.bf16 %v7423_v54, %v7422_v52  ;;  %v10926_v57 = vpack.c.bf16 %v7551_v55, %v7550_v53  ;;  %v4375_v58 = vpop.f32.mrf.mxu2  ;;  %v4695_v59 = vpop.f32.mrf.mxu3 }
 0x43f   : > { %v6651_v0 = vmul.f32 %v13739_v30, %v4375_v58  ;;  %v6779_v1 = vmul.f32 %v13739_v30, %v4695_v59  ;;  %v3738_v2 = vpop.f32.mrf.mxu0  ;;  %v4058_v3 = vpop.f32.mrf.mxu1 }
 0x440   : > { %11666 = vst [vmem:[%s12445_s1 + $0x1b0] sm:$0xff] %v10606_v56   ;;  %v6396_v12 = vmul.f32 %v13739_v30, %v3738_v2  ;;  %v6524_v13 = vmul.f32 %v13739_v30, %v4058_v3 }
 0x441   : > { %11730 = vst [vmem:[%s12445_s1 + $0x3b0] sm:$0xff] %v10926_v57   ;;  %v7167_v6 = vadd.f32 %v13745_v44, %v6651_v0  ;;  %v7295_v7 = vadd.f32 %v13745_v44, %v6779_v1 }
 0x442   : > { %3777 = vmatmul.bf16.gmra.mxu0 %v10131_v60  ;;  %4097 = vmatmul.bf16.gmra.mxu1 %v10195_v61  ;;  %v6912_v20 = vadd.f32 %v13745_v44, %v6396_v12  ;;  %v7040_v21 = vadd.f32 %v13745_v44, %v6524_v13 }
 0x443   : > { %v7679_v10 = vmax.f32 %v7167_v6, 0.0  ;;  %v7807_v11 = vmax.f32 %v7295_v7, 0.0  ;;  %4417 = vmatmul.bf16.gmra.mxu2 %v10259_v4  ;;  %4737 = vmatmul.bf16.gmra.mxu3 %v10323_v5 }
 0x444   : > { %v7424_v28 = vmax.f32 %v6912_v20, 0.0  ;;  %v7552_v29 = vmax.f32 %v7040_v21, 0.0 }
 0x445   : > { %v11246_v14 = vpack.c.bf16 %v7679_v10, %v7678_v8  ;;  %v11566_v15 = vpack.c.bf16 %v7807_v11, %v7806_v9 }
 0x446   : > { %v4378_v16 = vpop.f32.mrf.mxu2  ;;  %v4698_v17 = vpop.f32.mrf.mxu3 }
 0x447   : > { %11794 = vst [vmem:[%s12445_s1 + $0x5b0] sm:$0xff] %v11246_v14   ;;  %v3740_v18 = vpop.f32.mrf.mxu0  ;;  %v4060_v19 = vpop.f32.mrf.mxu1  ;;  %v6652_v26 = vmul.f32 %v13739_v30, %v4378_v16  ;;  %v6780_v27 = vmul.f32 %v13739_v30, %v4698_v17 }
 0x448   : > { %11858 = vst [vmem:[%s12445_s1 + $0x7b0] sm:$0xff] %v11566_v15   ;;  %v6397_v22 = vmul.f32 %v13739_v30, %v3740_v18  ;;  %v6525_v23 = vmul.f32 %v13739_v30, %v4060_v19 }
 0x449   : > { %v7168_v38 = vadd.f32 %v13745_v44, %v6652_v26  ;;  %v7296_v46 = vadd.f32 %v13745_v44, %v6780_v27 }
 0x44a   : > { %v6913_v24 = vadd.f32 %v13745_v44, %v6397_v22  ;;  %v7041_v25 = vadd.f32 %v13745_v44, %v6525_v23 }
 0x44b   : > { %v7680_v45 = vmax.f32 %v7168_v38, 0.0  ;;  %v7808_v47 = vmax.f32 %v7296_v46, 0.0 }
 0x44c   : > { %v7425_v31 = vmax.f32 %v6913_v24, 0.0  ;;  %v7553_v32 = vmax.f32 %v7041_v25, 0.0 }
 0x44e   : > { %v10611_v33 = vpack.c.bf16 %v7425_v31, %v7424_v28  ;;  %v10931_v35 = vpack.c.bf16 %v7553_v32, %v7552_v29  ;;  %v4380_v34 = vpop.f32.mrf.mxu2  ;;  %v4700_v36 = vpop.f32.mrf.mxu3 }
 0x44f   : > { %v6653_v39 = vmul.f32 %v13739_v30, %v4380_v34  ;;  %v6781_v37 = vmul.f32 %v13739_v30, %v4700_v36  ;;  %v3743_v40 = vpop.f32.mrf.mxu0  ;;  %v4063_v41 = vpop.f32.mrf.mxu1 }
 0x450   : > { %11667 = vst [vmem:[%s12445_s1 + $0x1b8] sm:$0xff] %v10611_v33   ;;  %v6398_v50 = vmul.f32 %v13739_v30, %v3743_v40  ;;  %v6526_v51 = vmul.f32 %v13739_v30, %v4063_v41 }
 0x451   : > { %11731 = vst [vmem:[%s12445_s1 + $0x3b8] sm:$0xff] %v10931_v35   ;;  %v7169_v42 = vadd.f32 %v13745_v44, %v6653_v39  ;;  %v7297_v43 = vadd.f32 %v13745_v44, %v6781_v37 }
 0x452   : > { %v6914_v58 = vadd.f32 %v13745_v44, %v6398_v50  ;;  %v7042_v59 = vadd.f32 %v13745_v44, %v6526_v51 }
 0x453   : > { %v7681_v48 = vmax.f32 %v7169_v42, 0.0  ;;  %v7809_v49 = vmax.f32 %v7297_v43, 0.0 }
 0x454   : > { %v7426_v2 = vmax.f32 %v6914_v58, 0.0  ;;  %v7554_v3 = vmax.f32 %v7042_v59, 0.0 }
 0x455   : > { %v11251_v52 = vpack.c.bf16 %v7681_v48, %v7680_v45  ;;  %v11571_v53 = vpack.c.bf16 %v7809_v49, %v7808_v47 }
 0x456   : > { %v4383_v54 = vpop.f32.mrf.mxu2  ;;  %v4703_v55 = vpop.f32.mrf.mxu3 }
 0x457   : > { %11795 = vst [vmem:[%s12445_s1 + $0x5b8] sm:$0xff] %v11251_v52   ;;  %v3745_v56 = vpop.f32.mrf.mxu0  ;;  %v4065_v57 = vpop.f32.mrf.mxu1  ;;  %v6654_v0 = vmul.f32 %v13739_v30, %v4383_v54  ;;  %v6782_v1 = vmul.f32 %v13739_v30, %v4703_v55 }
 0x458   : > { %11859 = vst [vmem:[%s12445_s1 + $0x7b8] sm:$0xff] %v11571_v53   ;;  %v6399_v60 = vmul.f32 %v13739_v30, %v3745_v56  ;;  %v6527_v61 = vmul.f32 %v13739_v30, %v4065_v57 }
 0x459   : > { %v7170_v10 = vadd.f32 %v13745_v44, %v6654_v0  ;;  %v7298_v11 = vadd.f32 %v13745_v44, %v6782_v1 }
 0x45a   : > { %v6915_v62 = vadd.f32 %v13745_v44, %v6399_v60  ;;  %v7043_v63 = vadd.f32 %v13745_v44, %v6527_v61 }
 0x45b   : > { %v7682_v18 = vmax.f32 %v7170_v10, 0.0  ;;  %v7810_v19 = vmax.f32 %v7298_v11, 0.0 }
 0x45c   : > { %v7427_v4 = vmax.f32 %v6915_v62, 0.0  ;;  %v7555_v5 = vmax.f32 %v7043_v63, 0.0 }
 0x45e   : > { %v10616_v6 = vpack.c.bf16 %v7427_v4, %v7426_v2  ;;  %v10936_v7 = vpack.c.bf16 %v7555_v5, %v7554_v3  ;;  %v4385_v8 = vpop.f32.mrf.mxu2  ;;  %v4705_v9 = vpop.f32.mrf.mxu3 }
 0x45f   : > { %v6655_v12 = vmul.f32 %v13739_v30, %v4385_v8  ;;  %v6783_v13 = vmul.f32 %v13739_v30, %v4705_v9  ;;  %v3748_v14 = vpop.f32.mrf.mxu0  ;;  %v4068_v15 = vpop.f32.mrf.mxu1 }
 0x460   : > { %11668 = vst [vmem:[%s12445_s1 + $0x1c0] sm:$0xff] %v10616_v6   ;;  %v6400_v22 = vmul.f32 %v13739_v30, %v3748_v14  ;;  %v6528_v23 = vmul.f32 %v13739_v30, %v4068_v15 }
 0x461   : > { %11732 = vst [vmem:[%s12445_s1 + $0x3c0] sm:$0xff] %v10936_v7   ;;  %v7171_v16 = vadd.f32 %v13745_v44, %v6655_v12  ;;  %v7299_v17 = vadd.f32 %v13745_v44, %v6783_v13 }
 0x462   : > { %v6916_v31 = vadd.f32 %v13745_v44, %v6400_v22  ;;  %v7044_v32 = vadd.f32 %v13745_v44, %v6528_v23 }
 0x463   : > { %v7683_v20 = vmax.f32 %v7171_v16, 0.0  ;;  %v7811_v21 = vmax.f32 %v7299_v17, 0.0 }
 0x464   : > { %v7428_v39 = vmax.f32 %v6916_v31, 0.0  ;;  %v7556_v37 = vmax.f32 %v7044_v32, 0.0 }
 0x465   : > { %v11256_v24 = vpack.c.bf16 %v7683_v20, %v7682_v18  ;;  %v11576_v25 = vpack.c.bf16 %v7811_v21, %v7810_v19 }
 0x466   : > { %v4388_v26 = vpop.f32.mrf.mxu2  ;;  %v4708_v27 = vpop.f32.mrf.mxu3 }
 0x467   : > { %11796 = vst [vmem:[%s12445_s1 + $0x5c0] sm:$0xff] %v11256_v24   ;;  %v3750_v28 = vpop.f32.mrf.mxu0  ;;  %v4070_v29 = vpop.f32.mrf.mxu1  ;;  %v6656_v38 = vmul.f32 %v13739_v30, %v4388_v26  ;;  %v6784_v46 = vmul.f32 %v13739_v30, %v4708_v27 }
 0x468   : > { %11860 = vst [vmem:[%s12445_s1 + $0x7c0] sm:$0xff] %v11576_v25   ;;  %v6401_v33 = vmul.f32 %v13739_v30, %v3750_v28  ;;  %v6529_v35 = vmul.f32 %v13739_v30, %v4070_v29 }
 0x469   : > { %v7172_v48 = vadd.f32 %v13745_v44, %v6656_v38  ;;  %v7300_v49 = vadd.f32 %v13745_v44, %v6784_v46 }
 0x46a   : > { %v6917_v34 = vadd.f32 %v13745_v44, %v6401_v33  ;;  %v7045_v36 = vadd.f32 %v13745_v44, %v6529_v35 }
 0x46b   : > { %v7684_v56 = vmax.f32 %v7172_v48, 0.0  ;;  %v7812_v57 = vmax.f32 %v7300_v49, 0.0 }
 0x46c   : > { %v7429_v40 = vmax.f32 %v6917_v34, 0.0  ;;  %v7557_v41 = vmax.f32 %v7045_v36, 0.0 }
 0x46e   : > { %v10621_v42 = vpack.c.bf16 %v7429_v40, %v7428_v39  ;;  %v10941_v43 = vpack.c.bf16 %v7557_v41, %v7556_v37  ;;  %v4390_v45 = vpop.f32.mrf.mxu2  ;;  %v4710_v47 = vpop.f32.mrf.mxu3 }
 0x46f   : > { %v6657_v50 = vmul.f32 %v13739_v30, %v4390_v45  ;;  %v6785_v51 = vmul.f32 %v13739_v30, %v4710_v47  ;;  %v3753_v52 = vpop.f32.mrf.mxu0  ;;  %v4073_v53 = vpop.f32.mrf.mxu1 }
 0x470   : > { %11669 = vst [vmem:[%s12445_s1 + $0x1c8] sm:$0xff] %v10621_v42   ;;  %v6402_v60 = vmul.f32 %v13739_v30, %v3753_v52  ;;  %v6530_v61 = vmul.f32 %v13739_v30, %v4073_v53 }
 0x471   : > { %11733 = vst [vmem:[%s12445_s1 + $0x3c8] sm:$0xff] %v10941_v43   ;;  %v7173_v54 = vadd.f32 %v13745_v44, %v6657_v50  ;;  %v7301_v55 = vadd.f32 %v13745_v44, %v6785_v51 }
 0x472   : > { %v6918_v4 = vadd.f32 %v13745_v44, %v6402_v60  ;;  %v7046_v5 = vadd.f32 %v13745_v44, %v6530_v61 }
 0x473   : > { %v7685_v58 = vmax.f32 %v7173_v54, 0.0  ;;  %v7813_v59 = vmax.f32 %v7301_v55, 0.0 }
 0x474   : > { %v7430_v12 = vmax.f32 %v6918_v4, 0.0  ;;  %v7558_v13 = vmax.f32 %v7046_v5, 0.0 }
 0x475   : > { %v11261_v62 = vpack.c.bf16 %v7685_v58, %v7684_v56  ;;  %v11581_v63 = vpack.c.bf16 %v7813_v59, %v7812_v57 }
 0x476   : > { %v4393_v0 = vpop.f32.mrf.mxu2  ;;  %v4713_v1 = vpop.f32.mrf.mxu3 }
 0x477   : > { %11797 = vst [vmem:[%s12445_s1 + $0x5c8] sm:$0xff] %v11261_v62   ;;  %v3755_v2 = vpop.f32.mrf.mxu0  ;;  %v4075_v3 = vpop.f32.mrf.mxu1  ;;  %v6658_v10 = vmul.f32 %v13739_v30, %v4393_v0  ;;  %v6786_v11 = vmul.f32 %v13739_v30, %v4713_v1 }
 0x478   : > { %11861 = vst [vmem:[%s12445_s1 + $0x7c8] sm:$0xff] %v11581_v63   ;;  %v6403_v6 = vmul.f32 %v13739_v30, %v3755_v2  ;;  %v6531_v7 = vmul.f32 %v13739_v30, %v4075_v3 }
 0x479   : > { %v7174_v20 = vadd.f32 %v13745_v44, %v6658_v10  ;;  %v7302_v21 = vadd.f32 %v13745_v44, %v6786_v11 }
 0x47a   : > { %v6919_v8 = vadd.f32 %v13745_v44, %v6403_v6  ;;  %v7047_v9 = vadd.f32 %v13745_v44, %v6531_v7 }
 0x47b   : > { %v7686_v28 = vmax.f32 %v7174_v20, 0.0  ;;  %v7814_v29 = vmax.f32 %v7302_v21, 0.0 }
 0x47c   : > { %v7431_v14 = vmax.f32 %v6919_v8, 0.0  ;;  %v7559_v15 = vmax.f32 %v7047_v9, 0.0 }
 0x47e   : > { %v10626_v16 = vpack.c.bf16 %v7431_v14, %v7430_v12  ;;  %v10946_v17 = vpack.c.bf16 %v7559_v15, %v7558_v13  ;;  %v4395_v18 = vpop.f32.mrf.mxu2  ;;  %v4715_v19 = vpop.f32.mrf.mxu3 }
 0x47f   : > { %v6659_v22 = vmul.f32 %v13739_v30, %v4395_v18  ;;  %v6787_v23 = vmul.f32 %v13739_v30, %v4715_v19  ;;  %v3758_v24 = vpop.f32.mrf.mxu0  ;;  %v4078_v25 = vpop.f32.mrf.mxu1 }
 0x480   : > { %11670 = vst [vmem:[%s12445_s1 + $0x1d0] sm:$0xff] %v10626_v16   ;;  %v6404_v33 = vmul.f32 %v13739_v30, %v3758_v24  ;;  %v6532_v35 = vmul.f32 %v13739_v30, %v4078_v25 }
 0x481   : > { %11734 = vst [vmem:[%s12445_s1 + $0x3d0] sm:$0xff] %v10946_v17   ;;  %v7175_v26 = vadd.f32 %v13745_v44, %v6659_v22  ;;  %v7303_v27 = vadd.f32 %v13745_v44, %v6787_v23 }
 0x482   : > { %v6920_v40 = vadd.f32 %v13745_v44, %v6404_v33  ;;  %v7048_v41 = vadd.f32 %v13745_v44, %v6532_v35 }
 0x483   : > { %v7687_v31 = vmax.f32 %v7175_v26, 0.0  ;;  %v7815_v32 = vmax.f32 %v7303_v27, 0.0 }
 0x484   : > { %v7432_v50 = vmax.f32 %v6920_v40, 0.0  ;;  %v7560_v51 = vmax.f32 %v7048_v41, 0.0 }
 0x485   : > { %v11266_v34 = vpack.c.bf16 %v7687_v31, %v7686_v28  ;;  %v11586_v36 = vpack.c.bf16 %v7815_v32, %v7814_v29 }
 0x486   : > { %v4398_v38 = vpop.f32.mrf.mxu2  ;;  %v4718_v46 = vpop.f32.mrf.mxu3 }
 0x487   : > { %11798 = vst [vmem:[%s12445_s1 + $0x5d0] sm:$0xff] %v11266_v34   ;;  %v3760_v39 = vpop.f32.mrf.mxu0  ;;  %v4080_v37 = vpop.f32.mrf.mxu1  ;;  %v6660_v48 = vmul.f32 %v13739_v30, %v4398_v38  ;;  %v6788_v49 = vmul.f32 %v13739_v30, %v4718_v46 }
 0x488   : > { %11862 = vst [vmem:[%s12445_s1 + $0x7d0] sm:$0xff] %v11586_v36   ;;  %v6405_v42 = vmul.f32 %v13739_v30, %v3760_v39  ;;  %v6533_v43 = vmul.f32 %v13739_v30, %v4080_v37 }
 0x489   : > { %v7176_v58 = vadd.f32 %v13745_v44, %v6660_v48  ;;  %v7304_v59 = vadd.f32 %v13745_v44, %v6788_v49 }
 0x48a   : > { %v6921_v45 = vadd.f32 %v13745_v44, %v6405_v42  ;;  %v7049_v47 = vadd.f32 %v13745_v44, %v6533_v43 }
 0x48b   : > { %v7688_v2 = vmax.f32 %v7176_v58, 0.0  ;;  %v7816_v3 = vmax.f32 %v7304_v59, 0.0 }
 0x48c   : > { %v7433_v52 = vmax.f32 %v6921_v45, 0.0  ;;  %v7561_v53 = vmax.f32 %v7049_v47, 0.0 }
 0x48e   : > { %v10631_v54 = vpack.c.bf16 %v7433_v52, %v7432_v50  ;;  %v10951_v55 = vpack.c.bf16 %v7561_v53, %v7560_v51  ;;  %v4400_v56 = vpop.f32.mrf.mxu2  ;;  %v4720_v57 = vpop.f32.mrf.mxu3 }
 0x48f   : > { %v6661_v60 = vmul.f32 %v13739_v30, %v4400_v56  ;;  %v6789_v61 = vmul.f32 %v13739_v30, %v4720_v57  ;;  %v3763_v62 = vpop.f32.mrf.mxu0  ;;  %v4083_v63 = vpop.f32.mrf.mxu1 }
 0x490   : > { %11671 = vst [vmem:[%s12445_s1 + $0x1d8] sm:$0xff] %v10631_v54   ;;  %v6406_v6 = vmul.f32 %v13739_v30, %v3763_v62  ;;  %v6534_v7 = vmul.f32 %v13739_v30, %v4083_v63 }
 0x491   : > { %11735 = vst [vmem:[%s12445_s1 + $0x3d8] sm:$0xff] %v10951_v55   ;;  %v7177_v0 = vadd.f32 %v13745_v44, %v6661_v60  ;;  %v7305_v1 = vadd.f32 %v13745_v44, %v6789_v61 }
 0x492   : > { %v6922_v14 = vadd.f32 %v13745_v44, %v6406_v6  ;;  %v7050_v15 = vadd.f32 %v13745_v44, %v6534_v7 }
 0x493   : > { %v7689_v4 = vmax.f32 %v7177_v0, 0.0  ;;  %v7817_v5 = vmax.f32 %v7305_v1, 0.0 }
 0x494   : > { %v7434_v22 = vmax.f32 %v6922_v14, 0.0  ;;  %v7562_v23 = vmax.f32 %v7050_v15, 0.0 }
 0x495   : > { %v11271_v8 = vpack.c.bf16 %v7689_v4, %v7688_v2  ;;  %v11591_v9 = vpack.c.bf16 %v7817_v5, %v7816_v3 }
 0x496   : > { %v4403_v10 = vpop.f32.mrf.mxu2  ;;  %v4723_v11 = vpop.f32.mrf.mxu3 }
 0x497   : > { %11799 = vst [vmem:[%s12445_s1 + $0x5d8] sm:$0xff] %v11271_v8   ;;  %v3765_v12 = vpop.f32.mrf.mxu0  ;;  %v4085_v13 = vpop.f32.mrf.mxu1  ;;  %v6662_v20 = vmul.f32 %v13739_v30, %v4403_v10  ;;  %v6790_v21 = vmul.f32 %v13739_v30, %v4723_v11 }
 0x498   : > { %11863 = vst [vmem:[%s12445_s1 + $0x7d8] sm:$0xff] %v11591_v9   ;;  %v6407_v16 = vmul.f32 %v13739_v30, %v3765_v12  ;;  %v6535_v17 = vmul.f32 %v13739_v30, %v4085_v13 }
 0x499   : > { %v7178_v31 = vadd.f32 %v13745_v44, %v6662_v20  ;;  %v7306_v32 = vadd.f32 %v13745_v44, %v6790_v21 }
 0x49a   : > { %v6923_v18 = vadd.f32 %v13745_v44, %v6407_v16  ;;  %v7051_v19 = vadd.f32 %v13745_v44, %v6535_v17 }
 0x49b   : > { %v7690_v39 = vmax.f32 %v7178_v31, 0.0  ;;  %v7818_v37 = vmax.f32 %v7306_v32, 0.0 }
 0x49c   : > { %v7435_v24 = vmax.f32 %v6923_v18, 0.0  ;;  %v7563_v25 = vmax.f32 %v7051_v19, 0.0 }
 0x49e   : > { %v10636_v26 = vpack.c.bf16 %v7435_v24, %v7434_v22  ;;  %v10956_v27 = vpack.c.bf16 %v7563_v25, %v7562_v23  ;;  %v4405_v28 = vpop.f32.mrf.mxu2  ;;  %v4725_v29 = vpop.f32.mrf.mxu3 }
 0x49f   : > { %v6663_v33 = vmul.f32 %v13739_v30, %v4405_v28  ;;  %v6791_v35 = vmul.f32 %v13739_v30, %v4725_v29  ;;  %v3768_v34 = vpop.f32.mrf.mxu0  ;;  %v4088_v36 = vpop.f32.mrf.mxu1 }
 0x4a0   : > { %11672 = vst [vmem:[%s12445_s1 + $0x1e0] sm:$0xff] %v10636_v26   ;;  %v6408_v42 = vmul.f32 %v13739_v30, %v3768_v34  ;;  %v6536_v43 = vmul.f32 %v13739_v30, %v4088_v36 }
 0x4a1   : > { %11736 = vst [vmem:[%s12445_s1 + $0x3e0] sm:$0xff] %v10956_v27   ;;  %v7179_v38 = vadd.f32 %v13745_v44, %v6663_v33  ;;  %v7307_v46 = vadd.f32 %v13745_v44, %v6791_v35 }
 0x4a2   : > { %v6924_v52 = vadd.f32 %v13745_v44, %v6408_v42  ;;  %v7052_v53 = vadd.f32 %v13745_v44, %v6536_v43 }
 0x4a3   : > { %v7691_v40 = vmax.f32 %v7179_v38, 0.0  ;;  %v7819_v41 = vmax.f32 %v7307_v46, 0.0 }
 0x4a4   : > { %v7436_v60 = vmax.f32 %v6924_v52, 0.0  ;;  %v7564_v61 = vmax.f32 %v7052_v53, 0.0 }
 0x4a5   : > { %v11276_v45 = vpack.c.bf16 %v7691_v40, %v7690_v39  ;;  %v11596_v47 = vpack.c.bf16 %v7819_v41, %v7818_v37 }
 0x4a6   : > { %v4408_v48 = vpop.f32.mrf.mxu2  ;;  %v4728_v49 = vpop.f32.mrf.mxu3 }
 0x4a7   : > { %11800 = vst [vmem:[%s12445_s1 + $0x5e0] sm:$0xff] %v11276_v45   ;;  %v3770_v50 = vpop.f32.mrf.mxu0  ;;  %v4090_v51 = vpop.f32.mrf.mxu1  ;;  %v6664_v58 = vmul.f32 %v13739_v30, %v4408_v48  ;;  %v6792_v59 = vmul.f32 %v13739_v30, %v4728_v49 }
 0x4a8   : > { %11864 = vst [vmem:[%s12445_s1 + $0x7e0] sm:$0xff] %v11596_v47   ;;  %v6409_v54 = vmul.f32 %v13739_v30, %v3770_v50  ;;  %v6537_v55 = vmul.f32 %v13739_v30, %v4090_v51 }
 0x4a9   : > { %v7180_v4 = vadd.f32 %v13745_v44, %v6664_v58  ;;  %v7308_v5 = vadd.f32 %v13745_v44, %v6792_v59 }
 0x4aa   : > { %v6925_v56 = vadd.f32 %v13745_v44, %v6409_v54  ;;  %v7053_v57 = vadd.f32 %v13745_v44, %v6537_v55 }
 0x4ab   : > { %v7692_v12 = vmax.f32 %v7180_v4, 0.0  ;;  %v7820_v13 = vmax.f32 %v7308_v5, 0.0 }
 0x4ac   : > { %v7437_v62 = vmax.f32 %v6925_v56, 0.0  ;;  %v7565_v63 = vmax.f32 %v7053_v57, 0.0 }
 0x4ae   : > { %v10641_v0 = vpack.c.bf16 %v7437_v62, %v7436_v60  ;;  %v10961_v1 = vpack.c.bf16 %v7565_v63, %v7564_v61  ;;  %v4410_v2 = vpop.f32.mrf.mxu2  ;;  %v4730_v3 = vpop.f32.mrf.mxu3 }
 0x4af   : > { %v6665_v6 = vmul.f32 %v13739_v30, %v4410_v2  ;;  %v6793_v7 = vmul.f32 %v13739_v30, %v4730_v3  ;;  %v3773_v8 = vpop.f32.mrf.mxu0  ;;  %v4093_v9 = vpop.f32.mrf.mxu1 }
 0x4b0   : > { %11673 = vst [vmem:[%s12445_s1 + $0x1e8] sm:$0xff] %v10641_v0   ;;  %v6410_v16 = vmul.f32 %v13739_v30, %v3773_v8  ;;  %v6538_v17 = vmul.f32 %v13739_v30, %v4093_v9 }
 0x4b1   : > { %11737 = vst [vmem:[%s12445_s1 + $0x3e8] sm:$0xff] %v10961_v1   ;;  %v7181_v10 = vadd.f32 %v13745_v44, %v6665_v6  ;;  %v7309_v11 = vadd.f32 %v13745_v44, %v6793_v7 }
 0x4b2   : > { %v6926_v24 = vadd.f32 %v13745_v44, %v6410_v16  ;;  %v7054_v25 = vadd.f32 %v13745_v44, %v6538_v17 }
 0x4b3   : > { %v7693_v14 = vmax.f32 %v7181_v10, 0.0  ;;  %v7821_v15 = vmax.f32 %v7309_v11, 0.0 }
 0x4b4   : > { %v7438_v33 = vmax.f32 %v6926_v24, 0.0  ;;  %v7566_v35 = vmax.f32 %v7054_v25, 0.0 }
 0x4b5   : > { %v11281_v18 = vpack.c.bf16 %v7693_v14, %v7692_v12  ;;  %v11601_v19 = vpack.c.bf16 %v7821_v15, %v7820_v13 }
 0x4b6   : > { %v4413_v20 = vpop.f32.mrf.mxu2  ;;  %v4733_v21 = vpop.f32.mrf.mxu3 }
 0x4b7   : > { %11801 = vst [vmem:[%s12445_s1 + $0x5e8] sm:$0xff] %v11281_v18   ;;  %v3775_v22 = vpop.f32.mrf.mxu0  ;;  %v4095_v23 = vpop.f32.mrf.mxu1  ;;  %v6666_v31 = vmul.f32 %v13739_v30, %v4413_v20  ;;  %v6794_v32 = vmul.f32 %v13739_v30, %v4733_v21 }
 0x4b8   : > { %11865 = vst [vmem:[%s12445_s1 + $0x7e8] sm:$0xff] %v11601_v19   ;;  %v6411_v26 = vmul.f32 %v13739_v30, %v3775_v22  ;;  %v6539_v27 = vmul.f32 %v13739_v30, %v4095_v23 }
 0x4b9   : > { %v7182_v40 = vadd.f32 %v13745_v44, %v6666_v31  ;;  %v7310_v41 = vadd.f32 %v13745_v44, %v6794_v32 }
 0x4ba   : > { %v6927_v28 = vadd.f32 %v13745_v44, %v6411_v26  ;;  %v7055_v29 = vadd.f32 %v13745_v44, %v6539_v27 }
 0x4bb   : > { %v7694_v50 = vmax.f32 %v7182_v40, 0.0  ;;  %v7822_v51 = vmax.f32 %v7310_v41, 0.0 }
 0x4bc   : > { %v7439_v34 = vmax.f32 %v6927_v28, 0.0  ;;  %v7567_v36 = vmax.f32 %v7055_v29, 0.0 }
 0x4be   : > { %v10646_v38 = vpack.c.bf16 %v7439_v34, %v7438_v33  ;;  %v10966_v46 = vpack.c.bf16 %v7567_v36, %v7566_v35  ;;  %v4415_v39 = vpop.f32.mrf.mxu2  ;;  %v4735_v37 = vpop.f32.mrf.mxu3 }
 0x4bf   : > { %v6667_v42 = vmul.f32 %v13739_v30, %v4415_v39  ;;  %v6795_v43 = vmul.f32 %v13739_v30, %v4735_v37  ;;  %v3778_v45 = vpop.f32.mrf.mxu0  ;;  %v4098_v47 = vpop.f32.mrf.mxu1 }
 0x4c0   : > { %11674 = vst [vmem:[%s12445_s1 + $0x1f0] sm:$0xff] %v10646_v38   ;;  %v6412_v54 = vmul.f32 %v13739_v30, %v3778_v45  ;;  %v6540_v55 = vmul.f32 %v13739_v30, %v4098_v47 }
 0x4c1   : > { %11738 = vst [vmem:[%s12445_s1 + $0x3f0] sm:$0xff] %v10966_v46   ;;  %v7183_v48 = vadd.f32 %v13745_v44, %v6667_v42  ;;  %v7311_v49 = vadd.f32 %v13745_v44, %v6795_v43 }
 0x4c2   : > { %v6928_v62 = vadd.f32 %v13745_v44, %v6412_v54  ;;  %v7056_v63 = vadd.f32 %v13745_v44, %v6540_v55 }
 0x4c3   : > { %v7695_v52 = vmax.f32 %v7183_v48, 0.0  ;;  %v7823_v53 = vmax.f32 %v7311_v49, 0.0 }
 0x4c4   : > { %v7440_v6 = vmax.f32 %v6928_v62, 0.0  ;;  %v7568_v7 = vmax.f32 %v7056_v63, 0.0 }
 0x4c5   : > { %v11286_v56 = vpack.c.bf16 %v7695_v52, %v7694_v50  ;;  %v11606_v57 = vpack.c.bf16 %v7823_v53, %v7822_v51 }
 0x4c6   : > { %v4418_v58 = vpop.f32.mrf.mxu2  ;;  %v4738_v59 = vpop.f32.mrf.mxu3 }
 0x4c7   : > { %11802 = vst [vmem:[%s12445_s1 + $0x5f0] sm:$0xff] %v11286_v56   ;;  %v3780_v60 = vpop.f32.mrf.mxu0  ;;  %v4100_v61 = vpop.f32.mrf.mxu1  ;;  %v6668_v4 = vmul.f32 %v13739_v30, %v4418_v58  ;;  %v6796_v5 = vmul.f32 %v13739_v30, %v4738_v59 }
 0x4c8   : > { %11866 = vst [vmem:[%s12445_s1 + $0x7f0] sm:$0xff] %v11606_v57   ;;  %v6413_v0 = vmul.f32 %v13739_v30, %v3780_v60  ;;  %v6541_v1 = vmul.f32 %v13739_v30, %v4100_v61 }
 0x4c9   : > { %v7184_v14 = vadd.f32 %v13745_v44, %v6668_v4  ;;  %v7312_v15 = vadd.f32 %v13745_v44, %v6796_v5 }
 0x4ca   : > { %v6929_v2 = vadd.f32 %v13745_v44, %v6413_v0  ;;  %v7057_v3 = vadd.f32 %v13745_v44, %v6541_v1 }
 0x4cb   : > { %v7696_v20 = vmax.f32 %v7184_v14, 0.0  ;;  %v7824_v21 = vmax.f32 %v7312_v15, 0.0 }
 0x4cc   : > { %v7441_v8 = vmax.f32 %v6929_v2, 0.0  ;;  %v7569_v9 = vmax.f32 %v7057_v3, 0.0 }
 0x4ce   : > { %v10651_v10 = vpack.c.bf16 %v7441_v8, %v7440_v6  ;;  %v10971_v11 = vpack.c.bf16 %v7569_v9, %v7568_v7  ;;  %v4420_v12 = vpop.f32.mrf.mxu2  ;;  %v4740_v13 = vpop.f32.mrf.mxu3 }
 0x4cf   : > { %v6669_v16 = vmul.f32 %v13739_v30, %v4420_v12  ;;  %v6797_v17 = vmul.f32 %v13739_v30, %v4740_v13 }
 0x4d0   : > { %11675 = vst [vmem:[%s12445_s1 + $0x1f8] sm:$0xff] %v10651_v10  }
 0x4d1   : > { %11739 = vst [vmem:[%s12445_s1 + $0x3f8] sm:$0xff] %v10971_v11   ;;  %v7185_v18 = vadd.f32 %v13745_v44, %v6669_v16  ;;  %v7313_v19 = vadd.f32 %v13745_v44, %v6797_v17 }
 0x4d3   : > { %v7697_v22 = vmax.f32 %v7185_v18, 0.0  ;;  %v7825_v30 = vmax.f32 %v7313_v19, 0.0 }
 0x4d5   : > { %v11291_v23 = vpack.c.bf16 %v7697_v22, %v7696_v20  ;;  %v11611_v24 = vpack.c.bf16 %v7825_v30, %v7824_v21 }
 0x4d7   : > { %11803 = vst [vmem:[%s12445_s1 + $0x5f8] sm:$0xff] %v11291_v23  }
 0x4d8   : > { %11867 = vst [vmem:[%s12445_s1 + $0x7f8] sm:$0xff] %v11611_v24  }
 0x4d9   : > { %12148 = shalt.err (!%p12145_p12)
}
 0x4da   : > { %s12218_s6 = smov 64   ;;  %s12219_s7 = smov 4  }
 0x4db   : > { %11906 = dma.vmem_to_hbm [thread:$0]  (%p12342_p3), %s8865_s18, 32768, %s8867_s11, %s8851_s12, %s12218_s6, %s12218_s6, %s12219_s7  }
 0x4dc PF: > { %p11933_p13 = scmp.ge.s32.totalorder %s12211_s20, 2  ;;  %s8881_s13 = sand.u32 1, %s12191_s15  }
 0x4dd   : > { %s8882_s8 = scalar_lea.sflag [#allocation5], %s8881_s13 }
 0x4de   : > { %p11923_p0 = pnand %p11933_p13, %p12294_p6 }
 0x4e0   : > { %p11924_p5 = pneg %p11923_p0 }
 0x4e2   : > { %12186 = dma.done.wait (%p11924_p5), %s8882_s8, 32768  }
 0x4e3   : > { %12188 = vsyncadd (%p11924_p5), %s8882_s8, 4294934528  ;;  %s22_s20 = sadd.s32 1, %s12211_s20   ;;  %s14008_s15 = smov %s12195_s16 }
 0x4e4   : > { %p19_p7 = scmp.ge.s32.totalorder %s22_s20, 18   ;;  %s14009_s16 = smov %s12199_s17 }
 0x4e5   : > { %s14010_s17 = smov %s12351_s14  ;;  %s14011_s18 = smov %s12207_s19 }
 0x4e6   : > { %s14012_s19 = smov %s14014_s29  ;;  %21 = sbr.rel (!%p19_p7) target bundleno = 11 (0xb), region = 104 }
 0x4eb   :  { %8888 = vsyncpa [#allocation4], 1 }
 0x4ec   :  { %8890 = vsyncpa [#allocation4 + $0x1], 1 }
 0x4ed   :  { %8891 = vsyncpa [#allocation7], 1 }
 0x4ee   :  { %8892 = vsyncpa [#allocation10], 1 }
 0x4ef   :  { %8893 = vsyncpa [#allocation5], 1 }
 0x4f0   :  { %8895 = vsyncpa [#allocation5 + $0x1], 1 }

</bundles_post_ra>
